<compile_context>
chip_gen: v5e
topology: v5e:2x2
jax: 0.10.0
libtpu: 0.0.40
codegen_flags: <defaults>
</compile_context>

<pallas_src>
import functools

import jax
import jax.numpy as jnp
from jax.experimental import pallas as pl
from jax.experimental.pallas import tpu as pltpu

NUM_CLASSES = 10
C = 128  # lane-padded channel width used for every internal tensor


def _round_up(x, m):
    return ((x + m - 1) // m) * m


# ---------------------------------------------------------------------------
# Fused kernel: stem -> blocks -> head -> global pool -> classifier
# ---------------------------------------------------------------------------
def _fused_kernel(patches_ref, masks_ref, stem_w_ref, dww_ref, aff_ref,
                  mats_ref, out_ref, buf_ref, sh_ref, pool_ref, *,
                  B, MS, M1, Wo1, M2, m1):
    f32 = jnp.float32
    bf16 = jnp.bfloat16
    offs = [(di, dj) for di in (-1, 0, 1) for dj in (-1, 0, 1)]

    def silu(v):
        return v * jax.nn.sigmoid(v)

    def arow(i):                              # (1, 128) folded-BN scale/bias row
        return aff_ref[i:i + 1, :]

    # Halo margins must be zero; the interior is fully overwritten before every
    # use.  Re-zero only the margins (2*m1 rows ~ a handful of vreg stores)
    # every step instead of zeroing the whole scratch.
    zero_rows = jnp.zeros((m1, C), f32)
    sh_ref[0:m1, :] = zero_rows
    sh_ref[m1 + M1:m1 + M1 + m1, :] = zero_rows

    # Hoisted small constants (no re-slicing/broadcasting inside the loops).
    mask_l = masks_ref[:, 0:1]                # 0 where w == 0        (M1, 1)
    mask_r = masks_ref[:, 1:2]                # 0 where w == Wo1 - 1  (M1, 1)
    dec = masks_ref[:, 2:3]                   # 1 at stride-2 output positions
    inv_m2 = 1.0 / M2

    def dwconv(xb, dw):
        """3x3 stride-1 depthwise conv (pad=1) on one image via halo scratch."""
        sh_ref[m1:m1 + M1, :] = xb
        acc = xb * dw[4:5, :]                 # centre tap, never masked
        for k, (di, dj) in enumerate(offs):
            if di == 0 and dj == 0:
                continue
            off = m1 + di * Wo1 + dj
            t = sh_ref[off:off + M1, :] * dw[k:k + 1, :]
            if dj == -1:
                t = t * mask_l                # kill left row-wrap
            elif dj == 1:
                t = t * mask_r                # kill right row-wrap
            acc = acc + t                     # running accumulator (no tree)
        return acc

    # ---- conv_stem (stride-2 im2col done host-side) + bn1 + SiLU ----------
    x1 = jnp.dot(patches_ref[0].astype(bf16), stem_w_ref[...],
                 preferred_element_type=f32)                   # (B*MS, 128)
    buf_ref[...] = silu(x1 * arow(0) + arow(1))

    # ---- blocks[0]: depthwise 3x3 s1 + bn + SiLU (per image) --------------
    dw1 = dww_ref[0:9, :]
    s_dw1, b_dw1 = arow(2), arow(3)
    for b in range(B):
        r0 = b * MS
        xb = buf_ref[r0:r0 + M1, :]
        buf_ref[r0:r0 + M1, :] = silu(dwconv(xb, dw1) * s_dw1 + b_dw1)

    # ---- blocks[0] pointwise 1x1 + bn ; blocks[1] expand 1x1 + bn + SiLU --
    xd = buf_ref[...]
    x2 = jnp.dot(xd.astype(bf16), mats_ref[0], preferred_element_type=f32)
    x2 = x2 * arow(4) + arow(5)
    xe = jnp.dot(x2.astype(bf16), mats_ref[1], preferred_element_type=f32)
    buf_ref[...] = silu(xe * arow(6) + arow(7))

    # ---- blocks[1]: depthwise 3x3 STRIDE-2 + bn + SiLU + SE pooling -------
    # Computed at stride 1; the stride-2 decimation is folded into the two
    # pooling reductions via `dec` (everything in between is row-wise, so the
    # non-decimated rows are computed but never observed).
    # TODO(synk): for non-toy H,W compute the taps directly at the stride-2
    # positions to avoid the 4x row redundancy downstream of this conv.
    dw2 = dww_ref[9:18, :]
    s_dw2, b_dw2 = arow(8), arow(9)
    for b in range(B):
        r0 = b * MS
        xb = buf_ref[r0:r0 + M1, :]
        xds = silu(dwconv(xb, dw2) * s_dw2 + b_dw2)
        buf_ref[r0:r0 + M1, :] = xds
        pool_ref[b:b + 1, :] = jnp.sum(xds * dec, axis=0,
                                       keepdims=True) * inv_m2

    # ---- Squeeze-Excite, batched over the B images ------------------------
    p = pool_ref[...]                                          # (B, 128)
    s = silu(jnp.dot(p.astype(bf16), mats_ref[2],
                     preferred_element_type=f32) + arow(10))
    g = jax.nn.sigmoid(jnp.dot(s.astype(bf16), mats_ref[3],
                               preferred_element_type=f32) + arow(11))
    for b in range(B):
        r0 = b * MS
        buf_ref[r0:r0 + M1, :] = buf_ref[r0:r0 + M1, :] * g[b:b + 1, :]

    # ---- blocks[1] project 1x1 + bn ; conv_head 1x1 + bn2 + SiLU ----------
    xg = buf_ref[...]
    xpj = jnp.dot(xg.astype(bf16), mats_ref[4], preferred_element_type=f32)
    xpj = xpj * arow(12) + arow(13)
    xh = silu(jnp.dot(xpj.astype(bf16), mats_ref[5],
                      preferred_element_type=f32) * arow(14) + arow(15))

    # ---- global average pool over the stride-2 positions ------------------
    for b in range(B):
        r0 = b * MS
        pool_ref[b:b + 1, :] = jnp.sum(xh[r0:r0 + M1, :] * dec, axis=0,
                                       keepdims=True) * inv_m2

    # ---- classifier, fused (drop_rate == 0.0 -> dropout is a no-op) -------
    logits = jnp.dot(pool_ref[...].astype(bf16), mats_ref[6],
                     preferred_element_type=f32) + arow(16)
    out_ref[0] = logits


# ---------------------------------------------------------------------------
# Wrapper: one fused pallas_call per (same-shaped) input chunk
# ---------------------------------------------------------------------------
def _forward_chunk(pp, x_nchw):
    """Features + global_pool + classifier for one NCHW batch.
    Returns (N, 128) lane-padded logits (first NUM_CLASSES lanes valid)."""
    N, Cin, H, W = x_nchw.shape
    assert 9 * Cin <= C, "stem im2col K must fit in 128 lanes"
    Ho1, Wo1 = (H - 1) // 2 + 1, (W - 1) // 2 + 1        # stem, stride 2, pad 1
    Ho2, Wo2 = (Ho1 - 1) // 2 + 1, (Wo1 - 1) // 2 + 1    # blocks[1] dw, stride 2
    M1, M2 = Ho1 * Wo1, Ho2 * Wo2
    MS = _round_up(M1, 8)                    # per-image row stride (aligned)
    B = max(1, min(N, 256 // MS))            # images per grid step: M ~ 128..256
    n_grid = -(-N // B)
    N_pad = n_grid * B
    m1 = _round_up(Wo1 + 1, 8)               # halo margin rows >= max tap offset

    # --- stride-2 im2col of the stem input (pure layout prep, XLA side) ----
    x = jnp.transpose(x_nchw.astype(jnp.float32), (0, 2, 3, 1))    # NHWC
    xp = jnp.pad(x, ((0, 0), (1, 1), (1, 1), (0, 0)))
    slabs = []
    for a in range(3):
        for bb in range(3):
            slabs.append(xp[:, a:a + 2 * (Ho1 - 1) + 1:2,
                            bb:bb + 2 * (Wo1 - 1) + 1:2, :])       # (N,Ho1,Wo1,Cin)
    patches = jnp.concatenate(slabs, axis=-1).reshape(N, M1, 9 * Cin)
    patches = jnp.pad(patches,
                      ((0, N_pad - N), (0, MS - M1), (0, C - 9 * Cin)))
    patches = patches.reshape(n_grid, B * MS, C)

    # --- tiny per-shape constants: row-wrap masks + stride-2 position mask --
    ww = jnp.arange(M1, dtype=jnp.int32) % Wo1
    hh = jnp.arange(M1, dtype=jnp.int32) // Wo1
    masks = jnp.stack([(ww != 0).astype(jnp.float32),
                       (ww != Wo1 - 1).astype(jnp.float32),
                       ((hh % 2 == 0) & (ww % 2 == 0)).astype(jnp.float32)],
                      axis=1)
    masks = jnp.pad(masks, ((0, 0), (0, 5)))                       # (M1, 8)

    kernel = functools.partial(_fused_kernel, B=B, MS=MS, M1=M1, Wo1=Wo1,
                               M2=M2, m1=m1)
    out = pl.pallas_call(
        kernel,
        out_shape=jax.ShapeDtypeStruct((n_grid, B, C), jnp.float32),
        grid=(n_grid,),
        in_specs=[
            pl.BlockSpec((1, B * MS, C), lambda g: (g, 0, 0)),  # im2col patches
            pl.BlockSpec((M1, 8), lambda g: (0, 0)),            # wrap/dec masks
            pl.BlockSpec((C, C), lambda g: (0, 0)),             # stem weight bf16
            pl.BlockSpec((18, C), lambda g: (0, 0)),            # dw weights f32
            pl.BlockSpec((17, C), lambda g: (0, 0)),            # folded BN + biases
            pl.BlockSpec((7, C, C), lambda g: (0, 0, 0)),       # 1x1 weights bf16
        ],
        out_specs=pl.BlockSpec((1, B, C), lambda g: (g, 0, 0)),
        scratch_shapes=[
            pltpu.VMEM((B * MS, C), jnp.float32),               # resident activations
            pltpu.VMEM((M1 + 2 * m1, C), jnp.float32),          # dwconv halo scratch
            pltpu.VMEM((B, C), jnp.float32),                    # pooled rows
        ],
        compiler_params=pltpu.CompilerParams(
            dimension_semantics=("parallel",)),
    )(patches, masks, pp["stem_w"], pp["dww"], pp["aff"], pp["mats"])
    return out.reshape(N_pad, C)[:N]


def forward(pp, x):
    """x: NCHW array, or a list of NCHW arrays with different spatial sizes."""
    is_list = isinstance(x, (list, tuple))
    xs = list(x) if is_list else [x]
    # The classifier is row-wise and drop_rate == 0.0 (dropout no-op), so
    # fusing it per chunk is identical to torch's concat-after-pool ordering.
    logits = [_forward_chunk(pp, xi) for xi in xs]
    logits = jnp.concatenate(logits, axis=0) if is_list else logits[0]
    return logits[:, :NUM_CLASSES]


# ---------------------------------------------------------------------------
# Parameters (deterministic synthetic EfficientNet: stem, DS block, IR+SE
# block, head, classifier) + one-time packing into kernel-ready layout.
# ---------------------------------------------------------------------------
def init_params(key, in_ch=4, num_classes=NUM_CLASSES):
    keys = iter(jax.random.split(key, 64))

    def nk():
        return next(keys)

    def w(shape, scale=0.1):
        return scale * jax.random.normal(nk(), shape, jnp.float32)

    def bn(c):
        return {
            "gamma": 1.0 + 0.1 * jax.random.normal(nk(), (c,), jnp.float32),
            "beta": 0.1 * jax.random.normal(nk(), (c,), jnp.float32),
            "mean": 0.1 * jax.random.normal(nk(), (c,), jnp.float32),
            "var": 0.5 + jax.random.uniform(nk(), (c,), jnp.float32),
        }

    c_stem, c1, c2, c2e, c_se, c_head = 8, 16, 24, 64, 4, 32
    p = {}
    p["stem_w"] = w((3, 3, in_ch, c_stem)); p["bn1"] = bn(c_stem)
    p["b1_dw_w"] = w((9, c_stem)); p["b1_dw_bn"] = bn(c_stem)
    p["b1_pw_w"] = w((c_stem, c1)); p["b1_pw_bn"] = bn(c1)
    p["b2_exp_w"] = w((c1, c2e)); p["b2_exp_bn"] = bn(c2e)
    p["b2_dw_w"] = w((9, c2e)); p["b2_dw_bn"] = bn(c2e)
    p["b2_se_w1"] = w((c2e, c_se)); p["b2_se_b1"] = w((c_se,))
    p["b2_se_w2"] = w((c_se, c2e)); p["b2_se_b2"] = w((c2e,))
    p["b2_proj_w"] = w((c2e, c2)); p["b2_proj_bn"] = bn(c2)
    p["head_w"] = w((c2, c_head)); p["bn2"] = bn(c_head)
    p["cls_w"] = w((c_head, num_classes)); p["cls_b"] = w((num_classes,))
    return p


def prepare_params(p):
    """Fold eval-mode BN, lane-pad to 128, cast matmul weights to bf16 and pack
    everything into a handful of kernel inputs — done ONCE, off the hot path."""

    def fold(bn, eps=1e-5):
        s = bn["gamma"] / jnp.sqrt(bn["var"] + eps)
        return s, bn["beta"] - bn["mean"] * s

    def padv(v):
        return jnp.zeros((C,), jnp.float32).at[:v.shape[0]].set(
            v.astype(jnp.float32))

    def padm(m):
        return jnp.zeros((C, C), jnp.float32).at[:m.shape[0], :m.shape[1]].set(
            m.astype(jnp.float32))

    s1, b1 = fold(p["bn1"])
    sdw1, bdw1 = fold(p["b1_dw_bn"])
    spw1, bpw1 = fold(p["b1_pw_bn"])
    sexp, bexp = fold(p["b2_exp_bn"])
    sdw2, bdw2 = fold(p["b2_dw_bn"])
    sprj, bprj = fold(p["b2_proj_bn"])
    shd, bhd = fold(p["bn2"])

    aff = jnp.stack([
        padv(s1), padv(b1),                        # 0,1   bn1
        padv(sdw1), padv(bdw1),                    # 2,3   blocks[0] dw bn
        padv(spw1), padv(bpw1),                    # 4,5   blocks[0] pw bn
        padv(sexp), padv(bexp),                    # 6,7   blocks[1] expand bn
        padv(sdw2), padv(bdw2),                    # 8,9   blocks[1] dw bn
        padv(p["b2_se_b1"]), padv(p["b2_se_b2"]),  # 10,11 SE biases
        padv(sprj), padv(bprj),                    # 12,13 blocks[1] project bn
        padv(shd), padv(bhd),                      # 14,15 bn2 (head)
        padv(p["cls_b"]),                          # 16    classifier bias
    ], axis=0)                                     # (17, 128) f32

    def pad_dw(wk):
        return jnp.zeros((9, C), jnp.float32).at[:, :wk.shape[1]].set(
            wk.astype(jnp.float32))

    dww = jnp.concatenate([pad_dw(p["b1_dw_w"]), pad_dw(p["b2_dw_w"])], axis=0)

    stem2d = p["stem_w"].reshape(-1, p["stem_w"].shape[-1])       # (9*Cin, 8)
    stem_w = padm(stem2d).astype(jnp.bfloat16)                    # (128, 128)

    mats = jnp.stack([
        padm(p["b1_pw_w"]), padm(p["b2_exp_w"]),
        padm(p["b2_se_w1"]), padm(p["b2_se_w2"]),
        padm(p["b2_proj_w"]), padm(p["head_w"]),
        padm(p["cls_w"]),
    ], axis=0).astype(jnp.bfloat16)                               # (7, 128, 128)

    # Fragile invariant (see review): the SE gate is sigmoid(0)=0.5 on padded
    # lanes; that is only benign because these rows/weights are exactly zero
    # in the padded lanes.
    c2e = p["b2_exp_w"].shape[1]
    assert float(jnp.max(jnp.abs(aff[8:14, c2e:]))) == 0.0
    assert float(jnp.max(jnp.abs(mats[4].astype(jnp.float32)[c2e:, :]))) == 0.0

    return {"stem_w": stem_w, "dww": dww, "aff": aff, "mats": mats}


# ---------------------------------------------------------------------------
if __name__ == "__main__":
    key = jax.random.PRNGKey(0)
    pkey, xkey, x2key = jax.random.split(key, 3)
    raw_params = init_params(pkey)
    packed = prepare_params(raw_params)

    # single-tensor path
    x = jax.random.normal(xkey, (2, 4, 16, 16), jnp.float32)
    out = forward(packed, x)
    jax.block_until_ready(out)
    assert out.shape == (2, NUM_CLASSES), out.shape
    assert bool(jnp.all(jnp.isfinite(out)))

    # variable-length (list) path: different spatial sizes, concat after pooling
    xs = [x, jax.random.normal(x2key, (1, 4, 12, 12), jnp.float32)]
    out_list = forward(packed, xs)
    jax.block_until_ready(out_list)
    assert out_list.shape == (3, NUM_CLASSES), out_list.shape
    assert bool(jnp.all(jnp.isfinite(out_list)))

    print("KERNEL_OK")
</pallas_src>

<mosaic_0001>
module attributes {stable_mosaic.version = 11 : i64} {
  func.func @_fused_kernel(%arg0: i32, %arg1: memref<1x128x128xf32, #tpu.memory_space<vmem>>, %arg2: memref<64x8xf32, #tpu.memory_space<vmem>>, %arg3: memref<128x128xbf16, #tpu.memory_space<vmem>>, %arg4: memref<18x128xf32, #tpu.memory_space<vmem>>, %arg5: memref<17x128xf32, #tpu.memory_space<vmem>>, %arg6: memref<7x128x128xbf16, #tpu.memory_space<vmem>>, %arg7: memref<1x2x128xf32, #tpu.memory_space<vmem>>, %arg8: memref<128x128xf32, #tpu.memory_space<vmem>>, %arg9: memref<96x128xf32, #tpu.memory_space<vmem>>, %arg10: memref<2x128xf32, #tpu.memory_space<vmem>>) attributes {dimension_semantics = [#tpu.dimension_semantics<parallel>], iteration_bounds = array<i64: 1>, scalar_prefetch = 0 : i64, scratch_operands = 3 : i64, tpu.core_type = #tpu.core_type<tc>, window_params = [{transform_indices = @transform_0, window_bounds = array<i64: 1, 128, 128>}, {pipeline_mode = #tpu.pipeline_mode<synchronous>, transform_indices = @transform_1, window_bounds = array<i64: 64, 8>}, {pipeline_mode = #tpu.pipeline_mode<synchronous>, transform_indices = @transform_2, window_bounds = array<i64: 128, 128>}, {pipeline_mode = #tpu.pipeline_mode<synchronous>, transform_indices = @transform_3, window_bounds = array<i64: 18, 128>}, {pipeline_mode = #tpu.pipeline_mode<synchronous>, transform_indices = @transform_4, window_bounds = array<i64: 17, 128>}, {pipeline_mode = #tpu.pipeline_mode<synchronous>, transform_indices = @transform_5, window_bounds = array<i64: 7, 128, 128>}, {transform_indices = @transform_6, window_bounds = array<i64: 1, 2, 128>}]} {
    %cst = arith.constant 0.000000e+00 : f32
    %0 = vector.broadcast %cst : f32 to vector<16x128xf32>
    %c0 = arith.constant 0 : index
    %c0_0 = arith.constant 0 : index
    %1 = vector.load %arg9[%c0, %c0_0] : memref<96x128xf32, #tpu.memory_space<vmem>>, vector<16x128xf32>
    tpu.vector_store %arg9[%c0, %c0_0], %0 {strides = array<i32>} : memref<96x128xf32, #tpu.memory_space<vmem>>, vector<16x128xf32>,
    %c80 = arith.constant 80 : index
    %c0_1 = arith.constant 0 : index
    %2 = vector.load %arg9[%c80, %c0_1] : memref<96x128xf32, #tpu.memory_space<vmem>>, vector<16x128xf32>
    tpu.vector_store %arg9[%c80, %c0_1], %0 {strides = array<i32>} : memref<96x128xf32, #tpu.memory_space<vmem>>, vector<16x128xf32>,
    %c0_2 = arith.constant 0 : index
    %c0_3 = arith.constant 0 : index
    %3 = vector.load %arg2[%c0_2, %c0_3] : memref<64x8xf32, #tpu.memory_space<vmem>>, vector<64x1xf32>
    %c0_4 = arith.constant 0 : index
    %c1 = arith.constant 1 : index
    %4 = vector.load %arg2[%c0_4, %c1] : memref<64x8xf32, #tpu.memory_space<vmem>>, vector<64x1xf32>
    %c0_5 = arith.constant 0 : index
    %c2 = arith.constant 2 : index
    %5 = vector.load %arg2[%c0_5, %c2] : memref<64x8xf32, #tpu.memory_space<vmem>>, vector<64x1xf32>
    %c0_6 = arith.constant 0 : index
    %c0_7 = arith.constant 0 : index
    %c0_8 = arith.constant 0 : index
    %6 = vector.load %arg1[%c0_6, %c0_7, %c0_8] : memref<1x128x128xf32, #tpu.memory_space<vmem>>, vector<1x128x128xf32>
    %7 = vector.shape_cast %6 : vector<1x128x128xf32> to vector<128x128xf32>
    %8 = arith.truncf %7 : vector<128x128xf32> to vector<128x128xbf16>
    %c0_9 = arith.constant 0 : index
    %c0_10 = arith.constant 0 : index
    %9 = vector.load %arg3[%c0_9, %c0_10] : memref<128x128xbf16, #tpu.memory_space<vmem>>, vector<128x128xbf16>
    %cst_11 = arith.constant dense<0.000000e+00> : vector<128x128xf32>
    %10 = tpu.matmul %8, %9, %cst_11 {dimension_numbers = #tpu.dot_dimension_numbers<[1], [0], [0], [1], [0, 0, 1, 1], [], []>} : vector<128x128xbf16>, vector<128x128xbf16>, vector<128x128xf32> -> vector<128x128xf32>
    %c0_12 = arith.constant 0 : index
    %c0_13 = arith.constant 0 : index
    %11 = vector.load %arg5[%c0_12, %c0_13] : memref<17x128xf32, #tpu.memory_space<vmem>>, vector<1x128xf32>
    %12 = vector.broadcast %11 : vector<1x128xf32> to vector<128x128xf32>
    %13 = arith.mulf %10, %12 : vector<128x128xf32>
    %c1_14 = arith.constant 1 : index
    %c0_15 = arith.constant 0 : index
    %14 = vector.load %arg5[%c1_14, %c0_15] : memref<17x128xf32, #tpu.memory_space<vmem>>, vector<1x128xf32>
    %15 = vector.broadcast %14 : vector<1x128xf32> to vector<128x128xf32>
    %16 = arith.addf %13, %15 : vector<128x128xf32>
    %17 = arith.negf %16 : vector<128x128xf32>
    %18 = math.exp %17 : vector<128x128xf32>
    %cst_16 = arith.constant 1.000000e+00 : f32
    %19 = vector.broadcast %cst_16 : f32 to vector<128x128xf32>
    %20 = arith.addf %19, %18 : vector<128x128xf32>
    %21 = arith.divf %19, %20 : vector<128x128xf32>
    %22 = arith.mulf %16, %21 : vector<128x128xf32>
    %c0_17 = arith.constant 0 : index
    %c0_18 = arith.constant 0 : index
    %23 = vector.load %arg8[%c0_17, %c0_18] : memref<128x128xf32, #tpu.memory_space<vmem>>, vector<128x128xf32>
    tpu.vector_store %arg8[%c0_17, %c0_18], %22 {strides = array<i32>} : memref<128x128xf32, #tpu.memory_space<vmem>>, vector<128x128xf32>,
    %c0_19 = arith.constant 0 : index
    %c0_20 = arith.constant 0 : index
    %24 = vector.load %arg4[%c0_19, %c0_20] : memref<18x128xf32, #tpu.memory_space<vmem>>, vector<9x128xf32>
    %c2_21 = arith.constant 2 : index
    %c0_22 = arith.constant 0 : index
    %25 = vector.load %arg5[%c2_21, %c0_22] : memref<17x128xf32, #tpu.memory_space<vmem>>, vector<1x128xf32>
    %c3 = arith.constant 3 : index
    %c0_23 = arith.constant 0 : index
    %26 = vector.load %arg5[%c3, %c0_23] : memref<17x128xf32, #tpu.memory_space<vmem>>, vector<1x128xf32>
    %c0_24 = arith.constant 0 : index
    %c0_25 = arith.constant 0 : index
    %27 = vector.load %arg8[%c0_24, %c0_25] : memref<128x128xf32, #tpu.memory_space<vmem>>, vector<64x128xf32>
    %c16 = arith.constant 16 : index
    %c0_26 = arith.constant 0 : index
    %28 = vector.load %arg9[%c16, %c0_26] : memref<96x128xf32, #tpu.memory_space<vmem>>, vector<64x128xf32>
    tpu.vector_store %arg9[%c16, %c0_26], %27 {strides = array<i32>} : memref<96x128xf32, #tpu.memory_space<vmem>>, vector<64x128xf32>,
    %29 = vector.extract_strided_slice %24 {offsets = [4, 0], sizes = [1, 128], strides = [1, 1]} : vector<9x128xf32> to vector<1x128xf32>
    %30 = vector.broadcast %29 : vector<1x128xf32> to vector<64x128xf32>
    %31 = arith.mulf %27, %30 : vector<64x128xf32>
    %c7 = arith.constant 7 : index
    %c0_27 = arith.constant 0 : index
    %32 = vector.load %arg9[%c7, %c0_27] : memref<96x128xf32, #tpu.memory_space<vmem>>, vector<64x128xf32>
    %33 = vector.extract_strided_slice %24 {offsets = [0, 0], sizes = [1, 128], strides = [1, 1]} : vector<9x128xf32> to vector<1x128xf32>
    %34 = vector.broadcast %33 : vector<1x128xf32> to vector<64x128xf32>
    %35 = arith.mulf %32, %34 : vector<64x128xf32>
    %36 = vector.broadcast %3 : vector<64x1xf32> to vector<64x128xf32>
    %37 = arith.mulf %35, %36 : vector<64x128xf32>
    %38 = arith.addf %31, %37 : vector<64x128xf32>
    %c8 = arith.constant 8 : index
    %c0_28 = arith.constant 0 : index
    %39 = vector.load %arg9[%c8, %c0_28] : memref<96x128xf32, #tpu.memory_space<vmem>>, vector<64x128xf32>
    %40 = vector.extract_strided_slice %24 {offsets = [1, 0], sizes = [1, 128], strides = [1, 1]} : vector<9x128xf32> to vector<1x128xf32>
    %41 = vector.broadcast %40 : vector<1x128xf32> to vector<64x128xf32>
    %42 = arith.mulf %39, %41 : vector<64x128xf32>
    %43 = arith.addf %38, %42 : vector<64x128xf32>
    %c9 = arith.constant 9 : index
    %c0_29 = arith.constant 0 : index
    %44 = vector.load %arg9[%c9, %c0_29] : memref<96x128xf32, #tpu.memory_space<vmem>>, vector<64x128xf32>
    %45 = vector.extract_strided_slice %24 {offsets = [2, 0], sizes = [1, 128], strides = [1, 1]} : vector<9x128xf32> to vector<1x128xf32>
    %46 = vector.broadcast %45 : vector<1x128xf32> to vector<64x128xf32>
    %47 = arith.mulf %44, %46 : vector<64x128xf32>
    %48 = vector.broadcast %4 : vector<64x1xf32> to vector<64x128xf32>
    %49 = arith.mulf %47, %48 : vector<64x128xf32>
    %50 = arith.addf %43, %49 : vector<64x128xf32>
    %c15 = arith.constant 15 : index
    %c0_30 = arith.constant 0 : index
    %51 = vector.load %arg9[%c15, %c0_30] : memref<96x128xf32, #tpu.memory_space<vmem>>, vector<64x128xf32>
    %52 = vector.extract_strided_slice %24 {offsets = [3, 0], sizes = [1, 128], strides = [1, 1]} : vector<9x128xf32> to vector<1x128xf32>
    %53 = vector.broadcast %52 : vector<1x128xf32> to vector<64x128xf32>
    %54 = arith.mulf %51, %53 : vector<64x128xf32>
    %55 = vector.broadcast %3 : vector<64x1xf32> to vector<64x128xf32>
    %56 = arith.mulf %54, %55 : vector<64x128xf32>
    %57 = arith.addf %50, %56 : vector<64x128xf32>
    %c17 = arith.constant 17 : index
    %c0_31 = arith.constant 0 : index
    %58 = vector.load %arg9[%c17, %c0_31] : memref<96x128xf32, #tpu.memory_space<vmem>>, vector<64x128xf32>
    %59 = vector.extract_strided_slice %24 {offsets = [5, 0], sizes = [1, 128], strides = [1, 1]} : vector<9x128xf32> to vector<1x128xf32>
    %60 = vector.broadcast %59 : vector<1x128xf32> to vector<64x128xf32>
    %61 = arith.mulf %58, %60 : vector<64x128xf32>
    %62 = vector.broadcast %4 : vector<64x1xf32> to vector<64x128xf32>
    %63 = arith.mulf %61, %62 : vector<64x128xf32>
    %64 = arith.addf %57, %63 : vector<64x128xf32>
    %c23 = arith.constant 23 : index
    %c0_32 = arith.constant 0 : index
    %65 = vector.load %arg9[%c23, %c0_32] : memref<96x128xf32, #tpu.memory_space<vmem>>, vector<64x128xf32>
    %66 = vector.extract_strided_slice %24 {offsets = [6, 0], sizes = [1, 128], strides = [1, 1]} : vector<9x128xf32> to vector<1x128xf32>
    %67 = vector.broadcast %66 : vector<1x128xf32> to vector<64x128xf32>
    %68 = arith.mulf %65, %67 : vector<64x128xf32>
    %69 = vector.broadcast %3 : vector<64x1xf32> to vector<64x128xf32>
    %70 = arith.mulf %68, %69 : vector<64x128xf32>
    %71 = arith.addf %64, %70 : vector<64x128xf32>
    %c24 = arith.constant 24 : index
    %c0_33 = arith.constant 0 : index
    %72 = vector.load %arg9[%c24, %c0_33] : memref<96x128xf32, #tpu.memory_space<vmem>>, vector<64x128xf32>
    %73 = vector.extract_strided_slice %24 {offsets = [7, 0], sizes = [1, 128], strides = [1, 1]} : vector<9x128xf32> to vector<1x128xf32>
    %74 = vector.broadcast %73 : vector<1x128xf32> to vector<64x128xf32>
    %75 = arith.mulf %72, %74 : vector<64x128xf32>
    %76 = arith.addf %71, %75 : vector<64x128xf32>
    %c25 = arith.constant 25 : index
    %c0_34 = arith.constant 0 : index
    %77 = vector.load %arg9[%c25, %c0_34] : memref<96x128xf32, #tpu.memory_space<vmem>>, vector<64x128xf32>
    %78 = vector.extract_strided_slice %24 {offsets = [8, 0], sizes = [1, 128], strides = [1, 1]} : vector<9x128xf32> to vector<1x128xf32>
    %79 = vector.broadcast %78 : vector<1x128xf32> to vector<64x128xf32>
    %80 = arith.mulf %77, %79 : vector<64x128xf32>
    %81 = vector.broadcast %4 : vector<64x1xf32> to vector<64x128xf32>
    %82 = arith.mulf %80, %81 : vector<64x128xf32>
    %83 = arith.addf %76, %82 : vector<64x128xf32>
    %84 = vector.broadcast %25 : vector<1x128xf32> to vector<64x128xf32>
    %85 = arith.mulf %83, %84 : vector<64x128xf32>
    %86 = vector.broadcast %26 : vector<1x128xf32> to vector<64x128xf32>
    %87 = arith.addf %85, %86 : vector<64x128xf32>
    %88 = arith.negf %87 : vector<64x128xf32>
    %89 = math.exp %88 : vector<64x128xf32>
    %cst_35 = arith.constant 1.000000e+00 : f32
    %90 = vector.broadcast %cst_35 : f32 to vector<64x128xf32>
    %91 = arith.addf %90, %89 : vector<64x128xf32>
    %92 = arith.divf %90, %91 : vector<64x128xf32>
    %93 = arith.mulf %87, %92 : vector<64x128xf32>
    %c0_36 = arith.constant 0 : index
    %c0_37 = arith.constant 0 : index
    %94 = vector.load %arg8[%c0_36, %c0_37] : memref<128x128xf32, #tpu.memory_space<vmem>>, vector<64x128xf32>
    tpu.vector_store %arg8[%c0_36, %c0_37], %93 {strides = array<i32>} : memref<128x128xf32, #tpu.memory_space<vmem>>, vector<64x128xf32>,
    %c64 = arith.constant 64 : index
    %c0_38 = arith.constant 0 : index
    %95 = vector.load %arg8[%c64, %c0_38] : memref<128x128xf32, #tpu.memory_space<vmem>>, vector<64x128xf32>
    %c16_39 = arith.constant 16 : index
    %c0_40 = arith.constant 0 : index
    %96 = vector.load %arg9[%c16_39, %c0_40] : memref<96x128xf32, #tpu.memory_space<vmem>>, vector<64x128xf32>
    tpu.vector_store %arg9[%c16_39, %c0_40], %95 {strides = array<i32>} : memref<96x128xf32, #tpu.memory_space<vmem>>, vector<64x128xf32>,
    %97 = vector.extract_strided_slice %24 {offsets = [4, 0], sizes = [1, 128], strides = [1, 1]} : vector<9x128xf32> to vector<1x128xf32>
    %98 = vector.broadcast %97 : vector<1x128xf32> to vector<64x128xf32>
    %99 = arith.mulf %95, %98 : vector<64x128xf32>
    %c7_41 = arith.constant 7 : index
    %c0_42 = arith.constant 0 : index
    %100 = vector.load %arg9[%c7_41, %c0_42] : memref<96x128xf32, #tpu.memory_space<vmem>>, vector<64x128xf32>
    %101 = vector.extract_strided_slice %24 {offsets = [0, 0], sizes = [1, 128], strides = [1, 1]} : vector<9x128xf32> to vector<1x128xf32>
    %102 = vector.broadcast %101 : vector<1x128xf32> to vector<64x128xf32>
    %103 = arith.mulf %100, %102 : vector<64x128xf32>
    %104 = vector.broadcast %3 : vector<64x1xf32> to vector<64x128xf32>
    %105 = arith.mulf %103, %104 : vector<64x128xf32>
    %106 = arith.addf %99, %105 : vector<64x128xf32>
    %c8_43 = arith.constant 8 : index
    %c0_44 = arith.constant 0 : index
    %107 = vector.load %arg9[%c8_43, %c0_44] : memref<96x128xf32, #tpu.memory_space<vmem>>, vector<64x128xf32>
    %108 = vector.extract_strided_slice %24 {offsets = [1, 0], sizes = [1, 128], strides = [1, 1]} : vector<9x128xf32> to vector<1x128xf32>
    %109 = vector.broadcast %108 : vector<1x128xf32> to vector<64x128xf32>
    %110 = arith.mulf %107, %109 : vector<64x128xf32>
    %111 = arith.addf %106, %110 : vector<64x128xf32>
    %c9_45 = arith.constant 9 : index
    %c0_46 = arith.constant 0 : index
    %112 = vector.load %arg9[%c9_45, %c0_46] : memref<96x128xf32, #tpu.memory_space<vmem>>, vector<64x128xf32>
    %113 = vector.extract_strided_slice %24 {offsets = [2, 0], sizes = [1, 128], strides = [1, 1]} : vector<9x128xf32> to vector<1x128xf32>
    %114 = vector.broadcast %113 : vector<1x128xf32> to vector<64x128xf32>
    %115 = arith.mulf %112, %114 : vector<64x128xf32>
    %116 = vector.broadcast %4 : vector<64x1xf32> to vector<64x128xf32>
    %117 = arith.mulf %115, %116 : vector<64x128xf32>
    %118 = arith.addf %111, %117 : vector<64x128xf32>
    %c15_47 = arith.constant 15 : index
    %c0_48 = arith.constant 0 : index
    %119 = vector.load %arg9[%c15_47, %c0_48] : memref<96x128xf32, #tpu.memory_space<vmem>>, vector<64x128xf32>
    %120 = vector.extract_strided_slice %24 {offsets = [3, 0], sizes = [1, 128], strides = [1, 1]} : vector<9x128xf32> to vector<1x128xf32>
    %121 = vector.broadcast %120 : vector<1x128xf32> to vector<64x128xf32>
    %122 = arith.mulf %119, %121 : vector<64x128xf32>
    %123 = vector.broadcast %3 : vector<64x1xf32> to vector<64x128xf32>
    %124 = arith.mulf %122, %123 : vector<64x128xf32>
    %125 = arith.addf %118, %124 : vector<64x128xf32>
    %c17_49 = arith.constant 17 : index
    %c0_50 = arith.constant 0 : index
    %126 = vector.load %arg9[%c17_49, %c0_50] : memref<96x128xf32, #tpu.memory_space<vmem>>, vector<64x128xf32>
    %127 = vector.extract_strided_slice %24 {offsets = [5, 0], sizes = [1, 128], strides = [1, 1]} : vector<9x128xf32> to vector<1x128xf32>
    %128 = vector.broadcast %127 : vector<1x128xf32> to vector<64x128xf32>
    %129 = arith.mulf %126, %128 : vector<64x128xf32>
    %130 = vector.broadcast %4 : vector<64x1xf32> to vector<64x128xf32>
    %131 = arith.mulf %129, %130 : vector<64x128xf32>
    %132 = arith.addf %125, %131 : vector<64x128xf32>
    %c23_51 = arith.constant 23 : index
    %c0_52 = arith.constant 0 : index
    %133 = vector.load %arg9[%c23_51, %c0_52] : memref<96x128xf32, #tpu.memory_space<vmem>>, vector<64x128xf32>
    %134 = vector.extract_strided_slice %24 {offsets = [6, 0], sizes = [1, 128], strides = [1, 1]} : vector<9x128xf32> to vector<1x128xf32>
    %135 = vector.broadcast %134 : vector<1x128xf32> to vector<64x128xf32>
    %136 = arith.mulf %133, %135 : vector<64x128xf32>
    %137 = vector.broadcast %3 : vector<64x1xf32> to vector<64x128xf32>
    %138 = arith.mulf %136, %137 : vector<64x128xf32>
    %139 = arith.addf %132, %138 : vector<64x128xf32>
    %c24_53 = arith.constant 24 : index
    %c0_54 = arith.constant 0 : index
    %140 = vector.load %arg9[%c24_53, %c0_54] : memref<96x128xf32, #tpu.memory_space<vmem>>, vector<64x128xf32>
    %141 = vector.extract_strided_slice %24 {offsets = [7, 0], sizes = [1, 128], strides = [1, 1]} : vector<9x128xf32> to vector<1x128xf32>
    %142 = vector.broadcast %141 : vector<1x128xf32> to vector<64x128xf32>
    %143 = arith.mulf %140, %142 : vector<64x128xf32>
    %144 = arith.addf %139, %143 : vector<64x128xf32>
    %c25_55 = arith.constant 25 : index
    %c0_56 = arith.constant 0 : index
    %145 = vector.load %arg9[%c25_55, %c0_56] : memref<96x128xf32, #tpu.memory_space<vmem>>, vector<64x128xf32>
    %146 = vector.extract_strided_slice %24 {offsets = [8, 0], sizes = [1, 128], strides = [1, 1]} : vector<9x128xf32> to vector<1x128xf32>
    %147 = vector.broadcast %146 : vector<1x128xf32> to vector<64x128xf32>
    %148 = arith.mulf %145, %147 : vector<64x128xf32>
    %149 = vector.broadcast %4 : vector<64x1xf32> to vector<64x128xf32>
    %150 = arith.mulf %148, %149 : vector<64x128xf32>
    %151 = arith.addf %144, %150 : vector<64x128xf32>
    %152 = vector.broadcast %25 : vector<1x128xf32> to vector<64x128xf32>
    %153 = arith.mulf %151, %152 : vector<64x128xf32>
    %154 = vector.broadcast %26 : vector<1x128xf32> to vector<64x128xf32>
    %155 = arith.addf %153, %154 : vector<64x128xf32>
    %156 = arith.negf %155 : vector<64x128xf32>
    %157 = math.exp %156 : vector<64x128xf32>
    %cst_57 = arith.constant 1.000000e+00 : f32
    %158 = vector.broadcast %cst_57 : f32 to vector<64x128xf32>
    %159 = arith.addf %158, %157 : vector<64x128xf32>
    %160 = arith.divf %158, %159 : vector<64x128xf32>
    %161 = arith.mulf %155, %160 : vector<64x128xf32>
    %c64_58 = arith.constant 64 : index
    %c0_59 = arith.constant 0 : index
    %162 = vector.load %arg8[%c64_58, %c0_59] : memref<128x128xf32, #tpu.memory_space<vmem>>, vector<64x128xf32>
    tpu.vector_store %arg8[%c64_58, %c0_59], %161 {strides = array<i32>} : memref<128x128xf32, #tpu.memory_space<vmem>>, vector<64x128xf32>,
    %c0_60 = arith.constant 0 : index
    %c0_61 = arith.constant 0 : index
    %163 = vector.load %arg8[%c0_60, %c0_61] : memref<128x128xf32, #tpu.memory_space<vmem>>, vector<128x128xf32>
    %164 = arith.truncf %163 : vector<128x128xf32> to vector<128x128xbf16>
    %c0_62 = arith.constant 0 : index
    %c0_63 = arith.constant 0 : index
    %c0_64 = arith.constant 0 : index
    %165 = vector.load %arg6[%c0_62, %c0_63, %c0_64] : memref<7x128x128xbf16, #tpu.memory_space<vmem>>, vector<1x128x128xbf16>
    %166 = vector.shape_cast %165 : vector<1x128x128xbf16> to vector<128x128xbf16>
    %cst_65 = arith.constant dense<0.000000e+00> : vector<128x128xf32>
    %167 = tpu.matmul %164, %166, %cst_65 {dimension_numbers = #tpu.dot_dimension_numbers<[1], [0], [0], [1], [0, 0, 1, 1], [], []>} : vector<128x128xbf16>, vector<128x128xbf16>, vector<128x128xf32> -> vector<128x128xf32>
    %c4 = arith.constant 4 : index
    %c0_66 = arith.constant 0 : index
    %168 = vector.load %arg5[%c4, %c0_66] : memref<17x128xf32, #tpu.memory_space<vmem>>, vector<1x128xf32>
    %169 = vector.broadcast %168 : vector<1x128xf32> to vector<128x128xf32>
    %170 = arith.mulf %167, %169 : vector<128x128xf32>
    %c5 = arith.constant 5 : index
    %c0_67 = arith.constant 0 : index
    %171 = vector.load %arg5[%c5, %c0_67] : memref<17x128xf32, #tpu.memory_space<vmem>>, vector<1x128xf32>
    %172 = vector.broadcast %171 : vector<1x128xf32> to vector<128x128xf32>
    %173 = arith.addf %170, %172 : vector<128x128xf32>
    %174 = arith.truncf %173 : vector<128x128xf32> to vector<128x128xbf16>
    %c1_68 = arith.constant 1 : index
    %c0_69 = arith.constant 0 : index
    %c0_70 = arith.constant 0 : index
    %175 = vector.load %arg6[%c1_68, %c0_69, %c0_70] : memref<7x128x128xbf16, #tpu.memory_space<vmem>>, vector<1x128x128xbf16>
    %176 = vector.shape_cast %175 : vector<1x128x128xbf16> to vector<128x128xbf16>
    %cst_71 = arith.constant dense<0.000000e+00> : vector<128x128xf32>
    %177 = tpu.matmul %174, %176, %cst_71 {dimension_numbers = #tpu.dot_dimension_numbers<[1], [0], [0], [1], [0, 0, 1, 1], [], []>} : vector<128x128xbf16>, vector<128x128xbf16>, vector<128x128xf32> -> vector<128x128xf32>
    %c6 = arith.constant 6 : index
    %c0_72 = arith.constant 0 : index
    %178 = vector.load %arg5[%c6, %c0_72] : memref<17x128xf32, #tpu.memory_space<vmem>>, vector<1x128xf32>
    %179 = vector.broadcast %178 : vector<1x128xf32> to vector<128x128xf32>
    %180 = arith.mulf %177, %179 : vector<128x128xf32>
    %c7_73 = arith.constant 7 : index
    %c0_74 = arith.constant 0 : index
    %181 = vector.load %arg5[%c7_73, %c0_74] : memref<17x128xf32, #tpu.memory_space<vmem>>, vector<1x128xf32>
    %182 = vector.broadcast %181 : vector<1x128xf32> to vector<128x128xf32>
    %183 = arith.addf %180, %182 : vector<128x128xf32>
    %184 = arith.negf %183 : vector<128x128xf32>
    %185 = math.exp %184 : vector<128x128xf32>
    %cst_75 = arith.constant 1.000000e+00 : f32
    %186 = vector.broadcast %cst_75 : f32 to vector<128x128xf32>
    %187 = arith.addf %186, %185 : vector<128x128xf32>
    %188 = arith.divf %186, %187 : vector<128x128xf32>
    %189 = arith.mulf %183, %188 : vector<128x128xf32>
    %c0_76 = arith.constant 0 : index
    %c0_77 = arith.constant 0 : index
    %190 = vector.load %arg8[%c0_76, %c0_77] : memref<128x128xf32, #tpu.memory_space<vmem>>, vector<128x128xf32>
    tpu.vector_store %arg8[%c0_76, %c0_77], %189 {strides = array<i32>} : memref<128x128xf32, #tpu.memory_space<vmem>>, vector<128x128xf32>,
    %c9_78 = arith.constant 9 : index
    %c0_79 = arith.constant 0 : index
    %191 = vector.load %arg4[%c9_78, %c0_79] : memref<18x128xf32, #tpu.memory_space<vmem>>, vector<9x128xf32>
    %c8_80 = arith.constant 8 : index
    %c0_81 = arith.constant 0 : index
    %192 = vector.load %arg5[%c8_80, %c0_81] : memref<17x128xf32, #tpu.memory_space<vmem>>, vector<1x128xf32>
    %c9_82 = arith.constant 9 : index
    %c0_83 = arith.constant 0 : index
    %193 = vector.load %arg5[%c9_82, %c0_83] : memref<17x128xf32, #tpu.memory_space<vmem>>, vector<1x128xf32>
    %c0_84 = arith.constant 0 : index
    %c0_85 = arith.constant 0 : index
    %194 = vector.load %arg8[%c0_84, %c0_85] : memref<128x128xf32, #tpu.memory_space<vmem>>, vector<64x128xf32>
    %c16_86 = arith.constant 16 : index
    %c0_87 = arith.constant 0 : index
    %195 = vector.load %arg9[%c16_86, %c0_87] : memref<96x128xf32, #tpu.memory_space<vmem>>, vector<64x128xf32>
    tpu.vector_store %arg9[%c16_86, %c0_87], %194 {strides = array<i32>} : memref<96x128xf32, #tpu.memory_space<vmem>>, vector<64x128xf32>,
    %196 = vector.extract_strided_slice %191 {offsets = [4, 0], sizes = [1, 128], strides = [1, 1]} : vector<9x128xf32> to vector<1x128xf32>
    %197 = vector.broadcast %196 : vector<1x128xf32> to vector<64x128xf32>
    %198 = arith.mulf %194, %197 : vector<64x128xf32>
    %c7_88 = arith.constant 7 : index
    %c0_89 = arith.constant 0 : index
    %199 = vector.load %arg9[%c7_88, %c0_89] : memref<96x128xf32, #tpu.memory_space<vmem>>, vector<64x128xf32>
    %200 = vector.extract_strided_slice %191 {offsets = [0, 0], sizes = [1, 128], strides = [1, 1]} : vector<9x128xf32> to vector<1x128xf32>
    %201 = vector.broadcast %200 : vector<1x128xf32> to vector<64x128xf32>
    %202 = arith.mulf %199, %201 : vector<64x128xf32>
    %203 = vector.broadcast %3 : vector<64x1xf32> to vector<64x128xf32>
    %204 = arith.mulf %202, %203 : vector<64x128xf32>
    %205 = arith.addf %198, %204 : vector<64x128xf32>
    %c8_90 = arith.constant 8 : index
    %c0_91 = arith.constant 0 : index
    %206 = vector.load %arg9[%c8_90, %c0_91] : memref<96x128xf32, #tpu.memory_space<vmem>>, vector<64x128xf32>
    %207 = vector.extract_strided_slice %191 {offsets = [1, 0], sizes = [1, 128], strides = [1, 1]} : vector<9x128xf32> to vector<1x128xf32>
    %208 = vector.broadcast %207 : vector<1x128xf32> to vector<64x128xf32>
    %209 = arith.mulf %206, %208 : vector<64x128xf32>
    %210 = arith.addf %205, %209 : vector<64x128xf32>
    %c9_92 = arith.constant 9 : index
    %c0_93 = arith.constant 0 : index
    %211 = vector.load %arg9[%c9_92, %c0_93] : memref<96x128xf32, #tpu.memory_space<vmem>>, vector<64x128xf32>
    %212 = vector.extract_strided_slice %191 {offsets = [2, 0], sizes = [1, 128], strides = [1, 1]} : vector<9x128xf32> to vector<1x128xf32>
    %213 = vector.broadcast %212 : vector<1x128xf32> to vector<64x128xf32>
    %214 = arith.mulf %211, %213 : vector<64x128xf32>
    %215 = vector.broadcast %4 : vector<64x1xf32> to vector<64x128xf32>
    %216 = arith.mulf %214, %215 : vector<64x128xf32>
    %217 = arith.addf %210, %216 : vector<64x128xf32>
    %c15_94 = arith.constant 15 : index
    %c0_95 = arith.constant 0 : index
    %218 = vector.load %arg9[%c15_94, %c0_95] : memref<96x128xf32, #tpu.memory_space<vmem>>, vector<64x128xf32>
    %219 = vector.extract_strided_slice %191 {offsets = [3, 0], sizes = [1, 128], strides = [1, 1]} : vector<9x128xf32> to vector<1x128xf32>
    %220 = vector.broadcast %219 : vector<1x128xf32> to vector<64x128xf32>
    %221 = arith.mulf %218, %220 : vector<64x128xf32>
    %222 = vector.broadcast %3 : vector<64x1xf32> to vector<64x128xf32>
    %223 = arith.mulf %221, %222 : vector<64x128xf32>
    %224 = arith.addf %217, %223 : vector<64x128xf32>
    %c17_96 = arith.constant 17 : index
    %c0_97 = arith.constant 0 : index
    %225 = vector.load %arg9[%c17_96, %c0_97] : memref<96x128xf32, #tpu.memory_space<vmem>>, vector<64x128xf32>
    %226 = vector.extract_strided_slice %191 {offsets = [5, 0], sizes = [1, 128], strides = [1, 1]} : vector<9x128xf32> to vector<1x128xf32>
    %227 = vector.broadcast %226 : vector<1x128xf32> to vector<64x128xf32>
    %228 = arith.mulf %225, %227 : vector<64x128xf32>
    %229 = vector.broadcast %4 : vector<64x1xf32> to vector<64x128xf32>
    %230 = arith.mulf %228, %229 : vector<64x128xf32>
    %231 = arith.addf %224, %230 : vector<64x128xf32>
    %c23_98 = arith.constant 23 : index
    %c0_99 = arith.constant 0 : index
    %232 = vector.load %arg9[%c23_98, %c0_99] : memref<96x128xf32, #tpu.memory_space<vmem>>, vector<64x128xf32>
    %233 = vector.extract_strided_slice %191 {offsets = [6, 0], sizes = [1, 128], strides = [1, 1]} : vector<9x128xf32> to vector<1x128xf32>
    %234 = vector.broadcast %233 : vector<1x128xf32> to vector<64x128xf32>
    %235 = arith.mulf %232, %234 : vector<64x128xf32>
    %236 = vector.broadcast %3 : vector<64x1xf32> to vector<64x128xf32>
    %237 = arith.mulf %235, %236 : vector<64x128xf32>
    %238 = arith.addf %231, %237 : vector<64x128xf32>
    %c24_100 = arith.constant 24 : index
    %c0_101 = arith.constant 0 : index
    %239 = vector.load %arg9[%c24_100, %c0_101] : memref<96x128xf32, #tpu.memory_space<vmem>>, vector<64x128xf32>
    %240 = vector.extract_strided_slice %191 {offsets = [7, 0], sizes = [1, 128], strides = [1, 1]} : vector<9x128xf32> to vector<1x128xf32>
    %241 = vector.broadcast %240 : vector<1x128xf32> to vector<64x128xf32>
    %242 = arith.mulf %239, %241 : vector<64x128xf32>
    %243 = arith.addf %238, %242 : vector<64x128xf32>
    %c25_102 = arith.constant 25 : index
    %c0_103 = arith.constant 0 : index
    %244 = vector.load %arg9[%c25_102, %c0_103] : memref<96x128xf32, #tpu.memory_space<vmem>>, vector<64x128xf32>
    %245 = vector.extract_strided_slice %191 {offsets = [8, 0], sizes = [1, 128], strides = [1, 1]} : vector<9x128xf32> to vector<1x128xf32>
    %246 = vector.broadcast %245 : vector<1x128xf32> to vector<64x128xf32>
    %247 = arith.mulf %244, %246 : vector<64x128xf32>
    %248 = vector.broadcast %4 : vector<64x1xf32> to vector<64x128xf32>
    %249 = arith.mulf %247, %248 : vector<64x128xf32>
    %250 = arith.addf %243, %249 : vector<64x128xf32>
    %251 = vector.broadcast %192 : vector<1x128xf32> to vector<64x128xf32>
    %252 = arith.mulf %250, %251 : vector<64x128xf32>
    %253 = vector.broadcast %193 : vector<1x128xf32> to vector<64x128xf32>
    %254 = arith.addf %252, %253 : vector<64x128xf32>
    %255 = arith.negf %254 : vector<64x128xf32>
    %256 = math.exp %255 : vector<64x128xf32>
    %cst_104 = arith.constant 1.000000e+00 : f32
    %257 = vector.broadcast %cst_104 : f32 to vector<64x128xf32>
    %258 = arith.addf %257, %256 : vector<64x128xf32>
    %259 = arith.divf %257, %258 : vector<64x128xf32>
    %260 = arith.mulf %254, %259 : vector<64x128xf32>
    %c0_105 = arith.constant 0 : index
    %c0_106 = arith.constant 0 : index
    %261 = vector.load %arg8[%c0_105, %c0_106] : memref<128x128xf32, #tpu.memory_space<vmem>>, vector<64x128xf32>
    tpu.vector_store %arg8[%c0_105, %c0_106], %260 {strides = array<i32>} : memref<128x128xf32, #tpu.memory_space<vmem>>, vector<64x128xf32>,
    %262 = vector.broadcast %5 : vector<64x1xf32> to vector<64x128xf32>
    %263 = arith.mulf %260, %262 : vector<64x128xf32>
    %cst_107 = arith.constant dense<0.000000e+00> : vector<128xf32>
    %264 = vector.multi_reduction <add>, %263, %cst_107 [0] : vector<64x128xf32> to vector<128xf32>
    %265 = vector.shape_cast %264 : vector<128xf32> to vector<1x128xf32>
    %cst_108 = arith.constant 6.250000e-02 : f32
    %266 = vector.broadcast %cst_108 : f32 to vector<1x128xf32>
    %267 = arith.mulf %265, %266 : vector<1x128xf32>
    %c0_109 = arith.constant 0 : index
    %c0_110 = arith.constant 0 : index
    %268 = vector.load %arg10[%c0_109, %c0_110] : memref<2x128xf32, #tpu.memory_space<vmem>>, vector<1x128xf32>
    tpu.vector_store %arg10[%c0_109, %c0_110], %267 {strides = array<i32>} : memref<2x128xf32, #tpu.memory_space<vmem>>, vector<1x128xf32>,
    %c64_111 = arith.constant 64 : index
    %c0_112 = arith.constant 0 : index
    %269 = vector.load %arg8[%c64_111, %c0_112] : memref<128x128xf32, #tpu.memory_space<vmem>>, vector<64x128xf32>
    %c16_113 = arith.constant 16 : index
    %c0_114 = arith.constant 0 : index
    %270 = vector.load %arg9[%c16_113, %c0_114] : memref<96x128xf32, #tpu.memory_space<vmem>>, vector<64x128xf32>
    tpu.vector_store %arg9[%c16_113, %c0_114], %269 {strides = array<i32>} : memref<96x128xf32, #tpu.memory_space<vmem>>, vector<64x128xf32>,
    %271 = vector.extract_strided_slice %191 {offsets = [4, 0], sizes = [1, 128], strides = [1, 1]} : vector<9x128xf32> to vector<1x128xf32>
    %272 = vector.broadcast %271 : vector<1x128xf32> to vector<64x128xf32>
    %273 = arith.mulf %269, %272 : vector<64x128xf32>
    %c7_115 = arith.constant 7 : index
    %c0_116 = arith.constant 0 : index
    %274 = vector.load %arg9[%c7_115, %c0_116] : memref<96x128xf32, #tpu.memory_space<vmem>>, vector<64x128xf32>
    %275 = vector.extract_strided_slice %191 {offsets = [0, 0], sizes = [1, 128], strides = [1, 1]} : vector<9x128xf32> to vector<1x128xf32>
    %276 = vector.broadcast %275 : vector<1x128xf32> to vector<64x128xf32>
    %277 = arith.mulf %274, %276 : vector<64x128xf32>
    %278 = vector.broadcast %3 : vector<64x1xf32> to vector<64x128xf32>
    %279 = arith.mulf %277, %278 : vector<64x128xf32>
    %280 = arith.addf %273, %279 : vector<64x128xf32>
    %c8_117 = arith.constant 8 : index
    %c0_118 = arith.constant 0 : index
    %281 = vector.load %arg9[%c8_117, %c0_118] : memref<96x128xf32, #tpu.memory_space<vmem>>, vector<64x128xf32>
    %282 = vector.extract_strided_slice %191 {offsets = [1, 0], sizes = [1, 128], strides = [1, 1]} : vector<9x128xf32> to vector<1x128xf32>
    %283 = vector.broadcast %282 : vector<1x128xf32> to vector<64x128xf32>
    %284 = arith.mulf %281, %283 : vector<64x128xf32>
    %285 = arith.addf %280, %284 : vector<64x128xf32>
    %c9_119 = arith.constant 9 : index
    %c0_120 = arith.constant 0 : index
    %286 = vector.load %arg9[%c9_119, %c0_120] : memref<96x128xf32, #tpu.memory_space<vmem>>, vector<64x128xf32>
    %287 = vector.extract_strided_slice %191 {offsets = [2, 0], sizes = [1, 128], strides = [1, 1]} : vector<9x128xf32> to vector<1x128xf32>
    %288 = vector.broadcast %287 : vector<1x128xf32> to vector<64x128xf32>
    %289 = arith.mulf %286, %288 : vector<64x128xf32>
    %290 = vector.broadcast %4 : vector<64x1xf32> to vector<64x128xf32>
    %291 = arith.mulf %289, %290 : vector<64x128xf32>
    %292 = arith.addf %285, %291 : vector<64x128xf32>
    %c15_121 = arith.constant 15 : index
    %c0_122 = arith.constant 0 : index
    %293 = vector.load %arg9[%c15_121, %c0_122] : memref<96x128xf32, #tpu.memory_space<vmem>>, vector<64x128xf32>
    %294 = vector.extract_strided_slice %191 {offsets = [3, 0], sizes = [1, 128], strides = [1, 1]} : vector<9x128xf32> to vector<1x128xf32>
    %295 = vector.broadcast %294 : vector<1x128xf32> to vector<64x128xf32>
    %296 = arith.mulf %293, %295 : vector<64x128xf32>
    %297 = vector.broadcast %3 : vector<64x1xf32> to vector<64x128xf32>
    %298 = arith.mulf %296, %297 : vector<64x128xf32>
    %299 = arith.addf %292, %298 : vector<64x128xf32>
    %c17_123 = arith.constant 17 : index
    %c0_124 = arith.constant 0 : index
    %300 = vector.load %arg9[%c17_123, %c0_124] : memref<96x128xf32, #tpu.memory_space<vmem>>, vector<64x128xf32>
    %301 = vector.extract_strided_slice %191 {offsets = [5, 0], sizes = [1, 128], strides = [1, 1]} : vector<9x128xf32> to vector<1x128xf32>
    %302 = vector.broadcast %301 : vector<1x128xf32> to vector<64x128xf32>
    %303 = arith.mulf %300, %302 : vector<64x128xf32>
    %304 = vector.broadcast %4 : vector<64x1xf32> to vector<64x128xf32>
    %305 = arith.mulf %303, %304 : vector<64x128xf32>
    %306 = arith.addf %299, %305 : vector<64x128xf32>
    %c23_125 = arith.constant 23 : index
    %c0_126 = arith.constant 0 : index
    %307 = vector.load %arg9[%c23_125, %c0_126] : memref<96x128xf32, #tpu.memory_space<vmem>>, vector<64x128xf32>
    %308 = vector.extract_strided_slice %191 {offsets = [6, 0], sizes = [1, 128], strides = [1, 1]} : vector<9x128xf32> to vector<1x128xf32>
    %309 = vector.broadcast %308 : vector<1x128xf32> to vector<64x128xf32>
    %310 = arith.mulf %307, %309 : vector<64x128xf32>
    %311 = vector.broadcast %3 : vector<64x1xf32> to vector<64x128xf32>
    %312 = arith.mulf %310, %311 : vector<64x128xf32>
    %313 = arith.addf %306, %312 : vector<64x128xf32>
    %c24_127 = arith.constant 24 : index
    %c0_128 = arith.constant 0 : index
    %314 = vector.load %arg9[%c24_127, %c0_128] : memref<96x128xf32, #tpu.memory_space<vmem>>, vector<64x128xf32>
    %315 = vector.extract_strided_slice %191 {offsets = [7, 0], sizes = [1, 128], strides = [1, 1]} : vector<9x128xf32> to vector<1x128xf32>
    %316 = vector.broadcast %315 : vector<1x128xf32> to vector<64x128xf32>
    %317 = arith.mulf %314, %316 : vector<64x128xf32>
    %318 = arith.addf %313, %317 : vector<64x128xf32>
    %c25_129 = arith.constant 25 : index
    %c0_130 = arith.constant 0 : index
    %319 = vector.load %arg9[%c25_129, %c0_130] : memref<96x128xf32, #tpu.memory_space<vmem>>, vector<64x128xf32>
    %320 = vector.extract_strided_slice %191 {offsets = [8, 0], sizes = [1, 128], strides = [1, 1]} : vector<9x128xf32> to vector<1x128xf32>
    %321 = vector.broadcast %320 : vector<1x128xf32> to vector<64x128xf32>
    %322 = arith.mulf %319, %321 : vector<64x128xf32>
    %323 = vector.broadcast %4 : vector<64x1xf32> to vector<64x128xf32>
    %324 = arith.mulf %322, %323 : vector<64x128xf32>
    %325 = arith.addf %318, %324 : vector<64x128xf32>
    %326 = vector.broadcast %192 : vector<1x128xf32> to vector<64x128xf32>
    %327 = arith.mulf %325, %326 : vector<64x128xf32>
    %328 = vector.broadcast %193 : vector<1x128xf32> to vector<64x128xf32>
    %329 = arith.addf %327, %328 : vector<64x128xf32>
    %330 = arith.negf %329 : vector<64x128xf32>
    %331 = math.exp %330 : vector<64x128xf32>
    %cst_131 = arith.constant 1.000000e+00 : f32
    %332 = vector.broadcast %cst_131 : f32 to vector<64x128xf32>
    %333 = arith.addf %332, %331 : vector<64x128xf32>
    %334 = arith.divf %332, %333 : vector<64x128xf32>
    %335 = arith.mulf %329, %334 : vector<64x128xf32>
    %c64_132 = arith.constant 64 : index
    %c0_133 = arith.constant 0 : index
    %336 = vector.load %arg8[%c64_132, %c0_133] : memref<128x128xf32, #tpu.memory_space<vmem>>, vector<64x128xf32>
    tpu.vector_store %arg8[%c64_132, %c0_133], %335 {strides = array<i32>} : memref<128x128xf32, #tpu.memory_space<vmem>>, vector<64x128xf32>,
    %337 = vector.broadcast %5 : vector<64x1xf32> to vector<64x128xf32>
    %338 = arith.mulf %335, %337 : vector<64x128xf32>
    %cst_134 = arith.constant dense<0.000000e+00> : vector<128xf32>
    %339 = vector.multi_reduction <add>, %338, %cst_134 [0] : vector<64x128xf32> to vector<128xf32>
    %340 = vector.shape_cast %339 : vector<128xf32> to vector<1x128xf32>
    %cst_135 = arith.constant 6.250000e-02 : f32
    %341 = vector.broadcast %cst_135 : f32 to vector<1x128xf32>
    %342 = arith.mulf %340, %341 : vector<1x128xf32>
    %c1_136 = arith.constant 1 : index
    %c0_137 = arith.constant 0 : index
    %343 = vector.load %arg10[%c1_136, %c0_137] : memref<2x128xf32, #tpu.memory_space<vmem>>, vector<1x128xf32>
    tpu.vector_store %arg10[%c1_136, %c0_137], %342 {strides = array<i32>} : memref<2x128xf32, #tpu.memory_space<vmem>>, vector<1x128xf32>,
    %c0_138 = arith.constant 0 : index
    %c0_139 = arith.constant 0 : index
    %344 = vector.load %arg10[%c0_138, %c0_139] : memref<2x128xf32, #tpu.memory_space<vmem>>, vector<2x128xf32>
    %345 = arith.truncf %344 : vector<2x128xf32> to vector<2x128xbf16>
    %c2_140 = arith.constant 2 : index
    %c0_141 = arith.constant 0 : index
    %c0_142 = arith.constant 0 : index
    %346 = vector.load %arg6[%c2_140, %c0_141, %c0_142] : memref<7x128x128xbf16, #tpu.memory_space<vmem>>, vector<1x128x128xbf16>
    %347 = vector.shape_cast %346 : vector<1x128x128xbf16> to vector<128x128xbf16>
    %cst_143 = arith.constant dense<0.000000e+00> : vector<2x128xf32>
    %348 = tpu.matmul %345, %347, %cst_143 {dimension_numbers = #tpu.dot_dimension_numbers<[1], [0], [0], [1], [0, 0, 1, 1], [], []>} : vector<2x128xbf16>, vector<128x128xbf16>, vector<2x128xf32> -> vector<2x128xf32>
    %c10 = arith.constant 10 : index
    %c0_144 = arith.constant 0 : index
    %349 = vector.load %arg5[%c10, %c0_144] : memref<17x128xf32, #tpu.memory_space<vmem>>, vector<1x128xf32>
    %350 = vector.broadcast %349 : vector<1x128xf32> to vector<2x128xf32>
    %351 = arith.addf %348, %350 : vector<2x128xf32>
    %352 = arith.negf %351 : vector<2x128xf32>
    %353 = math.exp %352 : vector<2x128xf32>
    %cst_145 = arith.constant 1.000000e+00 : f32
    %354 = vector.broadcast %cst_145 : f32 to vector<2x128xf32>
    %355 = arith.addf %354, %353 : vector<2x128xf32>
    %356 = arith.divf %354, %355 : vector<2x128xf32>
    %357 = arith.mulf %351, %356 : vector<2x128xf32>
    %358 = arith.truncf %357 : vector<2x128xf32> to vector<2x128xbf16>
    %c3_146 = arith.constant 3 : index
    %c0_147 = arith.constant 0 : index
    %c0_148 = arith.constant 0 : index
    %359 = vector.load %arg6[%c3_146, %c0_147, %c0_148] : memref<7x128x128xbf16, #tpu.memory_space<vmem>>, vector<1x128x128xbf16>
    %360 = vector.shape_cast %359 : vector<1x128x128xbf16> to vector<128x128xbf16>
    %cst_149 = arith.constant dense<0.000000e+00> : vector<2x128xf32>
    %361 = tpu.matmul %358, %360, %cst_149 {dimension_numbers = #tpu.dot_dimension_numbers<[1], [0], [0], [1], [0, 0, 1, 1], [], []>} : vector<2x128xbf16>, vector<128x128xbf16>, vector<2x128xf32> -> vector<2x128xf32>
    %c11 = arith.constant 11 : index
    %c0_150 = arith.constant 0 : index
    %362 = vector.load %arg5[%c11, %c0_150] : memref<17x128xf32, #tpu.memory_space<vmem>>, vector<1x128xf32>
    %363 = vector.broadcast %362 : vector<1x128xf32> to vector<2x128xf32>
    %364 = arith.addf %361, %363 : vector<2x128xf32>
    %365 = arith.negf %364 : vector<2x128xf32>
    %366 = math.exp %365 : vector<2x128xf32>
    %cst_151 = arith.constant 1.000000e+00 : f32
    %367 = vector.broadcast %cst_151 : f32 to vector<2x128xf32>
    %368 = arith.addf %367, %366 : vector<2x128xf32>
    %369 = arith.divf %367, %368 : vector<2x128xf32>
    %c0_152 = arith.constant 0 : index
    %c0_153 = arith.constant 0 : index
    %370 = vector.load %arg8[%c0_152, %c0_153] : memref<128x128xf32, #tpu.memory_space<vmem>>, vector<64x128xf32>
    %371 = vector.extract_strided_slice %369 {offsets = [0, 0], sizes = [1, 128], strides = [1, 1]} : vector<2x128xf32> to vector<1x128xf32>
    %372 = vector.broadcast %371 : vector<1x128xf32> to vector<64x128xf32>
    %373 = arith.mulf %370, %372 : vector<64x128xf32>
    %c0_154 = arith.constant 0 : index
    %c0_155 = arith.constant 0 : index
    %374 = vector.load %arg8[%c0_154, %c0_155] : memref<128x128xf32, #tpu.memory_space<vmem>>, vector<64x128xf32>
    tpu.vector_store %arg8[%c0_154, %c0_155], %373 {strides = array<i32>} : memref<128x128xf32, #tpu.memory_space<vmem>>, vector<64x128xf32>,
    %c64_156 = arith.constant 64 : index
    %c0_157 = arith.constant 0 : index
    %375 = vector.load %arg8[%c64_156, %c0_157] : memref<128x128xf32, #tpu.memory_space<vmem>>, vector<64x128xf32>
    %376 = vector.extract_strided_slice %369 {offsets = [1, 0], sizes = [1, 128], strides = [1, 1]} : vector<2x128xf32> to vector<1x128xf32>
    %377 = vector.broadcast %376 : vector<1x128xf32> to vector<64x128xf32>
    %378 = arith.mulf %375, %377 : vector<64x128xf32>
    %c64_158 = arith.constant 64 : index
    %c0_159 = arith.constant 0 : index
    %379 = vector.load %arg8[%c64_158, %c0_159] : memref<128x128xf32, #tpu.memory_space<vmem>>, vector<64x128xf32>
    tpu.vector_store %arg8[%c64_158, %c0_159], %378 {strides = array<i32>} : memref<128x128xf32, #tpu.memory_space<vmem>>, vector<64x128xf32>,
    %c0_160 = arith.constant 0 : index
    %c0_161 = arith.constant 0 : index
    %380 = vector.load %arg8[%c0_160, %c0_161] : memref<128x128xf32, #tpu.memory_space<vmem>>, vector<128x128xf32>
    %381 = arith.truncf %380 : vector<128x128xf32> to vector<128x128xbf16>
    %c4_162 = arith.constant 4 : index
    %c0_163 = arith.constant 0 : index
    %c0_164 = arith.constant 0 : index
    %382 = vector.load %arg6[%c4_162, %c0_163, %c0_164] : memref<7x128x128xbf16, #tpu.memory_space<vmem>>, vector<1x128x128xbf16>
    %383 = vector.shape_cast %382 : vector<1x128x128xbf16> to vector<128x128xbf16>
    %cst_165 = arith.constant dense<0.000000e+00> : vector<128x128xf32>
    %384 = tpu.matmul %381, %383, %cst_165 {dimension_numbers = #tpu.dot_dimension_numbers<[1], [0], [0], [1], [0, 0, 1, 1], [], []>} : vector<128x128xbf16>, vector<128x128xbf16>, vector<128x128xf32> -> vector<128x128xf32>
    %c12 = arith.constant 12 : index
    %c0_166 = arith.constant 0 : index
    %385 = vector.load %arg5[%c12, %c0_166] : memref<17x128xf32, #tpu.memory_space<vmem>>, vector<1x128xf32>
    %386 = vector.broadcast %385 : vector<1x128xf32> to vector<128x128xf32>
    %387 = arith.mulf %384, %386 : vector<128x128xf32>
    %c13 = arith.constant 13 : index
    %c0_167 = arith.constant 0 : index
    %388 = vector.load %arg5[%c13, %c0_167] : memref<17x128xf32, #tpu.memory_space<vmem>>, vector<1x128xf32>
    %389 = vector.broadcast %388 : vector<1x128xf32> to vector<128x128xf32>
    %390 = arith.addf %387, %389 : vector<128x128xf32>
    %391 = arith.truncf %390 : vector<128x128xf32> to vector<128x128xbf16>
    %c5_168 = arith.constant 5 : index
    %c0_169 = arith.constant 0 : index
    %c0_170 = arith.constant 0 : index
    %392 = vector.load %arg6[%c5_168, %c0_169, %c0_170] : memref<7x128x128xbf16, #tpu.memory_space<vmem>>, vector<1x128x128xbf16>
    %393 = vector.shape_cast %392 : vector<1x128x128xbf16> to vector<128x128xbf16>
    %cst_171 = arith.constant dense<0.000000e+00> : vector<128x128xf32>
    %394 = tpu.matmul %391, %393, %cst_171 {dimension_numbers = #tpu.dot_dimension_numbers<[1], [0], [0], [1], [0, 0, 1, 1], [], []>} : vector<128x128xbf16>, vector<128x128xbf16>, vector<128x128xf32> -> vector<128x128xf32>
    %c14 = arith.constant 14 : index
    %c0_172 = arith.constant 0 : index
    %395 = vector.load %arg5[%c14, %c0_172] : memref<17x128xf32, #tpu.memory_space<vmem>>, vector<1x128xf32>
    %396 = vector.broadcast %395 : vector<1x128xf32> to vector<128x128xf32>
    %397 = arith.mulf %394, %396 : vector<128x128xf32>
    %c15_173 = arith.constant 15 : index
    %c0_174 = arith.constant 0 : index
    %398 = vector.load %arg5[%c15_173, %c0_174] : memref<17x128xf32, #tpu.memory_space<vmem>>, vector<1x128xf32>
    %399 = vector.broadcast %398 : vector<1x128xf32> to vector<128x128xf32>
    %400 = arith.addf %397, %399 : vector<128x128xf32>
    %401 = arith.negf %400 : vector<128x128xf32>
    %402 = math.exp %401 : vector<128x128xf32>
    %cst_175 = arith.constant 1.000000e+00 : f32
    %403 = vector.broadcast %cst_175 : f32 to vector<128x128xf32>
    %404 = arith.addf %403, %402 : vector<128x128xf32>
    %405 = arith.divf %403, %404 : vector<128x128xf32>
    %406 = arith.mulf %400, %405 : vector<128x128xf32>
    %407 = vector.extract_strided_slice %406 {offsets = [0, 0], sizes = [64, 128], strides = [1, 1]} : vector<128x128xf32> to vector<64x128xf32>
    %408 = vector.broadcast %5 : vector<64x1xf32> to vector<64x128xf32>
    %409 = arith.mulf %407, %408 : vector<64x128xf32>
    %cst_176 = arith.constant dense<0.000000e+00> : vector<128xf32>
    %410 = vector.multi_reduction <add>, %409, %cst_176 [0] : vector<64x128xf32> to vector<128xf32>
    %411 = vector.shape_cast %410 : vector<128xf32> to vector<1x128xf32>
    %cst_177 = arith.constant 6.250000e-02 : f32
    %412 = vector.broadcast %cst_177 : f32 to vector<1x128xf32>
    %413 = arith.mulf %411, %412 : vector<1x128xf32>
    %c0_178 = arith.constant 0 : index
    %c0_179 = arith.constant 0 : index
    %414 = vector.load %arg10[%c0_178, %c0_179] : memref<2x128xf32, #tpu.memory_space<vmem>>, vector<1x128xf32>
    tpu.vector_store %arg10[%c0_178, %c0_179], %413 {strides = array<i32>} : memref<2x128xf32, #tpu.memory_space<vmem>>, vector<1x128xf32>,
    %415 = vector.extract_strided_slice %406 {offsets = [64, 0], sizes = [64, 128], strides = [1, 1]} : vector<128x128xf32> to vector<64x128xf32>
    %416 = vector.broadcast %5 : vector<64x1xf32> to vector<64x128xf32>
    %417 = arith.mulf %415, %416 : vector<64x128xf32>
    %cst_180 = arith.constant dense<0.000000e+00> : vector<128xf32>
    %418 = vector.multi_reduction <add>, %417, %cst_180 [0] : vector<64x128xf32> to vector<128xf32>
    %419 = vector.shape_cast %418 : vector<128xf32> to vector<1x128xf32>
    %cst_181 = arith.constant 6.250000e-02 : f32
    %420 = vector.broadcast %cst_181 : f32 to vector<1x128xf32>
    %421 = arith.mulf %419, %420 : vector<1x128xf32>
    %c1_182 = arith.constant 1 : index
    %c0_183 = arith.constant 0 : index
    %422 = vector.load %arg10[%c1_182, %c0_183] : memref<2x128xf32, #tpu.memory_space<vmem>>, vector<1x128xf32>
    tpu.vector_store %arg10[%c1_182, %c0_183], %421 {strides = array<i32>} : memref<2x128xf32, #tpu.memory_space<vmem>>, vector<1x128xf32>,
    %c0_184 = arith.constant 0 : index
    %c0_185 = arith.constant 0 : index
    %423 = vector.load %arg10[%c0_184, %c0_185] : memref<2x128xf32, #tpu.memory_space<vmem>>, vector<2x128xf32>
    %424 = arith.truncf %423 : vector<2x128xf32> to vector<2x128xbf16>
    %c6_186 = arith.constant 6 : index
    %c0_187 = arith.constant 0 : index
    %c0_188 = arith.constant 0 : index
    %425 = vector.load %arg6[%c6_186, %c0_187, %c0_188] : memref<7x128x128xbf16, #tpu.memory_space<vmem>>, vector<1x128x128xbf16>
    %426 = vector.shape_cast %425 : vector<1x128x128xbf16> to vector<128x128xbf16>
    %cst_189 = arith.constant dense<0.000000e+00> : vector<2x128xf32>
    %427 = tpu.matmul %424, %426, %cst_189 {dimension_numbers = #tpu.dot_dimension_numbers<[1], [0], [0], [1], [0, 0, 1, 1], [], []>} : vector<2x128xbf16>, vector<128x128xbf16>, vector<2x128xf32> -> vector<2x128xf32>
    %c16_190 = arith.constant 16 : index
    %c0_191 = arith.constant 0 : index
    %428 = vector.load %arg5[%c16_190, %c0_191] : memref<17x128xf32, #tpu.memory_space<vmem>>, vector<1x128xf32>
    %429 = vector.broadcast %428 : vector<1x128xf32> to vector<2x128xf32>
    %430 = arith.addf %427, %429 : vector<2x128xf32>
    %c0_192 = arith.constant 0 : index
    %c0_193 = arith.constant 0 : index
    %c0_194 = arith.constant 0 : index
    %431 = vector.load %arg7[%c0_192, %c0_193, %c0_194] : memref<1x2x128xf32, #tpu.memory_space<vmem>>, vector<1x2x128xf32>
    %432 = vector.shape_cast %431 : vector<1x2x128xf32> to vector<2x128xf32>
    %433 = vector.shape_cast %430 : vector<2x128xf32> to vector<1x2x128xf32>
    tpu.vector_store %arg7[%c0_192, %c0_193, %c0_194], %433 {strides = array<i32>} : memref<1x2x128xf32, #tpu.memory_space<vmem>>, vector<1x2x128xf32>,
    return
  }
  func.func @transform_0(%arg0: i32) -> (i32, i32, i32) {
    %c0_i32 = arith.constant 0 : i32
    %c0_i32_0 = arith.constant 0 : i32
    %c0_i32_1 = arith.constant 0 : i32
    return %arg0, %c0_i32, %c0_i32_0 : i32, i32, i32
  }
  func.func @transform_1(%arg0: i32) -> (i32, i32) {
    %c0_i32 = arith.constant 0 : i32
    %c0_i32_0 = arith.constant 0 : i32
    %c0_i32_1 = arith.constant 0 : i32
    return %c0_i32, %c0_i32_0 : i32, i32
  }
  func.func @transform_2(%arg0: i32) -> (i32, i32) {
    %c0_i32 = arith.constant 0 : i32
    %c0_i32_0 = arith.constant 0 : i32
    %c0_i32_1 = arith.constant 0 : i32
    return %c0_i32, %c0_i32_0 : i32, i32
  }
  func.func @transform_3(%arg0: i32) -> (i32, i32) {
    %c0_i32 = arith.constant 0 : i32
    %c0_i32_0 = arith.constant 0 : i32
    %c0_i32_1 = arith.constant 0 : i32
    return %c0_i32, %c0_i32_0 : i32, i32
  }
  func.func @transform_4(%arg0: i32) -> (i32, i32) {
    %c0_i32 = arith.constant 0 : i32
    %c0_i32_0 = arith.constant 0 : i32
    %c0_i32_1 = arith.constant 0 : i32
    return %c0_i32, %c0_i32_0 : i32, i32
  }
  func.func @transform_5(%arg0: i32) -> (i32, i32, i32) {
    %c0_i32 = arith.constant 0 : i32
    %c0_i32_0 = arith.constant 0 : i32
    %c0_i32_1 = arith.constant 0 : i32
    %c0_i32_2 = arith.constant 0 : i32
    return %c0_i32, %c0_i32_0, %c0_i32_1 : i32, i32, i32
  }
  func.func @transform_6(%arg0: i32) -> (i32, i32, i32) {
    %c0_i32 = arith.constant 0 : i32
    %c0_i32_0 = arith.constant 0 : i32
    %c0_i32_1 = arith.constant 0 : i32
    return %arg0, %c0_i32, %c0_i32_0 : i32, i32, i32
  }
}

</mosaic_0001>

<bundles_post_ra>
// kernel: tpu_custom_call.1
= control target key start
LH: loop header
LB: loop body
LE: loop exit
PB: predicated region body
PF: predicated region fallthrough
CT: control target
= control target key end

     0   :  { %11 = vsyncpa [#allocation6], 0  ;;  %s8273_s0 = inlined_call_operand.hbm [shape: f32[1,128,128], index: 0, kind: input, shape index: {}]   ;;  %s8274_s1 = inlined_call_operand.vmem [shape: f32[64,8], index: 1, kind: input, shape index: {}]   ;;  %s8275_s2 = inlined_call_operand.vmem [shape: bf16[128,128], index: 2, kind: input, shape index: {}]   ;;  %s8276_s3 = inlined_call_operand.hbm [shape: f32[18,128], index: 3, kind: input, shape index: {}]   ;;  %s8277_s4 = inlined_call_operand.hbm [shape: f32[17,128], index: 4, kind: input, shape index: {}]   ;;  %s8278_s5 = inlined_call_operand.hbm [shape: bf16[7,128,128], index: 5, kind: input, shape index: {}]   ;;  %s8279_s6 = inlined_call_operand.hbm [shape: f32[1,2,128], index: 6, kind: output, shape index: {}]  }
   0x1   :  { %12 = vsyncpa [#allocation9], 0 }
   0x2   :  { %13 = vsyncpa [#allocation12], 0 }
   0x3   :  { %14 = vsyncpa [#allocation7], 0  ;;  %s36_s23 = sshll.u32 %s8276_s3, 4  ;;  %s5124_s24 = smov [#allocation8]   ;;  %s37_s23 = int_to_ptr.hbm [resolvable:$true] %s36_s23 }
   0x4   :  { %s38_s25 = sshll.u32 %s5124_s24, 4  ;;  %s19_s28 = sshll.u32 %s8273_s0, 4  ;;  %s39_s25 = int_to_ptr.vmem [resolvable:$true] %s38_s25  ;;  %s20_s28 = int_to_ptr.hbm [resolvable:$true] %s19_s28 }
   0x5   :  { %s5125_s29 = smov 128   ;;  %s5126_s30 = smov 8  }
   0x6   :  { %44 = dma.hbm_to_vmem [thread:$0]  %s37_s23, 384, %s39_s25, [#allocation9], %s5125_s29, %s5125_s29, %s5126_s30  }
   0x7   :  { %s5127_s7 = smov [#allocation5]   ;;  %s49_s11 = sshll.u32 %s8277_s4, 4  ;;  %s50_s11 = int_to_ptr.hbm [resolvable:$true] %s49_s11 }
   0x8   :  { %s21_s8 = sshll.u32 %s5127_s7, 4  ;;  %s62_s13 = sshll.u32 %s8278_s5, 4  ;;  %s22_s8 = int_to_ptr.vmem [resolvable:$true] %s21_s8  ;;  %s63_s13 = int_to_ptr.hbm [resolvable:$true] %s62_s13 }
   0x9   :  { %27 = dma.hbm_to_vmem [thread:$0]  %s20_s28, 2048, %s22_s8, [#allocation6], %s5125_s29, %s5125_s29, %s5126_s30  }
   0xa   :  { %s5128_s14 = smov [#allocation10]   ;;  %s5129_s0 = smov [#allocation11]  }
   0xb   :  { %s51_s15 = sshll.u32 %s5128_s14, 4  ;;  %s64_s16 = sshll.u32 %s5129_s0, 4  ;;  %s52_s15 = int_to_ptr.vmem [resolvable:$true] %s51_s15  ;;  %s65_s16 = int_to_ptr.vmem [resolvable:$true] %s64_s16 }
   0xc   :  { %57 = dma.hbm_to_vmem [thread:$0]  %s50_s11, 384, %s52_s15, [#allocation9], %s5125_s29, %s5125_s29, %s5126_s30  }
   0xd   :  { %s5130_s17 = smov 64   ;;  %s5131_s18 = smov 4  }
   0xe   :  { %70 = dma.hbm_to_vmem [thread:$0]  %s63_s13, 7168, %s65_s16, [#allocation12], %s5130_s17, %s5130_s17, %s5131_s18  }
   0xf   :  { %5116 = dma.done.wait [#allocation6], 2048  }
  0x10   :  { %5117 = vsyncadd [#allocation6], 4294965248 }
  0x11   :  { %5118 = dma.done.wait [#allocation9], 768  }
  0x12   :  { %5119 = vsyncadd [#allocation9], 4294966528 }
  0x13   :  { %5120 = dma.done.wait [#allocation12], 7168  }
  0x14   :  { %5121 = vsyncadd [#allocation12], 4294960128  ;;  %v4528_v0 = vld [vmem:[%s8275_s2 + $0x38] sm:$0xff]  ;;  %v4527_v1 = vld [vmem:[%s8275_s2 + $0x30] sm:$0xff]  ;;  %v5132_v7 = vmov 1   ;;  %v5133_v20 = vmov 0  }
  0x15   :  { %187 = vmatpush.bf16.msra.mxu0 %v4528_v0  ;;  %4585 = vmatpush.bf16.msra.mxu1 %v4528_v0  ;;  %v4526_v2 = vld [vmem:[%s8275_s2 + $0x28] sm:$0xff]  ;;  %v4525_v3 = vld [vmem:[%s8275_s2 + $0x20] sm:$0xff]  ;;  %v4524_v4 = vld [vmem:[%s8275_s2 + $0x18] sm:$0xff]  ;;  %s4171_s13 = sshll.u32 %s8279_s6, 4  ;;  %s4172_s13 = int_to_ptr.hbm [resolvable:$true] %s4171_s13 }
  0x16   :  { %4586 = vmatpush.bf16.msra.mxu2 %v4528_v0  ;;  %v4523_v5 = vld [vmem:[%s8275_s2 + $0x10] sm:$0xff]  ;;  %v91_v6 = vld [vmem:[%s8274_s1] sm:$0xff]  ;;  %4615 = vset.pattern.permute.xlu1 %v5132_v7  ;;  %v4522_v8 = vld [vmem:[%s8275_s2 + $0x8] sm:$0xff] }
  0x17   :  { %753 = vperm.xlu1 %4615, %v91_v6   ;;  %v4521_v9 = vld [vmem:[%s8275_s2] sm:$0xff]  ;;  %v100_v11 = vld [vmem:[#allocation5 + $0x8] sm:$0xff]  ;;  %4614 = vset.pattern.permute.xlu0 %v5133_v20  ;;  %v94_v21 = vld [vmem:[%s8274_s1 + $0x18] sm:$0xff] }
  0x18   :  { %v99_v10 = vld [vmem:[#allocation5] sm:$0xff]  ;;  %v104_v13 = vld [vmem:[#allocation5 + $0x28] sm:$0xff]  ;;  %656 = vperm.xlu0 %4614, %v91_v6   ;;  %4616 = vset.pattern.permute.xlu2 %v5133_v20  ;;  %v101_v22 = vld [vmem:[#allocation5 + $0x10] sm:$0xff] }
  0x19   :  { %188 = vmatpush.bf16.msra.mxu0 %v4527_v1  ;;  %4587 = vmatpush.bf16.msra.mxu1 %v4527_v1  ;;  %v103_v12 = vld [vmem:[#allocation5 + $0x20] sm:$0xff]  ;;  %v108_v15 = vld [vmem:[#allocation5 + $0x48] sm:$0xff]  ;;  %v115_v16 = vpack.c.bf16 %v100_v11, %v99_v10  ;;  %v102_v23 = vld [vmem:[#allocation5 + $0x18] sm:$0xff] }
  0x1a   :  { %4588 = vmatpush.bf16.msra.mxu2 %v4527_v1  ;;  %v107_v14 = vld [vmem:[#allocation5 + $0x40] sm:$0xff]  ;;  %v117_v17 = vpack.c.bf16 %v104_v13, %v103_v12  ;;  %v105_v24 = vld [vmem:[#allocation5 + $0x30] sm:$0xff]  ;;  %v106_v25 = vld [vmem:[#allocation5 + $0x38] sm:$0xff]  ;;  %v116_v28 = vpack.c.bf16 %v102_v23, %v101_v22  ;;  %v5134_v13 = vmov 0.0  }
  0x1b   :  { %v119_v18 = vpack.c.bf16 %v108_v15, %v107_v14  ;;  %v92_v19 = vld [vmem:[%s8274_s1 + $0x8] sm:$0xff]  ;;  %v109_v26 = vld [vmem:[#allocation5 + $0x50] sm:$0xff]  ;;  %v110_v27 = vld [vmem:[#allocation5 + $0x58] sm:$0xff]  ;;  %v118_v29 = vpack.c.bf16 %v106_v25, %v105_v24  ;;  %87 = vst [vmem:[#allocation3] sm:$0xff] %v5134_v13 }
  0x1c   :  { %v120_v30 = vpack.c.bf16 %v110_v27, %v109_v26  ;;  %v96_v31 = vld [vmem:[%s8274_s1 + $0x28] sm:$0xff]  ;;  %v93_v32 = vld [vmem:[%s8274_s1 + $0x10] sm:$0xff]  ;;  %v95_v37 = vld [vmem:[%s8274_s1 + $0x20] sm:$0xff]  ;;  %88 = vst [vmem:[#allocation3 + $0x8] sm:$0xff] %v5134_v13 }
  0x1d   :  { %189 = vmatpush.bf16.msra.mxu0 %v4526_v2  ;;  %4589 = vmatpush.bf16.msra.mxu1 %v4526_v2  ;;  %v97_v33 = vld [vmem:[%s8274_s1 + $0x30] sm:$0xff]  ;;  %v111_v34 = vld [vmem:[#allocation5 + $0x60] sm:$0xff]  ;;  %v98_v38 = vld [vmem:[%s8274_s1 + $0x38] sm:$0xff]  ;;  %89 = vst [vmem:[#allocation3 + $0x50] sm:$0xff] %v5134_v13 }
  0x1e   :  { %4590 = vmatpush.bf16.msra.mxu2 %v4526_v2  ;;  %666 = vperm.xlu2 %4616, %v93_v32   ;;  %v112_v35 = vld [vmem:[#allocation5 + $0x68] sm:$0xff]  ;;  %v113_v39 = vld [vmem:[#allocation5 + $0x70] sm:$0xff]  ;;  %v114_v40 = vld [vmem:[#allocation5 + $0x78] sm:$0xff]  ;;  %90 = vst [vmem:[#allocation3 + $0x58] sm:$0xff] %v5134_v13 }
  0x1f   :  { %757 = vperm.xlu1 %4615, %v92_v19   ;;  %v121_v36 = vpack.c.bf16 %v112_v35, %v111_v34  ;;  %v122_v41 = vpack.c.bf16 %v114_v40, %v113_v39  ;;  %v5236_v42 = vld [vmem:[#allocation10] ss:$0 sm:$0xff]  ;;  %v5238_v43 = vld [vmem:[#allocation10 + $0x1] ss:$0 sm:$0xff] }
  0x20   :  { %661 = vperm.xlu0 %4614, %v92_v19  }
  0x21   :  { %190 = vmatpush.bf16.msra.mxu0 %v4525_v3  ;;  %4591 = vmatpush.bf16.msra.mxu1 %v4525_v3 }
  0x22   :  { %4592 = vmatpush.bf16.msra.mxu2 %v4525_v3 }
  0x25   :  { %191 = vmatpush.bf16.msra.mxu0 %v4524_v4  ;;  %4593 = vmatpush.bf16.msra.mxu1 %v4524_v4 }
  0x26   :  { %4594 = vmatpush.bf16.msra.mxu2 %v4524_v4  ;;  %671 = vperm.xlu2 %4616, %v94_v21  }
  0x27   :  { %765 = vperm.xlu1 %4615, %v94_v21  }
  0x28   :  { %4617 = vset.pattern.permute.xlu0 %v5132_v7 }
  0x29   :  { %192 = vmatpush.bf16.msra.mxu0 %v4523_v5  ;;  %4595 = vmatpush.bf16.msra.mxu1 %v4523_v5 }
  0x2a   :  { %4596 = vmatpush.bf16.msra.mxu2 %v4523_v5  ;;  %761 = vperm.xlu0 %4617, %v93_v32  }
  0x2d   :  { %193 = vmatpush.bf16.msra.mxu0 %v4522_v8  ;;  %4597 = vmatpush.bf16.msra.mxu1 %v4522_v8 }
  0x2e   :  { %4598 = vmatpush.bf16.msra.mxu2 %v4522_v8  ;;  %676 = vperm.xlu2 %4616, %v95_v37  }
  0x2f   :  { %4618 = vset.pattern.permute.xlu1 %v5133_v20 }
  0x30   :  { %681 = vperm.xlu1 %4618, %v96_v31  }
  0x31   :  { %194 = vmatpush.bf16.msra.mxu0 %v4521_v9  ;;  %4599 = vmatpush.bf16.msra.mxu1 %v4521_v9 }
  0x32   :  { %4600 = vmatpush.bf16.msra.mxu2 %v4521_v9  ;;  %773 = vperm.xlu0 %4617, %v96_v31  }
  0x34   :  { %195 = vmatmul.bf16.vlgmr.msra.gmra.mxu0 %v115_v16  ;;  %205 = vmatmul.bf16.vlgmr.msra.gmra.mxu1 %v117_v17 }
  0x35   :  { %215 = vmatmul.bf16.vlgmr.msra.gmra.mxu2 %v119_v18 }
  0x36   :  { %4619 = vset.pattern.permute.xlu2 %v5132_v7 }
  0x37   :  { %769 = vperm.xlu2 %4619, %v95_v37  }
  0x38   :  { %686 = vperm.xlu1 %4618, %v97_v33  }
  0x3a   :  { %777 = vperm.xlu0 %4617, %v97_v33  }
  0x3f   :  { %4620 = vset.pattern.permute.xlu2 %v5133_v20 }
  0x40   :  { %4621 = vset.pattern.permute.xlu1 %v5132_v7  ;;  %691 = vperm.xlu2 %4620, %v98_v38  }
  0x41   :  { %781 = vperm.xlu1 %4621, %v98_v38  }
  0x44   :  { %200 = vmatmul.bf16.gmra.mxu0 %v116_v28  ;;  %210 = vmatmul.bf16.gmra.mxu1 %v118_v29 }
  0x45   :  { %220 = vmatmul.bf16.gmra.mxu2 %v120_v30 }
  0x55   :  { %225 = vmatmul.bf16.gmra.mxu2 %v121_v36 }
  0x65   :  { %230 = vmatmul.bf16.gmra.mxu2 %v122_v41 }
  0xb1   :  { %v196_v44 = vpop.f32.mrf.mxu0  ;;  %v206_v45 = vpop.f32.mrf.mxu1 }
  0xb2   :  { %v238_v46 = vmul.f32 %v5236_v42, %v196_v44  ;;  %v242_v47 = vmul.f32 %v5236_v42, %v206_v45 }
  0xb4   :  { %v5243_v48 = vadd.f32 %v5238_v43, %v238_v46  ;;  %v5246_v49 = vadd.f32 %v5238_v43, %v242_v47 }
  0xb6   :  { %v4215_v50 = vmul.f32 -1.442695, %v5243_v48  ;;  %v4219_v51 = vmul.f32 -1.442695, %v5246_v49 }
  0xb8   :  { %4644 = vpow2.f32 %v4215_v50  ;;  %v216_v52 = vpop.f32.mrf.mxu2 }
  0xb9   :  { %4646 = vpow2.f32 %v4219_v51  ;;  %v246_v53 = vmul.f32 %v5236_v42, %v216_v52  ;;  %v198_v54 = vpop.f32.mrf.mxu0  ;;  %v208_v55 = vpop.f32.mrf.mxu1 }
  0xba   :  { %v239_v56 = vmul.f32 %v5236_v42, %v198_v54  ;;  %v243_v57 = vmul.f32 %v5236_v42, %v208_v55 }
  0xbb   :  { %v5254_v58 = vadd.f32 %v5238_v43, %v246_v53 }
  0xbc   :  { %v5257_v59 = vadd.f32 %v5238_v43, %v239_v56  ;;  %v5260_v60 = vadd.f32 %v5238_v43, %v243_v57 }
  0xbd   :  { %v4223_v61 = vmul.f32 -1.442695, %v5254_v58 }
  0xbe   :  { %v4645_v62 = vpop.eup %4644  ;;  %v4216_v63 = vmul.f32 -1.442695, %v5257_v59  ;;  %v4220_v2 = vmul.f32 -1.442695, %v5260_v60 }
  0xbf   :  { %v4647_v0 = vpop.eup %4646  ;;  %v320_v1 = vadd.f32 1.0, %v4645_v62  ;;  %4648 = vpow2.f32 %v4223_v61 }
  0xc0   :  { %v324_v3 = vadd.f32 1.0, %v4647_v0  ;;  %4650 = vpow2.f32 %v4216_v63  ;;  %v218_v4 = vpop.f32.mrf.mxu2 }
  0xc1   :  { %4652 = vrcp.f32 %v320_v1  ;;  %v201_v5 = vpop.f32.mrf.mxu0  ;;  %v247_v6 = vmul.f32 %v5236_v42, %v218_v4  ;;  %v211_v7 = vpop.f32.mrf.mxu1  ;;  %v345_v22 = vand.u32 2147483647, %v320_v1  ;;  %v347_v23 = vand.u32 2147483648, %v320_v1 }
  0xc2   :  { %4654 = vrcp.f32 %v324_v3  ;;  %v240_v10 = vmul.f32 %v5236_v42, %v201_v5  ;;  %v244_v16 = vmul.f32 %v5236_v42, %v211_v7  ;;  %vm401_vm0 = vweird.f32 %v324_v3 }
  0xc3   :  { %4656 = vpow2.f32 %v4220_v2  ;;  %v5267_v9 = vadd.f32 %v5238_v43, %v247_v6  ;;  %v407_v27 = vand.u32 2147483648, %v324_v3  ;;  %v405_v29 = vand.u32 2147483647, %v324_v3 }
  0xc4   :  { %v5278_v25 = vadd.f32 %v5238_v43, %v240_v10  ;;  %v5282_v30 = vadd.f32 %v5238_v43, %v244_v16  ;;  %vm341_vm3 = vweird.f32 %v320_v1  ;;  %vm346_vm4 = vcmp.eq.f32.partialorder %v345_v22, 8.507059e+37 }
  0xc5   :  { %v4649_v8 = vpop.eup %4648  ;;  %v4224_v19 = vmul.f32 -1.442695, %v5267_v9  ;;  %v408_v38 = vor.u32 1.1754944e-38, %v407_v27  ;;  %v348_v39 = vor.u32 1.1754944e-38, %v347_v23  ;;  %vm406_vm7 = vcmp.eq.f32.partialorder %v405_v29, 8.507059e+37 }
  0xc6   :  { %v4651_v11 = vpop.eup %4650  ;;  %v5270_v12 = vadd.f32 1.0, %v4649_v8  ;;  %v4217_v34 = vmul.f32 -1.442695, %v5278_v25  ;;  %v4221_v41 = vmul.f32 -1.442695, %v5282_v30 }
  0xc7   :  { %v4653_v14 = vpop.eup %4652  ;;  %v5272_v15 = vadd.f32 1.0, %v4651_v11 }
  0xc8   :  { %v4655_v17 = vpop.eup %4654  ;;  %v337_v18 = vmul.f32 %v4653_v14, %v320_v1  ;;  %4658 = vrcp.f32 %v5270_v12  ;;  %v221_v20 = vpop.f32.mrf.mxu2  ;;  %vm342_vm2 = vweird.f32 %v4653_v14  ;;  %vm461_vm8 = vweird.f32 %v5270_v12 }
  0xc9   :  { %v4657_v21 = vpop.eup %4656  ;;  %v397_v24 = vmul.f32 %v4655_v17, %v324_v3  ;;  %4660 = vrcp.f32 %v5272_v15  ;;  %vm402_vm1 = vweird.f32 %v4655_v17  ;;  %vm343_vm6 = vmor %vm341_vm3, %vm342_vm2  ;;  %v248_v47 = vmul.f32 %v5236_v42, %v221_v20  ;;  %v203_v4 = vpop.f32.mrf.mxu0 }
  0xca   :  { %v338_v26 = vsub.f32 1.0, %v337_v18  ;;  %v5284_v32 = vadd.f32 1.0, %v4657_v21  ;;  %4662 = vpow2.f32 %v4224_v19  ;;  %vm5290_vm5 = vmor %vm401_vm0, %vm402_vm1  ;;  %v362_v57 = vand.u32 2147483648, %v5272_v15 }
  0xcb   :  { %v398_v28 = vsub.f32 1.0, %v397_v24  ;;  %vm356_vm9 = vweird.f32 %v5272_v15  ;;  %v465_v19 = vand.u32 2147483647, %v5270_v12 }
  0xcc   :  { %v339_v31 = vmul.f32 %v4653_v14, %v338_v26  ;;  %4664 = vrcp.f32 %v5284_v32  ;;  %v363_v6 = vor.u32 1.1754944e-38, %v362_v57  ;;  %vm416_vm11 = vweird.f32 %v5284_v32 }
  0xcd   :  { %v399_v33 = vmul.f32 %v4655_v17, %v398_v28  ;;  %4666 = vpow2.f32 %v4217_v34  ;;  %v422_v7 = vand.u32 2147483648, %v5284_v32  ;;  %v420_v11 = vand.u32 2147483647, %v5284_v32 }
  0xce   :  { %v5287_v35 = vpop.eup %4658  ;;  %v340_v36 = vadd.f32 %v4653_v14, %v339_v31  ;;  %4668 = vpow2.f32 %v4221_v41  ;;  %v467_v26 = vand.u32 2147483648, %v5270_v12 }
  0xcf   :  { %v400_v40 = vadd.f32 %v4655_v17, %v399_v33  ;;  %v4661_v44 = vpop.eup %4660  ;;  %v457_v46 = vmul.f32 %v5287_v35, %v5270_v12  ;;  %vm462_vm15 = vweird.f32 %v5287_v35  ;;  %v423_v24 = vor.u32 1.1754944e-38, %v422_v7 }
  0xd0   :  { %v344_v45 = vsel %vm343_vm6, %v4653_v14, %v340_v36  ;;  %v5299_v50 = vpop.f32.mrf.mxu2  ;;  %v352_v53 = vmul.f32 %v4661_v44, %v5272_v15  ;;  %v4663_v54 = vpop.eup %4662  ;;  %vm357_vm10 = vweird.f32 %v4661_v44  ;;  %vm421_vm1 = vcmp.eq.f32.partialorder %v420_v11, 8.507059e+37  ;;  %vm5359_vm2 = vmor %vm461_vm8, %vm462_vm15 }
  0xd1   :  { %v349_v51 = vsel %vm346_vm4, %v348_v39, %v344_v45  ;;  %v404_v52 = vsel %vm5290_vm5, %v4655_v17, %v400_v40  ;;  %v5312_v63 = vadd.f32 1.0, %v4663_v54  ;;  %v458_v1 = vsub.f32 1.0, %v457_v46  ;;  %vm358_vm13 = vmor %vm356_vm9, %vm357_vm10  ;;  %v213_v39 = vpop.f32.mrf.mxu1 }
  0xd2   :  { %v5305_v55 = vmul.f32 %v349_v51, %v5243_v48  ;;  %v409_v56 = vsel %vm406_vm7, %v408_v38, %v404_v52  ;;  %v353_v62 = vsub.f32 1.0, %v352_v53  ;;  %v4665_v0 = vpop.eup %4664  ;;  %v5317_v48 = vadd.f32 %v5238_v43, %v248_v47 }
  0xd3   :  { %v5309_v61 = vmul.f32 %v409_v56, %v5246_v49  ;;  %v360_v49 = vand.u32 2147483647, %v5272_v15  ;;  %v412_v3 = vmul.f32 %v4665_v0, %v5284_v32  ;;  %v4667_v5 = vpop.eup %4666  ;;  %4670 = vrcp.f32 %v5312_v63 }
  0xd4   :  { %620 = vst [vmem:[#allocation3 + $0x10] sm:$0xff] %v5305_v55  ;;  %v354_v2 = vmul.f32 %v4661_v44, %v353_v62  ;;  %vm417_vm12 = vweird.f32 %v4665_v0  ;;  %v459_v13 = vmul.f32 %v5287_v35, %v458_v1  ;;  %v5329_v14 = vadd.f32 1.0, %v4667_v5  ;;  %v4669_v22 = vpop.eup %4668 }
  0xd5   :  { %624 = vst [vmem:[#allocation3 + $0x30] sm:$0xff] %v5309_v61  ;;  %v413_v10 = vsub.f32 1.0, %v412_v3  ;;  %v4225_v16 = vmul.f32 -1.442695, %v5317_v48  ;;  %v241_v17 = vmul.f32 %v5236_v42, %v203_v4  ;;  %vm361_vm14 = vcmp.eq.f32.partialorder %v360_v49, 8.507059e+37  ;;  %vm5338_vm0 = vmor %vm416_vm11, %vm417_vm12 }
  0xd6   :  { %v355_v8 = vadd.f32 %v4661_v44, %v354_v2  ;;  %4672 = vrcp.f32 %v5329_v14  ;;  %v5350_v31 = vadd.f32 %v5287_v35, %v459_v13  ;;  %v5352_v32 = vadd.f32 1.0, %v4669_v22 }
  0xd7   :  { %v414_v21 = vmul.f32 %v4665_v0, %v413_v10  ;;  %4674 = vpow2.f32 %v4225_v16  ;;  %v5355_v33 = vadd.f32 %v5238_v43, %v241_v17  ;;  %v480_v37 = vand.u32 2147483647, %v5312_v63 }
  0xd8   :  { %v226_v18 = vpop.f32.mrf.mxu2  ;;  %v359_v20 = vsel %vm358_vm13, %v4661_v44, %v355_v8  ;;  %v482_v38 = vand.u32 2147483648, %v5312_v63  ;;  %4676 = vrcp.f32 %v5352_v32  ;;  %v5371_v12 = vor.u32 1.1754944e-38, %v467_v26 }
  0xd9   :  { %v364_v23 = vsel %vm361_vm14, %v363_v6, %v359_v20  ;;  %v415_v28 = vadd.f32 %v4665_v0, %v414_v21  ;;  %v5347_v29 = vpop.eup %4670  ;;  %vm476_vm3 = vweird.f32 %v5312_v63  ;;  %v464_v46 = vsel %vm5359_vm2, %v5287_v35, %v5350_v31 }
  0xda   :  { %v5345_v27 = vmul.f32 %v364_v23, %v5257_v59  ;;  %v472_v36 = vmul.f32 %v5347_v29, %v5312_v63  ;;  %v4218_v47 = vmul.f32 -1.442695, %v5355_v33  ;;  %v245_v51 = vmul.f32 %v5236_v42, %v213_v39 }
  0xdb   :  { %v419_v59 = vsel %vm5338_vm0, %v4665_v0, %v415_v28  ;;  %v249_v52 = vmul.f32 %v5236_v42, %v5299_v50  ;;  %vm5385_vm4 = vcmp.eq.f32.partialorder %v465_v19, 8.507059e+37  ;;  %vm5391_vm5 = vcmp.eq.f32.partialorder %v480_v37, 8.507059e+37  ;;  %v5450_v37 = vld [vmem:[#allocation8] sm:$0xff] }
  0xdc   :  { %621 = vst [vmem:[#allocation3 + $0x18] sm:$0xff] %v5345_v27  ;;  %v424_v40 = vsel %vm421_vm1, %v423_v24, %v419_v59  ;;  %v473_v44 = vsub.f32 1.0, %v472_v36  ;;  %v4673_v45 = vpop.eup %4672  ;;  %v483_v35 = vor.u32 1.1754944e-38, %v482_v38  ;;  %vm371_vm6 = vweird.f32 %v5329_v14  ;;  %v5518_v17 = vld [vmem:[#allocation3 + $0x9] sm:$0xff] }
  0xdd   :  { %v5374_v41 = vmul.f32 %v424_v40, %v5260_v60  ;;  %v367_v56 = vmul.f32 %v4673_v45, %v5329_v14  ;;  %v4675_v62 = vpop.eup %4674  ;;  %v375_v50 = vand.u32 2147483647, %v5329_v14  ;;  %4678 = vpow2.f32 %v4218_v47 }
  0xde   :  { %v474_v60 = vmul.f32 %v5347_v29, %v473_v44  ;;  %v5399_v0 = vadd.f32 %v5238_v43, %v245_v51  ;;  %v250_v1 = vmul.f32 %v5236_v42, %v226_v18  ;;  %vm477_vm7 = vweird.f32 %v5347_v29  ;;  %v4677_v4 = vpop.eup %4676 }
  0xdf   :  { %625 = vst [vmem:[#allocation3 + $0x38] sm:$0xff] %v5374_v41  ;;  %v368_v2 = vsub.f32 1.0, %v367_v56  ;;  %v377_v49 = vand.u32 2147483648, %v5329_v14  ;;  %v5404_v3 = vadd.f32 1.0, %v4675_v62  ;;  %v437_v5 = vand.u32 2147483648, %v5352_v32  ;;  %vm5416_vm9 = vmor %vm476_vm3, %vm477_vm7 }
  0xe0   :  { %v228_v57 = vpop.f32.mrf.mxu2  ;;  %v4222_v6 = vmul.f32 -1.442695, %v5399_v0  ;;  %v5409_v7 = vadd.f32 %v5238_v43, %v249_v52  ;;  %v475_v10 = vadd.f32 %v5347_v29, %v474_v60  ;;  %vm372_vm8 = vweird.f32 %v4673_v45 }
  0xe1   :  { %v251_v8 = vmul.f32 %v5236_v42, %v228_v57  ;;  %v369_v11 = vmul.f32 %v4673_v45, %v368_v2  ;;  %v427_v13 = vmul.f32 %v4677_v4, %v5352_v32  ;;  %vm5420_vm10 = vcmp.eq.f32.partialorder %v375_v50, 8.507059e+37  ;;  %vm373_vm13 = vmor %vm371_vm6, %vm372_vm8 }
  0xe2   :  { %vm431_vm11 = vweird.f32 %v5352_v32  ;;  %4680 = vrcp.f32 %v5404_v3  ;;  %v5427_v18 = vadd.f32 %v5238_v43, %v250_v1  ;;  %vm432_vm12 = vweird.f32 %v4677_v4 }
  0xe3   :  { %v370_v19 = vadd.f32 %v4673_v45, %v369_v11  ;;  %v428_v20 = vsub.f32 1.0, %v427_v13  ;;  %v435_v63 = vand.u32 2147483647, %v5352_v32  ;;  %v4679_v21 = vpop.eup %4678  ;;  %v378_v22 = vor.u32 1.1754944e-38, %v377_v49  ;;  %vm5443_vm14 = vmor %vm431_vm11, %vm432_vm12  ;;  %v5485_v62 = vld [vmem:[#allocation3 + $0x17] sm:$0xff] }
  0xe4   :  { %4682 = vpow2.f32 %v4222_v6  ;;  %v4226_v23 = vmul.f32 -1.442695, %v5409_v7  ;;  %v5434_v15 = vadd.f32 %v5238_v43, %v251_v8  ;;  %v479_v24 = vsel %vm5416_vm9, %v5347_v29, %v475_v10  ;;  %v5499_v6 = vld [vmem:[#allocation3 + $0xf] sm:$0xff] }
  0xe5   :  { %v374_v26 = vsel %vm373_vm13, %v4673_v45, %v370_v19  ;;  %v429_v28 = vmul.f32 %v4677_v4, %v428_v20  ;;  %v438_v31 = vor.u32 1.1754944e-38, %v437_v5  ;;  %v5447_v59 = vadd.f32 1.0, %v4679_v21  ;;  %v637_v5 = vld [vmem:[#allocation3 + $0x7] sm:$0xff]  ;;  %v5520_v19 = vld [vmem:[#allocation3 + $0x11] sm:$0xff] }
  0xe6   :  { %v379_v34 = vsel %vm5420_vm10, %v378_v22, %v374_v26  ;;  %4684 = vpow2.f32 %v4226_v23  ;;  %v4227_v36 = vmul.f32 -1.442695, %v5427_v18  ;;  %vm436_vm15 = vcmp.eq.f32.partialorder %v435_v63, 8.507059e+37 }
  0xe7   :  { %v5453_v29 = vmul.f32 %v379_v34, %v5278_v25  ;;  %v430_v38 = vadd.f32 %v4677_v4, %v429_v28  ;;  %v4228_v39 = vmul.f32 -1.442695, %v5434_v15  ;;  %v5459_v32 = vperm.slane %v5450_v37, 4 }
  0xe8   :  { %v5456_v40 = vpop.eup %4680  ;;  %v469_v44 = vsel %vm5385_vm4, %v5371_v12, %v464_v46  ;;  %v484_v45 = vsel %vm5391_vm5, %v483_v35, %v479_v24  ;;  %4686 = vrcp.f32 %v5447_v59  ;;  %v231_v25 = vpop.f32.mrf.mxu2  ;;  %vm491_vm0 = vweird.f32 %v5404_v3 }
  0xe9   :  { %622 = vst [vmem:[#allocation3 + $0x20] sm:$0xff] %v5453_v29  ;;  %v434_v47 = vsel %vm5443_vm14, %v4677_v4, %v430_v38  ;;  %v487_v51 = vmul.f32 %v5456_v40, %v5404_v3  ;;  %v495_v52 = vand.u32 2147483647, %v5404_v3  ;;  %vm492_vm1 = vweird.f32 %v5456_v40 }
  0xea   :  { %v4683_v53 = vpop.eup %4682  ;;  %v439_v12 = vsel %vm436_vm15, %v438_v31, %v434_v47  ;;  %v497_v46 = vand.u32 2147483648, %v5404_v3  ;;  %4688 = vpow2.f32 %v4227_v36  ;;  %v5483_v57 = vmul.f32 %v5459_v32, %v5305_v55  ;;  %vm5508_vm2 = vmor %vm491_vm0, %vm492_vm1 }
  0xeb   :  { %v5477_v60 = vmul.f32 %v439_v12, %v5282_v30  ;;  %v488_v54 = vsub.f32 1.0, %v487_v51  ;;  %v5479_v35 = vadd.f32 1.0, %v4683_v53  ;;  %4690 = vpow2.f32 %v4228_v39 }
  0xec   :  { %v4685_v56 = vpop.eup %4684  ;;  %v390_v50 = vand.u32 2147483647, %v5447_v59  ;;  %v392_v1 = vand.u32 2147483648, %v5447_v59  ;;  %v5490_v2 = vperm.slane %v5450_v37, 0  ;;  %v5493_v30 = vmul.f32 %v469_v44, %v5254_v58  ;;  %v4536_v44 = vld [vmem:[#allocation11 + $0x38] sm:$0xff]  ;;  %v4535_v58 = vld [vmem:[#allocation11 + $0x30] sm:$0xff] }
  0xed   :  { %626 = vst [vmem:[#allocation3 + $0x40] sm:$0xff] %v5477_v60  ;;  %v489_v49 = vmul.f32 %v5456_v40, %v488_v54  ;;  %4692 = vrcp.f32 %v5479_v35  ;;  %v252_v4 = vmul.f32 %v5236_v42, %v231_v25  ;;  %v5502_v10 = vmul.f32 %v484_v45, %v5267_v9  ;;  %1631 = vmatpush.bf16.msrb.mxu1 %v4536_v44  ;;  %v5564_v54 = vpop.permute.xlu0 %656 }
  0xee   :  { %v4687_v8 = vpop.eup %4686  ;;  %vm5512_vm3 = vcmp.eq.f32.partialorder %v495_v52, 8.507059e+37  ;;  %v498_v13 = vor.u32 1.1754944e-38, %v497_v46  ;;  %v5516_v16 = vadd.f32 1.0, %v4685_v56  ;;  %vm386_vm4 = vweird.f32 %v5447_v59  ;;  %1137 = vst [vmem:[#allocation3 + $0x10] sm:$0xff] %v5493_v30 }
  0xef   :  { %v490_v9 = vadd.f32 %v5456_v40, %v489_v49  ;;  %v382_v20 = vmul.f32 %v4687_v8, %v5447_v59  ;;  %v5526_v3 = vperm.slane %v5450_v37, 1  ;;  %vm5529_vm5 = vcmp.eq.f32.partialorder %v390_v50, 8.507059e+37  ;;  %8374 = vst [vmem:[#allocation18_spill] sm:$0xff] %v5564_v54 }
  0xf0   :  { %v4689_v63 = vpop.eup %4688  ;;  %v393_v22 = vor.u32 1.1754944e-38, %v392_v1  ;;  %4694 = vrcp.f32 %v5516_v16  ;;  %v5535_v23 = vmul.f32 %v5490_v2, %v637_v5  ;;  %v450_v31 = vand.u32 2147483647, %v5479_v35  ;;  %v233_v39 = vpop.f32.mrf.mxu2  ;;  %v5568_v49 = vld [vmem:[#allocation3 + $0x1f] sm:$0xff] }
  0xf1   :  { %v4691_v24 = vpop.eup %4690  ;;  %v494_v26 = vsel %vm5508_vm2, %v5456_v40, %v490_v9  ;;  %v383_v28 = vsub.f32 1.0, %v382_v20  ;;  %v5542_v34 = vadd.f32 %v5238_v43, %v252_v4  ;;  %v452_v14 = vand.u32 2147483648, %v5479_v35  ;;  %1632 = vmatpush.bf16.msrb.mxu1 %v4535_v58  ;;  %v5633_v58 = vpop.permute.xlu1 %753 }
  0xf2   :  { %v5545_v36 = vadd.f32 1.0, %v4689_v63  ;;  %v5547_v38 = vadd.f32 1.0, %v4691_v24  ;;  %v5551_v45 = vmul.f32 %v5490_v2, %v5499_v6  ;;  %vm387_vm6 = vweird.f32 %v4687_v8  ;;  %v5585_v24 = vld [vmem:[#allocation3 + $0x19] sm:$0xff]  ;;  %8382 = vst [vmem:[#allocation20_spill] sm:$0xff] %v5633_v58 }
  0xf3   :  { %v4693_v25 = vpop.eup %4692  ;;  %v384_v40 = vmul.f32 %v4687_v8, %v383_v28  ;;  %vm446_vm7 = vweird.f32 %v5479_v35  ;;  %v510_v47 = vand.u32 2147483647, %v5516_v16  ;;  %v499_v51 = vsel %vm5512_vm3, %v498_v13, %v494_v26  ;;  %vm388_vm9 = vmor %vm386_vm4, %vm387_vm6  ;;  %1138 = vst [vmem:[#allocation3 + $0x18] sm:$0xff] %v5502_v10 }
  0xf4   :  { %v442_v52 = vmul.f32 %v4693_v25, %v5479_v35  ;;  %v512_v53 = vand.u32 2147483648, %v5516_v16  ;;  %4696 = vrcp.f32 %v5545_v36  ;;  %vm5560_vm8 = vcmp.eq.f32.partialorder %v450_v31, 8.507059e+37  ;;  %v4534_v35 = vld [vmem:[#allocation11 + $0x28] sm:$0xff] }
  0xf5   :  { %v385_v12 = vadd.f32 %v4687_v8, %v384_v40  ;;  %v4229_v56 = vmul.f32 -1.442695, %v5542_v34  ;;  %v253_v50 = vmul.f32 %v5236_v42, %v233_v39  ;;  %vm447_vm10 = vweird.f32 %v4693_v25  ;;  %1633 = vmatpush.bf16.msrb.mxu1 %v4534_v35 }
  0xf6   :  { %v4695_v1 = vpop.eup %4694  ;;  %v443_v4 = vsub.f32 1.0, %v442_v52  ;;  %v453_v5 = vor.u32 1.1754944e-38, %v452_v14  ;;  %4698 = vrcp.f32 %v5547_v38  ;;  %v5575_v11 = vmul.f32 %v499_v51, %v5317_v48  ;;  %vm5593_vm13 = vmor %vm446_vm7, %vm447_vm10 }
  0xf7   :  { %v389_v13 = vsel %vm388_vm9, %v4687_v8, %v385_v12  ;;  %v502_v9 = vmul.f32 %v4695_v1, %v5516_v16  ;;  %vm506_vm11 = vweird.f32 %v5516_v16  ;;  %vm5581_vm12 = vcmp.eq.f32.partialorder %v510_v47, 8.507059e+37 }
  0xf8   :  { %8375 = vst [vmem:[#allocation19_spill] sm:$0xff] %v5575_v11  ;;  %v394_v42 = vsel %vm5529_vm5, %v393_v22, %v389_v13  ;;  %v444_v20 = vmul.f32 %v4693_v25, %v443_v4  ;;  %v513_v63 = vor.u32 1.1754944e-38, %v512_v53  ;;  %vm507_vm14 = vweird.f32 %v4695_v1 }
  0xf9   :  { %v5588_v48 = vmul.f32 %v394_v42, %v5355_v33  ;;  %v503_v21 = vsub.f32 1.0, %v502_v9  ;;  %4700 = vpow2.f32 %v4229_v56  ;;  %vm521_vm15 = vweird.f32 %v5545_v36  ;;  %vm5617_vm1 = vmor %vm506_vm11, %vm507_vm14 }
  0xfa   :  { %v5598_v22 = vpop.eup %4696  ;;  %v445_v26 = vadd.f32 %v4693_v25, %v444_v20  ;;  %v525_v33 = vand.u32 2147483647, %v5545_v36  ;;  %v5603_v28 = vadd.f32 %v5238_v43, %v253_v50  ;;  %v527_v39 = vand.u32 2147483648, %v5545_v36  ;;  %v4533_v50 = vld [vmem:[#allocation11 + $0x20] sm:$0xff] }
  0xfb   :  { %623 = vst [vmem:[#allocation3 + $0x28] sm:$0xff] %v5588_v48  ;;  %v504_v31 = vmul.f32 %v4695_v1, %v503_v21  ;;  %v517_v14 = vmul.f32 %v5598_v22, %v5545_v36  ;;  %vm536_vm0 = vweird.f32 %v5547_v38  ;;  %vm522_vm2 = vweird.f32 %v5598_v22  ;;  %1634 = vmatpush.bf16.msrb.mxu1 %v4533_v50  ;;  %v5743_v36 = vld [vmem:[#allocation3 + $0x39] sm:$0xff] }
  0xfc   :  { %v5610_v44 = vpop.eup %4698  ;;  %v449_v40 = vsel %vm5593_vm13, %v4693_v25, %v445_v26  ;;  %v540_v47 = vand.u32 2147483647, %v5547_v38  ;;  %v4230_v51 = vmul.f32 -1.442695, %v5603_v28  ;;  %v542_v56 = vand.u32 2147483648, %v5547_v38  ;;  %vm5647_vm4 = vmor %vm521_vm15, %vm522_vm2 }
  0xfd   :  { %v454_v52 = vsel %vm5560_vm8, %v453_v5, %v449_v40  ;;  %v505_v53 = vadd.f32 %v4695_v1, %v504_v31  ;;  %v518_v12 = vsub.f32 1.0, %v517_v14  ;;  %v532_v25 = vmul.f32 %v5610_v44, %v5547_v38  ;;  %v5637_v5 = vpop.permute.xlu0 %661 }
  0xfe   :  { %v5629_v16 = vmul.f32 %v454_v52, %v5399_v0  ;;  %vm537_vm3 = vweird.f32 %v5610_v44  ;;  %4702 = vpow2.f32 %v4230_v51  ;;  %8383 = vst [vmem:[#allocation21_spill] sm:$0xff] %v5637_v5  ;;  %v528_v9 = vor.u32 1.1754944e-38, %v527_v39  ;;  %v4532_v51 = vld [vmem:[#allocation11 + $0x18] sm:$0xff] }
  0xff   :  { %v4701_v4 = vpop.eup %4700  ;;  %v509_v46 = vsel %vm5617_vm1, %v4695_v1, %v505_v53  ;;  %v519_v13 = vmul.f32 %v5598_v22, %v518_v12  ;;  %v533_v42 = vsub.f32 1.0, %v532_v25  ;;  %v694_v8 = vmul.f32 %v5564_v54, %v5535_v23  ;;  %vm5670_vm6 = vmor %vm536_vm0, %vm537_vm3  ;;  %1635 = vmatpush.bf16.msrb.mxu1 %v4532_v51  ;;  %v5747_v23 = vpop.permute.xlu1 %757 }
 0x100   :  { %627 = vst [vmem:[#allocation3 + $0x48] sm:$0xff] %v5629_v16  ;;  %v514_v0 = vsel %vm5581_vm12, %v513_v63, %v509_v46  ;;  %v5651_v1 = vadd.f32 1.0, %v4701_v4  ;;  %v695_v21 = vmul.f32 %v5637_v5, %v5551_v45  ;;  %vm5661_vm5 = vcmp.eq.f32.partialorder %v525_v33, 8.507059e+37  ;;  %v4531_v46 = vld [vmem:[#allocation11 + $0x10] sm:$0xff] }
 0x101   :  { %v5658_v59 = vmul.f32 %v514_v0, %v5409_v7  ;;  %v520_v63 = vadd.f32 %v5598_v22, %v519_v13  ;;  %v534_v26 = vmul.f32 %v5610_v44, %v533_v42  ;;  %v630_v7 = vmul.f32 %v5459_v32, %v5345_v27  ;;  %8394 = vst [vmem:[#allocation24_spill] sm:$0xff] %v5747_v23 }
 0x102   :  { %v5676_v45 = vld [vmem:[#allocation3 + $0x27] sm:$0xff]  ;;  %v5678_v35 = vld [vmem:[#allocation3 + $0x2f] sm:$0xff]  ;;  %v543_v31 = vor.u32 1.1754944e-38, %v542_v56  ;;  %4704 = vrcp.f32 %v5651_v1  ;;  %v719_v14 = vmul.f32 0.0, %v5526_v3  ;;  %vm5690_vm7 = vcmp.eq.f32.partialorder %v540_v47, 8.507059e+37 }
 0x103   :  { %v5680_v33 = vld [vmem:[#allocation3 + $0x21] sm:$0xff]  ;;  %v5684_v39 = vld [vmem:[#allocation3 + $0x29] sm:$0xff]  ;;  %v524_v38 = vsel %vm5647_vm4, %v5598_v22, %v520_v63  ;;  %v535_v40 = vadd.f32 %v5610_v44, %v534_v26  ;;  %v5695_v52 = vperm.slane %v5450_v37, 2  ;;  %v702_v22 = vadd.f32 %v694_v8, %v5483_v57  ;;  %v5717_v57 = vld [vmem:[#allocation3 + $0x31] sm:$0xff]  ;;  %1636 = vmatpush.bf16.msrb.mxu1 %v4531_v46 }
 0x104   :  { %1139 = vst [vmem:[#allocation3 + $0x20] sm:$0xff] %v5575_v11  ;;  %v4703_v53 = vpop.eup %4702  ;;  %v529_v12 = vsel %vm5661_vm5, %v528_v9, %v524_v38  ;;  %v703_v25 = vadd.f32 %v695_v21, %v630_v7  ;;  %v5703_v47 = vperm.slane %v5450_v37, 3  ;;  %v5715_v9 = vld [vmem:[#allocation3 + $0x37] sm:$0xff]  ;;  %v5729_v0 = vmul.f32 %v5459_v32, %v5493_v30  ;;  %v5741_v63 = vld [vmem:[#allocation3 + $0x3f] sm:$0xff] }
 0x105   :  { %1140 = vst [vmem:[#allocation3 + $0x28] sm:$0xff] %v5658_v59  ;;  %v5706_v56 = vmul.f32 %v529_v12, %v5427_v18  ;;  %v539_v50 = vsel %vm5670_vm6, %v5610_v44, %v535_v40  ;;  %v5711_v4 = vadd.f32 1.0, %v4703_v53  ;;  %v744_v13 = vmul.f32 %v5695_v52, %v5518_v17 }
 0x106   :  { %v544_v42 = vsel %vm5690_vm7, %v543_v31, %v539_v50  ;;  %v745_v18 = vmul.f32 %v5695_v52, %v5520_v19  ;;  %v5725_v44 = vmul.f32 %v5459_v32, %v5309_v61  ;;  %8392 = vst [vmem:[#allocation22_spill] sm:$0xff] %v5729_v0  ;;  %v720_v20 = vmul.f32 %v5526_v3, %v5305_v55 }
 0x107   :  { %1141 = vst [vmem:[#allocation3 + $0x30] sm:$0xff] %v5706_v56  ;;  %v5733_v17 = vmul.f32 %v544_v42, %v5434_v15  ;;  %v5739_v21 = vmul.f32 %v5459_v32, %v5374_v41  ;;  %4706 = vrcp.f32 %v5711_v4  ;;  %v727_v30 = vadd.f32 %v719_v14, %v702_v22  ;;  %v4530_v15 = vld [vmem:[#allocation11 + $0x8] sm:$0xff] }
 0x108   :  { %v4705_v8 = vpop.eup %4704  ;;  %v784_v26 = vmul.f32 %v5633_v58, %v744_v13  ;;  %vm551_vm8 = vweird.f32 %v5651_v1  ;;  %v728_v7 = vadd.f32 %v720_v20, %v703_v25  ;;  %v809_v31 = vmul.f32 %v5703_v47, %v5499_v6  ;;  %1637 = vmatpush.bf16.msrb.mxu1 %v4530_v15  ;;  %v4529_v13 = vld [vmem:[#allocation11] sm:$0xff] }
 0x109   :  { %8393 = vst [vmem:[#allocation23_spill] sm:$0xff] %v5733_v17  ;;  %v547_v55 = vmul.f32 %v4705_v8, %v5651_v1  ;;  %v555_v38 = vand.u32 2147483647, %v5651_v1  ;;  %v557_v14 = vand.u32 2147483648, %v5651_v1  ;;  %v785_v40 = vmul.f32 %v5747_v23, %v745_v18 }
 0x10a   :  { %1142 = vst [vmem:[#allocation3 + $0x38] sm:$0xff] %v5733_v17  ;;  %v810_v43 = vmul.f32 %v5703_v47, %v5485_v62  ;;  %vm552_vm9 = vweird.f32 %v4705_v8  ;;  %v792_v53 = vadd.f32 %v784_v26, %v727_v30  ;;  %v5760_v12 = vperm.slane %v5450_v37, 5  ;;  %v5780_v30 = vpop.permute.xlu2 %666 }
 0x10b   :  { %v548_v51 = vsub.f32 1.0, %v547_v55  ;;  %v5764_v22 = vmul.f32 %v5459_v32, %v5502_v10  ;;  %v5768_v6 = vmul.f32 %v5459_v32, %v5453_v29  ;;  %v793_v25 = vadd.f32 %v785_v40, %v728_v7  ;;  %vm5785_vm10 = vmor %vm551_vm8, %vm552_vm9  ;;  %v5830_v55 = vld [vmem:[#allocation3 + $0x47] sm:$0xff] }
 0x10c   :  { %v5771_v50 = vperm.slane %v5450_v37, 6  ;;  %v817_v42 = vmul.f32 %v809_v31, %v5564_v54  ;;  %v842_v18 = vmul.f32 %v5760_v12, %v5520_v19  ;;  %v843_v10 = vmul.f32 %v5760_v12, %v5585_v24  ;;  %1638 = vmatpush.bf16.msrb.mxu1 %v4529_v13 }
 0x10d   :  { %8395 = vst [vmem:[#allocation25_spill] sm:$0xff] %v5764_v22  ;;  %v549_v46 = vmul.f32 %v4705_v8, %v548_v51  ;;  %v5778_v20 = vpop.eup %4706  ;;  %vm5789_vm11 = vcmp.eq.f32.partialorder %v555_v38, 8.507059e+37  ;;  %v558_v15 = vor.u32 1.1754944e-38, %v557_v14  ;;  %v818_v19 = vmul.f32 %v810_v43, %v5637_v5  ;;  %v5807_v43 = vld [vmem:[#allocation8 + $0x8] ss:$0 sm:$0xff] }
 0x10e   :  { %v868_v7 = vmul.f32 %v5771_v50, %v5485_v62  ;;  %v825_v40 = vadd.f32 %v817_v42, %v792_v53  ;;  %v850_v51 = vmul.f32 %v842_v18, %v5633_v58  ;;  %v851_v1 = vmul.f32 %v843_v10, %v5747_v23 }
 0x10f   :  { %v550_v31 = vadd.f32 %v4705_v8, %v549_v46  ;;  %v5800_v22 = vmul.f32 %v5459_v32, %v5477_v60  ;;  %v826_v38 = vadd.f32 %v818_v19, %v793_v25  ;;  %v869_v0 = vmul.f32 %v5771_v50, %v5568_v49 }
 0x110   :  { %v5805_v14 = vperm.slane %v5450_v37, 7  ;;  %v562_v46 = vmul.f32 %v5778_v20, %v5711_v4  ;;  %v858_v42 = vadd.f32 %v850_v51, %v825_v40  ;;  %v876_v18 = vmul.f32 %v868_v7, %v5564_v54 }
 0x111   :  { %v554_v53 = vsel %vm5785_vm10, %v4705_v8, %v550_v31  ;;  %v859_v10 = vadd.f32 %v851_v1, %v826_v38  ;;  %v877_v19 = vmul.f32 %v869_v0, %v5637_v5  ;;  %v919_v37 = vmul.f32 %v5807_v43, %v5585_v24  ;;  %v5828_v31 = vld [vmem:[#allocation3 + $0x41] sm:$0xff] }
 0x112   :  { %v559_v25 = vsel %vm5789_vm11, %v558_v15, %v554_v53  ;;  %v5821_v26 = vmul.f32 %v5459_v32, %v5575_v11  ;;  %v632_v8 = vmul.f32 %v5459_v32, %v5588_v48  ;;  %v884_v7 = vadd.f32 %v876_v18, %v858_v42  ;;  %v5858_v11 = vpop.permute.xlu2 %671 }
 0x113   :  { %v5826_v13 = vmul.f32 %v559_v25, %v5542_v34  ;;  %v885_v15 = vadd.f32 %v877_v19, %v859_v10  ;;  %v901_v0 = vmul.f32 %v5805_v14, %v5345_v27  ;;  %v902_v40 = vmul.f32 %v5805_v14, %v5453_v29  ;;  %v5850_v10 = vld [vmem:[#allocation10 + $0x2] ss:$0 sm:$0xff]  ;;  %8403 = vst [vmem:[#allocation29_spill] sm:$0xff] %v5858_v11 }
 0x114   :  { %8400 = vst [vmem:[#allocation26_spill] sm:$0xff] %v5821_v26  ;;  %v920_v51 = vmul.f32 %v5807_v43, %v5680_v33  ;;  %v5840_v1 = vmul.f32 %v5459_v32, %v5629_v16  ;;  %v5844_v34 = vmul.f32 %v5459_v32, %v5658_v59  ;;  %v563_v38 = vsub.f32 1.0, %v562_v46 }
 0x115   :  { %8401 = vst [vmem:[#allocation27_spill] sm:$0xff] %v5826_v13  ;;  %vm566_vm12 = vweird.f32 %v5711_v4  ;;  %v909_v53 = vadd.f32 %v901_v0, %v884_v7  ;;  %v910_v42 = vadd.f32 %v902_v40, %v885_v15  ;;  %v927_v18 = vmul.f32 %v919_v37, %v5633_v58  ;;  %v5860_v7 = vpop.permute.xlu1 %765  ;;  %v5867_v40 = vld [vmem:[#allocation10 + $0x3] ss:$0 sm:$0xff] }
 0x116   :  { %8402 = vst [vmem:[#allocation28_spill] sm:$0xff] %v5844_v34  ;;  %v928_v25 = vmul.f32 %v920_v51, %v5747_v23  ;;  %v570_v16 = vand.u32 2147483647, %v5711_v4  ;;  %v572_v19 = vand.u32 2147483648, %v5711_v4  ;;  %v648_v59 = vmul.f32 %v5490_v2, %v5485_v62 }
 0x117   :  { %1143 = vst [vmem:[#allocation3 + $0x40] sm:$0xff] %v5826_v13  ;;  %v649_v46 = vmul.f32 %v5490_v2, %v5568_v49  ;;  %v5864_v37 = vmul.f32 %v5459_v32, %v5733_v17  ;;  %vm567_vm13 = vweird.f32 %v5778_v20  ;;  %v935_v15 = vadd.f32 %v927_v18, %v909_v53 }
 0x118   :  { %8404 = vst [vmem:[#allocation30_spill] sm:$0xff] %v5860_v7  ;;  %v936_v0 = vadd.f32 %v928_v25, %v910_v42  ;;  %v564_v51 = vmul.f32 %v5778_v20, %v563_v38  ;;  %v696_v62 = vmul.f32 %v5780_v30, %v648_v59  ;;  %v721_v26 = vmul.f32 %v5526_v3, %v5345_v27  ;;  %v5880_v42 = vpop.permute.xlu0 %761  ;;  %v5887_v59 = vld [vmem:[#allocation3 + $0x2f] sm:$0xff]  ;;  %vm5909_vm14 = vmor %vm566_vm12, %vm567_vm13 }
 0x119   :  { %v697_v34 = vmul.f32 %v5858_v11, %v649_v46  ;;  %v944_v23 = vmul.f32 %v5850_v10, %v935_v15  ;;  %v722_v5 = vmul.f32 %v5526_v3, %v5453_v29  ;;  %v746_v53 = vmul.f32 %v5585_v24, %v5695_v52  ;;  %8405 = vst [vmem:[#allocation31_spill] sm:$0xff] %v5880_v42 }
 0x11a   :  { %v945_v58 = vmul.f32 %v5850_v10, %v936_v0  ;;  %v704_v38 = vadd.f32 %v696_v62, %v5768_v6  ;;  %v747_v25 = vmul.f32 %v5695_v52, %v5680_v33  ;;  %v811_v27 = vmul.f32 %v5703_v47, %v5568_v49  ;;  %8406 = vst [vmem:[#allocation32_spill] sm:$0xff] %v5887_v59 }
 0x11b   :  { %v705_v18 = vadd.f32 %v697_v34, %v632_v8  ;;  %v5890_v46 = vadd.f32 %v5867_v40, %v944_v23  ;;  %v786_v24 = vmul.f32 %v5880_v42, %v746_v53  ;;  %v812_v6 = vmul.f32 %v5703_v47, %v5676_v45 }
 0x11c   :  { %v5893_v29 = vadd.f32 %v5867_v40, %v945_v58  ;;  %v1166_v8 = vmul.f32 %v5887_v59, %v5490_v2  ;;  %v729_v34 = vadd.f32 %v721_v26, %v704_v38  ;;  %v787_v49 = vmul.f32 %v5860_v7, %v747_v25 }
 0x11d   :  { %v730_v15 = vadd.f32 %v722_v5, %v705_v18  ;;  %v565_v0 = vadd.f32 %v5778_v20, %v564_v51  ;;  %v4231_v23 = vmul.f32 -1.442695, %v5890_v46  ;;  %v819_v58 = vmul.f32 %v811_v27, %v5780_v30 }
 0x11e   :  { %v4232_v62 = vmul.f32 -1.442695, %v5893_v29  ;;  %v794_v26 = vadd.f32 %v786_v24, %v729_v34  ;;  %v820_v38 = vmul.f32 %v812_v6, %v5858_v11  ;;  %v844_v51 = vmul.f32 %v5760_v12, %v5680_v33  ;;  %v5926_v34 = vpop.permute.xlu2 %676  ;;  %v5928_v33 = vpop.permute.xlu1 %681 }
 0x11f   :  { %v795_v5 = vadd.f32 %v787_v49, %v730_v15  ;;  %4708 = vpow2.f32 %v4231_v23  ;;  %v845_v18 = vmul.f32 %v5760_v12, %v5684_v39  ;;  %v870_v25 = vmul.f32 %v5771_v50, %v5676_v45  ;;  %8411 = vst [vmem:[#allocation33_spill] sm:$0xff] %v5926_v34  ;;  %v5930_v15 = vld [vmem:[#allocation3 + $0x37] sm:$0xff] }
 0x120   :  { %v871_v4 = vmul.f32 %v5771_v50, %v5678_v35  ;;  %vm5922_vm15 = vcmp.eq.f32.partialorder %v570_v16, 8.507059e+37  ;;  %v573_v24 = vor.u32 1.1754944e-38, %v572_v19  ;;  %4710 = vpow2.f32 %v4232_v62  ;;  %8412 = vst [vmem:[#allocation34_spill] sm:$0xff] %v5928_v33 }
 0x121   :  { %v828_v6 = vadd.f32 %v820_v38, %v795_v5  ;;  %8413 = vst [vmem:[#allocation35_spill] sm:$0xff] %v5930_v15  ;;  %v569_v49 = vsel %vm5909_vm14, %v5778_v20, %v565_v0  ;;  %v827_v23 = vadd.f32 %v819_v58, %v794_v26  ;;  %v852_v59 = vmul.f32 %v844_v51, %v5880_v42 }
 0x122   :  { %v853_v16 = vmul.f32 %v845_v18, %v5860_v7  ;;  %v5938_v54 = vmul.f32 %v1166_v8, %v5928_v33  ;;  %v878_v19 = vmul.f32 %v870_v25, %v5780_v30  ;;  %v879_v62 = vmul.f32 %v871_v4, %v5858_v11 }
 0x123   :  { %v921_v5 = vmul.f32 %v5807_v43, %v5684_v39  ;;  %v860_v38 = vadd.f32 %v852_v59, %v827_v23  ;;  %v922_v20 = vmul.f32 %v5807_v43, %v5717_v57  ;;  %v650_v0 = vmul.f32 %v5490_v2, %v5676_v45 }
 0x124   :  { %v861_v17 = vadd.f32 %v853_v16, %v828_v6  ;;  %v5950_v58 = vmul.f32 %v5930_v15, %v5490_v2  ;;  %v574_v8 = vsel %vm5922_vm15, %v573_v24, %v569_v49  ;;  %v903_v53 = vmul.f32 %v5805_v14, %v5588_v48 }
 0x125   :  { %v651_v59 = vmul.f32 %v5490_v2, %v5678_v35  ;;  %v4709_v26 = vpop.eup %4708  ;;  %v886_v51 = vadd.f32 %v878_v19, %v860_v38  ;;  %v904_v25 = vmul.f32 %v5805_v14, %v5309_v61  ;;  %v698_v45 = vmul.f32 %v5926_v34, %v650_v0  ;;  %v5975_v38 = vpop.permute.xlu0 %773 }
 0x126   :  { %v887_v18 = vadd.f32 %v879_v62, %v861_v17  ;;  %v4711_v4 = vpop.eup %4710  ;;  %v5961_v6 = vadd.f32 1.0, %v4709_v26  ;;  %v929_v27 = vmul.f32 %v921_v5, %v5880_v42  ;;  %v930_v24 = vmul.f32 %v922_v20, %v5860_v7  ;;  %8414 = vst [vmem:[#allocation36_spill] sm:$0xff] %v5975_v38 }
 0x127   :  { %v699_v49 = vmul.f32 %v5928_v33, %v651_v59  ;;  %v5966_v23 = vadd.f32 1.0, %v4711_v4  ;;  %v911_v16 = vadd.f32 %v903_v53, %v886_v51  ;;  %v706_v17 = vadd.f32 %v698_v45, %v5725_v44  ;;  %v5987_v51 = vpop.permute.xlu2 %769 }
 0x128   :  { %v912_v15 = vadd.f32 %v904_v25, %v887_v18  ;;  %4712 = vrcp.f32 %v5961_v6  ;;  %v1004_v19 = vand.u32 2147483648, %v5961_v6  ;;  %v748_v62 = vmul.f32 %v5695_v52, %v5684_v39 }
 0x129   :  { %v749_v5 = vmul.f32 %v5695_v52, %v5717_v57  ;;  %v5978_v20 = vmul.f32 %v574_v8, %v5603_v28  ;;  %4714 = vrcp.f32 %v5966_v23  ;;  %v723_v44 = vmul.f32 %v5526_v3, %v5588_v48 }
 0x12a   :  { %v724_v0 = vmul.f32 %v5526_v3, %v5309_v61  ;;  %v1002_v53 = vand.u32 2147483647, %v5961_v6  ;;  %v1017_v39 = vand.u32 2147483647, %v5966_v23  ;;  %v937_v59 = vadd.f32 %v929_v27, %v911_v16 }
 0x12b   :  { %v938_v26 = vadd.f32 %v930_v24, %v912_v15  ;;  %v5989_v18 = vor.u32 1.1754944e-38, %v1004_v19  ;;  %v1019_v28 = vand.u32 2147483648, %v5966_v23  ;;  %v707_v8 = vadd.f32 %v699_v49, %v5739_v21 }
 0x12c   :  { %v731_v25 = vadd.f32 %v723_v44, %v706_v17  ;;  %vm998_vm0 = vweird.f32 %v5961_v6  ;;  %v946_v48 = vmul.f32 %v5850_v10, %v937_v59  ;;  %v788_v45 = vmul.f32 %v5987_v51, %v748_v62 }
 0x12d   :  { %v947_v61 = vmul.f32 %v5850_v10, %v938_v26  ;;  %v789_v4 = vmul.f32 %v5975_v38, %v749_v5  ;;  %v732_v15 = vadd.f32 %v724_v0, %v707_v8  ;;  %v813_v27 = vmul.f32 %v5703_v47, %v5678_v35 }
 0x12e   :  { %v814_v24 = vmul.f32 %v5703_v47, %v5715_v9  ;;  %v846_v21 = vmul.f32 %v5760_v12, %v5717_v57  ;;  %v4713_v49 = vpop.eup %4712  ;;  %vm1013_vm1 = vweird.f32 %v5966_v23  ;;  %v6006_v16 = vadd.f32 %v5867_v40, %v946_v48 }
 0x12f   :  { %v6009_v17 = vadd.f32 %v5867_v40, %v947_v61  ;;  %v796_v19 = vadd.f32 %v788_v45, %v731_v25  ;;  %v847_v62 = vmul.f32 %v5760_v12, %v5743_v36  ;;  %v4715_v35 = vpop.eup %4714  ;;  %v994_v5 = vmul.f32 %v4713_v49, %v5961_v6  ;;  %v6050_v6 = vld [vmem:[#allocation3 + $0x4f] sm:$0xff] }
 0x130   :  { %vm6014_vm2 = vcmp.eq.f32.partialorder %v1002_v53, 8.507059e+37  ;;  %v1020_v57 = vor.u32 1.1754944e-38, %v1019_v28  ;;  %v797_v0 = vadd.f32 %v789_v4, %v732_v15  ;;  %v821_v59 = vmul.f32 %v813_v27, %v5926_v34 }
 0x131   :  { %vm999_vm3 = vweird.f32 %v4713_v49  ;;  %v1009_v26 = vmul.f32 %v4715_v35, %v5966_v23  ;;  %vm6020_vm4 = vcmp.eq.f32.partialorder %v1017_v39, 8.507059e+37  ;;  %v4233_v25 = vmul.f32 -1.442695, %v6006_v16 }
 0x132   :  { %v4234_v48 = vmul.f32 -1.442695, %v6009_v17  ;;  %v995_v61 = vsub.f32 1.0, %v994_v5  ;;  %v822_v53 = vmul.f32 %v814_v24, %v5928_v33  ;;  %v829_v45 = vadd.f32 %v821_v59, %v796_v19  ;;  %vm6037_vm6 = vmor %vm998_vm0, %vm999_vm3 }
 0x133   :  { %v854_v28 = vmul.f32 %v846_v21, %v5987_v51  ;;  %v1010_v4 = vsub.f32 1.0, %v1009_v26  ;;  %4716 = vpow2.f32 %v4233_v25  ;;  %v855_v15 = vmul.f32 %v847_v62, %v5975_v38 }
 0x134   :  { %v872_v39 = vmul.f32 %v5771_v50, %v5715_v9  ;;  %v996_v27 = vmul.f32 %v4713_v49, %v995_v61  ;;  %4718 = vpow2.f32 %v4234_v48  ;;  %v830_v7 = vadd.f32 %v822_v53, %v797_v0  ;;  %v6048_v53 = vld [vmem:[#allocation3 + $0x49] sm:$0xff] }
 0x135   :  { %v862_v42 = vadd.f32 %v854_v28, %v829_v45  ;;  %v1011_v11 = vmul.f32 %v4715_v35, %v1010_v4  ;;  %vm1014_vm5 = vweird.f32 %v4715_v35  ;;  %v873_v5 = vmul.f32 %v5771_v50, %v5741_v63  ;;  %v6052_v45 = vld [vmem:[#allocation3 + $0x48] sm:$0xff] }
 0x136   :  { %v880_v24 = vmul.f32 %v872_v39, %v5926_v34  ;;  %v997_v19 = vadd.f32 %v4713_v49, %v996_v27  ;;  %v863_v62 = vadd.f32 %v855_v15, %v830_v7  ;;  %v905_v0 = vmul.f32 %v5805_v14, %v5374_v41  ;;  %vm1015_vm7 = vmor %vm1013_vm1, %vm1014_vm5  ;;  %1144 = vst [vmem:[#allocation3 + $0x48] sm:$0xff] %v5978_v20 }
 0x137   :  { %v923_v59 = vmul.f32 %v5807_v43, %v5743_v36  ;;  %v1012_v26 = vadd.f32 %v4715_v35, %v1011_v11  ;;  %v881_v25 = vmul.f32 %v873_v5, %v5928_v33  ;;  %v906_v61 = vmul.f32 %v5805_v14, %v5477_v60  ;;  %v6068_v5 = vpop.permute.xlu1 %686 }
 0x138   :  { %v888_v48 = vadd.f32 %v880_v24, %v862_v42  ;;  %v1001_v7 = vsel %vm6037_vm6, %v4713_v49, %v997_v19  ;;  %v924_v11 = vmul.f32 %v5807_v43, %v5828_v31  ;;  %v652_v28 = vmul.f32 %v5490_v2, %v5715_v9 }
 0x139   :  { %v931_v42 = vmul.f32 %v923_v59, %v5987_v51  ;;  %v4717_v4 = vpop.eup %4716  ;;  %v1006_v15 = vsel %vm6014_vm2, %v5989_v18, %v1001_v7  ;;  %v1016_v49 = vsel %vm1015_vm7, %v4715_v35, %v1012_v26  ;;  %v889_v39 = vadd.f32 %v881_v25, %v863_v62 }
 0x13a   :  { %v913_v27 = vadd.f32 %v905_v0, %v888_v48  ;;  %v4719_v23 = vpop.eup %4718  ;;  %v1021_v24 = vsel %vm6020_vm4, %v1020_v57, %v1016_v49  ;;  %v1113_v19 = vmul.f32 %v1006_v15, %v5890_v46  ;;  %v6073_v21 = vadd.f32 1.0, %v4717_v4  ;;  %v6088_v46 = vpop.permute.xlu2 %691 }
 0x13b   :  { %v653_v9 = vmul.f32 %v5490_v2, %v5741_v63  ;;  %v1114_v59 = vmul.f32 %v1021_v24, %v5893_v29  ;;  %v6078_v44 = vadd.f32 1.0, %v4719_v23  ;;  %v914_v18 = vadd.f32 %v906_v61, %v889_v39  ;;  %8421 = vst [vmem:[#allocation37_spill] sm:$0xff] %v6088_v46  ;;  %v6125_v24 = vpop.permute.xlu0 %777 }
 0x13c   :  { %v939_v35 = vadd.f32 %v931_v42, %v913_v27  ;;  %v6082_v62 = vmul.f32 %v5459_v32, %v5706_v56  ;;  %v6086_v57 = vmul.f32 %v5526_v3, %v5706_v56  ;;  %4720 = vrcp.f32 %v6073_v21  ;;  %8422 = vst [vmem:[#allocation38_spill] sm:$0xff] %v6125_v24 }
 0x13d   :  { %v932_v8 = vmul.f32 %v924_v11, %v5975_v38  ;;  %v6094_v29 = vadd.f32 %v5938_v54, %v5864_v37  ;;  %v6098_v0 = vmul.f32 %v5950_v58, %v6068_v5  ;;  %v1559_v26 = vpack.c.bf16 %v1114_v59, %v1113_v19 }
 0x13e   :  { %4722 = vrcp.f32 %v6078_v44  ;;  %v6103_v56 = vmul.f32 %v5459_v32, %v5826_v13  ;;  %v1032_v25 = vand.u32 2147483647, %v6073_v21  ;;  %v1034_v48 = vand.u32 2147483648, %v6073_v21 }
 0x13f   :  { %v940_v61 = vadd.f32 %v932_v8, %v914_v18  ;;  %1639 = vmatmul.bf16.vlgmr.msrb.gmra.mxu1 %v1559_v26  ;;  %v1047_v54 = vand.u32 2147483647, %v6078_v44  ;;  %v948_v37 = vmul.f32 %v5850_v10, %v939_v35  ;;  %v700_v58 = vmul.f32 %v6068_v5, %v652_v28  ;;  %v6127_v19 = vpop.permute.xlu1 %781 }
 0x140   :  { %v701_v7 = vmul.f32 %v6088_v46, %v653_v9  ;;  %v1049_v11 = vand.u32 2147483648, %v6078_v44  ;;  %v725_v4 = vmul.f32 %v5526_v3, %v5374_v41  ;;  %v726_v15 = vmul.f32 %v5526_v3, %v5477_v60  ;;  %8423 = vst [vmem:[#allocation39_spill] sm:$0xff] %v6127_v19 }
 0x141   :  { %v949_v42 = vmul.f32 %v5850_v10, %v940_v61  ;;  %vm1028_vm8 = vweird.f32 %v6073_v21  ;;  %v6119_v49 = vadd.f32 %v5867_v40, %v948_v37  ;;  %v708_v39 = vadd.f32 %v700_v58, %v5800_v22 }
 0x142   :  { %v709_v28 = vadd.f32 %v701_v7, %v5840_v1  ;;  %v750_v27 = vmul.f32 %v5695_v52, %v5743_v36  ;;  %v4721_v23 = vpop.eup %4720  ;;  %vm1043_vm9 = vweird.f32 %v6078_v44  ;;  %v751_v60 = vmul.f32 %v5695_v52, %v5828_v31 }
 0x143   :  { %v6131_v41 = vadd.f32 %v5867_v40, %v949_v42  ;;  %v815_v22 = vmul.f32 %v5703_v47, %v5741_v63  ;;  %v816_v1 = vmul.f32 %v5703_v47, %v5830_v55  ;;  %v1024_v9 = vmul.f32 %v4721_v23, %v6073_v21 }
 0x144   :  { %v4723_v36 = vpop.eup %4722  ;;  %vm1029_vm10 = vweird.f32 %v4721_v23  ;;  %vm6140_vm11 = vcmp.eq.f32.partialorder %v1032_v25, 8.507059e+37  ;;  %v4235_v18 = vmul.f32 -1.442695, %v6119_v49  ;;  %v733_v35 = vadd.f32 %v725_v4, %v708_v39 }
 0x145   :  { %v1039_v8 = vmul.f32 %v4723_v36, %v6078_v44  ;;  %vm1044_vm12 = vweird.f32 %v4723_v36  ;;  %v4236_v26 = vmul.f32 -1.442695, %v6131_v41  ;;  %v734_v63 = vadd.f32 %v726_v15, %v709_v28  ;;  %vm1030_vm13 = vmor %vm1028_vm8, %vm1029_vm10 }
 0x146   :  { %v1025_v61 = vsub.f32 1.0, %v1024_v9  ;;  %4724 = vpow2.f32 %v4235_v18  ;;  %v790_v37 = vmul.f32 %v6125_v24, %v750_v27  ;;  %v791_v58 = vmul.f32 %v6127_v19, %v751_v60  ;;  %vm1045_vm15 = vmor %vm1043_vm9, %vm1044_vm12 }
 0x147   :  { %v1040_v7 = vsub.f32 1.0, %v1039_v8  ;;  %4726 = vpow2.f32 %v4236_v26  ;;  %v823_v25 = vmul.f32 %v815_v22, %v6068_v5  ;;  %v824_v42 = vmul.f32 %v816_v1, %v6088_v46 }
 0x148   :  { %v1026_v33 = vmul.f32 %v4721_v23, %v1025_v61  ;;  %v798_v4 = vadd.f32 %v790_v37, %v733_v35  ;;  %v799_v39 = vadd.f32 %v791_v58, %v734_v63  ;;  %v848_v13 = vmul.f32 %v5760_v12, %v5828_v31  ;;  %v4972_v58 = vld [vmem:[#allocation3] sm:$0xff] }
 0x149   :  { %v1041_v38 = vmul.f32 %v4723_v36, %v1040_v7  ;;  %v849_v15 = vmul.f32 %v5760_v12, %v6048_v53  ;;  %v874_v28 = vmul.f32 %v5771_v50, %v5830_v55  ;;  %v875_v27 = vmul.f32 %v5771_v50, %v6050_v6  ;;  %v8427_v7 = vld [vmem:[#allocation23_spill] sm:$0xff] }
 0x14a   :  { %v1027_v60 = vadd.f32 %v4721_v23, %v1026_v33  ;;  %v831_v22 = vadd.f32 %v823_v25, %v798_v4  ;;  %v832_v9 = vadd.f32 %v824_v42, %v799_v39  ;;  %v856_v1 = vmul.f32 %v848_v13, %v6125_v24  ;;  %v6202_v39 = vld [vmem:[#allocation3 + $0xf] sm:$0xff] }
 0x14b   :  { %v1035_v31 = vor.u32 1.1754944e-38, %v1034_v48  ;;  %v1042_v18 = vadd.f32 %v4723_v36, %v1041_v38  ;;  %vm1048_vm14 = vcmp.eq.f32.partialorder %v1047_v54, 8.507059e+37  ;;  %v857_v35 = vmul.f32 %v849_v15, %v6127_v19 }
 0x14c   :  { %v4725_v8 = vpop.eup %4724  ;;  %v1031_v26 = vsel %vm1030_vm13, %v4721_v23, %v1027_v60  ;;  %v1050_v55 = vor.u32 1.1754944e-38, %v1049_v11  ;;  %v864_v33 = vadd.f32 %v856_v1, %v831_v22  ;;  %v882_v6 = vmul.f32 %v874_v28, %v6068_v5  ;;  %v6208_v60 = vld [vmem:[#allocation3 + $0x3f] sm:$0xff]  ;;  %v4973_v22 = vld [vmem:[#allocation3 + $0x7] sm:$0xff] }
 0x14d   :  { %v4727_v13 = vpop.eup %4726  ;;  %v1036_v21 = vsel %vm6140_vm11, %v1035_v31, %v1031_v26  ;;  %v1046_v63 = vsel %vm1045_vm15, %v4723_v36, %v1042_v18  ;;  %v6170_v48 = vadd.f32 1.0, %v4725_v8  ;;  %v865_v38 = vadd.f32 %v857_v35, %v832_v9  ;;  %v6221_v31 = vld [vmem:[#allocation3 + $0x17] sm:$0xff]  ;;  %v6223_v18 = vld [vmem:[#allocation3 + $0x1f] sm:$0xff] }
 0x14e   :  { %v1051_v54 = vsel %vm1048_vm14, %v1050_v55, %v1046_v63  ;;  %v6172_v61 = vadd.f32 1.0, %v4727_v13  ;;  %v883_v23 = vmul.f32 %v875_v27, %v6088_v46  ;;  %v890_v37 = vadd.f32 %v882_v6, %v864_v33  ;;  %v8428_v33 = vld [vmem:[#allocation18_spill] sm:$0xff] }
 0x14f   :  { %v1115_v44 = vmul.f32 %v1036_v21, %v6006_v16  ;;  %v1116_v11 = vmul.f32 %v1051_v54, %v6009_v17  ;;  %4728 = vrcp.f32 %v6170_v48  ;;  %v6179_v59 = vmul.f32 %v4972_v58, %v5805_v14  ;;  %v6192_v17 = vld [vmem:[#allocation3 + $0x51] sm:$0xff] }
 0x150   :  { %v6183_v36 = vadd.f32 %v6086_v57, %v6094_v29  ;;  %v6187_v25 = vmul.f32 %v5526_v3, %v8427_v7  ;;  %4730 = vrcp.f32 %v6172_v61  ;;  %v907_v16 = vmul.f32 %v5805_v14, %v6052_v45 }
 0x151   :  { %8426 = vst [vmem:[#allocation40_spill] sm:$0xff] %v6179_v59  ;;  %v6196_v42 = vadd.f32 %v6098_v0, %v6103_v56  ;;  %v6200_v4 = vmul.f32 %v5459_v32, %v5978_v20  ;;  %v1560_v57 = vpack.c.bf16 %v1116_v11, %v1115_v44  ;;  %v891_v29 = vadd.f32 %v883_v23, %v865_v38  ;;  %v8431_v23 = vld [vmem:[#allocation21_spill] sm:$0xff] }
 0x152   :  { %v1062_v15 = vand.u32 2147483647, %v6170_v48  ;;  %v1064_v28 = vand.u32 2147483648, %v6170_v48  ;;  %v915_v27 = vadd.f32 %v907_v16, %v890_v37  ;;  %v925_v45 = vmul.f32 %v5807_v43, %v6048_v53 }
 0x153   :  { %1644 = vmatmul.bf16.gmra.mxu1 %v1560_v57  ;;  %v1077_v0 = vand.u32 2147483647, %v6172_v61  ;;  %v916_v32 = vadd.f32 %v6179_v59, %v891_v29  ;;  %v926_v56 = vmul.f32 %v5807_v43, %v6192_v17  ;;  %v1161_v9 = vmul.f32 %v4973_v22, %v5490_v2  ;;  %v8435_v22 = vld [vmem:[#allocation25_spill] sm:$0xff] }
 0x154   :  { %v6217_v1 = vmul.f32 %v6208_v60, %v5490_v2  ;;  %vm1058_vm0 = vweird.f32 %v6170_v48  ;;  %v933_v53 = vmul.f32 %v925_v45, %v6125_v24  ;;  %v1162_v35 = vmul.f32 %v6202_v39, %v5490_v2 }
 0x155   :  { %v4729_v8 = vpop.eup %4728  ;;  %vm1073_vm1 = vweird.f32 %v6172_v61  ;;  %v1079_v26 = vand.u32 2147483648, %v6172_v61  ;;  %v934_v55 = vmul.f32 %v926_v56, %v6127_v19  ;;  %v1169_v6 = vmul.f32 %v1161_v9, %v8428_v33 }
 0x156   :  { %v4731_v13 = vpop.eup %4730  ;;  %v1054_v21 = vmul.f32 %v4729_v8, %v6170_v48  ;;  %vm6232_vm2 = vcmp.eq.f32.partialorder %v1062_v15, 8.507059e+37  ;;  %v1065_v38 = vor.u32 1.1754944e-38, %v1064_v28  ;;  %v941_v54 = vadd.f32 %v933_v53, %v915_v27  ;;  %v8434_v28 = vld [vmem:[#allocation22_spill] sm:$0xff] }
 0x157   :  { %v1170_v37 = vmul.f32 %v1162_v35, %v8431_v23  ;;  %v1069_v44 = vmul.f32 %v4731_v13, %v6172_v61  ;;  %vm6238_vm3 = vcmp.eq.f32.partialorder %v1077_v0, 8.507059e+37  ;;  %v942_v7 = vadd.f32 %v934_v55, %v916_v32  ;;  %v4974_v53 = vld [vmem:[#allocation3 + $0x10] sm:$0xff] }
 0x158   :  { %v1163_v16 = vmul.f32 %v6221_v31, %v5490_v2  ;;  %v1164_v57 = vmul.f32 %v6223_v18, %v5490_v2  ;;  %v1055_v29 = vsub.f32 1.0, %v1054_v21  ;;  %v950_v15 = vmul.f32 %v5850_v10, %v941_v54  ;;  %v1209_v21 = vld [vmem:[#allocation3 + $0x9] sm:$0xff] }
 0x159   :  { %v1177_v27 = vadd.f32 %v1169_v6, %v8434_v28  ;;  %v1193_v45 = vmul.f32 %v4972_v58, %v5526_v3  ;;  %v1070_v56 = vsub.f32 1.0, %v1069_v44  ;;  %v951_v0 = vmul.f32 %v5850_v10, %v942_v7  ;;  %v1210_v44 = vld [vmem:[#allocation3 + $0x11] sm:$0xff] }
 0x15a   :  { %v1178_v9 = vadd.f32 %v1170_v37, %v8435_v22  ;;  %v1194_v32 = vmul.f32 %v4974_v53, %v5526_v3  ;;  %v1056_v35 = vmul.f32 %v4729_v8, %v1055_v29  ;;  %vm1059_vm4 = vweird.f32 %v4729_v8  ;;  %v8436_v28 = vld [vmem:[#allocation29_spill] sm:$0xff] }
 0x15b   :  { %v1080_v55 = vor.u32 1.1754944e-38, %v1079_v26  ;;  %v6253_v59 = vadd.f32 %v5867_v40, %v950_v15  ;;  %v1071_v54 = vmul.f32 %v4731_v13, %v1070_v56  ;;  %vm1074_vm5 = vweird.f32 %v4731_v13  ;;  %vm1060_vm6 = vmor %vm1058_vm0, %vm1059_vm4 }
 0x15c   :  { %v6256_v6 = vadd.f32 %v5867_v40, %v951_v0  ;;  %v1171_v58 = vmul.f32 %v1163_v16, %v5780_v30  ;;  %v1057_v7 = vadd.f32 %v4729_v8, %v1056_v35  ;;  %v1172_v22 = vmul.f32 %v1164_v57, %v8436_v28  ;;  %vm1075_vm7 = vmor %vm1073_vm1, %vm1074_vm5  ;;  %v8437_v35 = vld [vmem:[#allocation20_spill] sm:$0xff] }
 0x15d   :  { %v4237_v37 = vmul.f32 -1.442695, %v6253_v59  ;;  %v1201_v29 = vadd.f32 %v1193_v45, %v1177_v27  ;;  %v1072_v26 = vadd.f32 %v4731_v13, %v1071_v54  ;;  %v1202_v56 = vadd.f32 %v1194_v32, %v1178_v9  ;;  %v1211_v45 = vld [vmem:[#allocation3 + $0x19] sm:$0xff]  ;;  %v8438_v32 = vld [vmem:[#allocation24_spill] sm:$0xff] }
 0x15e   :  { %v4238_v15 = vmul.f32 -1.442695, %v6256_v6  ;;  %v1217_v53 = vmul.f32 %v1209_v21, %v5695_v52  ;;  %v1061_v0 = vsel %vm1060_vm6, %v4729_v8, %v1057_v7  ;;  %v1218_v16 = vmul.f32 %v1210_v44, %v5695_v52 }
 0x15f   :  { %4732 = vpow2.f32 %v4237_v37  ;;  %v1242_v57 = vmul.f32 %v6202_v39, %v5703_v47  ;;  %v1066_v48 = vsel %vm6232_vm2, %v1065_v38, %v1061_v0  ;;  %v1076_v27 = vsel %vm1075_vm7, %v4731_v13, %v1072_v26 }
 0x160   :  { %4734 = vpow2.f32 %v4238_v15  ;;  %v1225_v9 = vmul.f32 %v1217_v53, %v8437_v35  ;;  %v1081_v8 = vsel %vm6238_vm3, %v1080_v55, %v1076_v27  ;;  %v1117_v61 = vmul.f32 %v1066_v48, %v6119_v49  ;;  %v8439_v53 = vld [vmem:[#allocation26_spill] sm:$0xff] }
 0x161   :  { %v1226_v21 = vmul.f32 %v1218_v16, %v8438_v32  ;;  %v1243_v54 = vmul.f32 %v6221_v31, %v5703_v47  ;;  %v1118_v39 = vmul.f32 %v1081_v8, %v6131_v41  ;;  %v1250_v63 = vmul.f32 %v1242_v57, %v8428_v33  ;;  %v8440_v16 = vld [vmem:[#allocation28_spill] sm:$0xff] }
 0x162   :  { %v1233_v7 = vadd.f32 %v1225_v9, %v1201_v29  ;;  %v1267_v13 = vmul.f32 %v1210_v44, %v5760_v12  ;;  %v1268_v11 = vmul.f32 %v1211_v45, %v5760_v12  ;;  %v1292_v49 = vmul.f32 %v6221_v31, %v5771_v50  ;;  %v4975_v31 = vld [vmem:[#allocation3 + $0x18] sm:$0xff] }
 0x163   :  { %v1234_v38 = vadd.f32 %v1226_v21, %v1202_v56  ;;  %v1251_v37 = vmul.f32 %v1243_v54, %v8431_v23  ;;  %v1561_v55 = vpack.c.bf16 %v1118_v39, %v1117_v61  ;;  %v1293_v41 = vmul.f32 %v6223_v18, %v5771_v50  ;;  %v1212_v56 = vld [vmem:[#allocation3 + $0x21] sm:$0xff] }
 0x164   :  { %v1258_v26 = vadd.f32 %v1250_v63, %v1233_v7  ;;  %v1275_v15 = vmul.f32 %v1267_v13, %v8437_v35  ;;  %v1179_v0 = vadd.f32 %v1171_v58, %v8439_v53  ;;  %v1180_v44 = vadd.f32 %v1172_v22, %v8440_v16  ;;  %v8441_v61 = vld [vmem:[#allocation19_spill] sm:$0xff] }
 0x165   :  { %v4733_v29 = vpop.eup %4732  ;;  %v1259_v57 = vadd.f32 %v1251_v37, %v1234_v38  ;;  %v1276_v48 = vmul.f32 %v1268_v11, %v8438_v32  ;;  %1649 = vmatmul.bf16.gmra.mxu1 %v1561_v55  ;;  %v1195_v8 = vmul.f32 %v4975_v31, %v5526_v3  ;;  %v1196_v21 = vmul.f32 %v5526_v3, %v8441_v61  ;;  %v1157_v55 = vld [vmem:[#allocation3 + $0x27] sm:$0xff] }
 0x166   :  { %v4735_v27 = vpop.eup %4734  ;;  %v6292_v9 = vadd.f32 1.0, %v4733_v29  ;;  %v1283_v54 = vadd.f32 %v1275_v15, %v1258_v26  ;;  %v1300_v22 = vmul.f32 %v1292_v49, %v8428_v33  ;;  %v1335_v7 = vmul.f32 %v5807_v43, %v1211_v45 }
 0x167   :  { %v6297_v39 = vadd.f32 1.0, %v4735_v27  ;;  %v1284_v58 = vadd.f32 %v1276_v48, %v1259_v57  ;;  %v1301_v63 = vmul.f32 %v1293_v41, %v8431_v23  ;;  %v1319_v13 = vmul.f32 %v5805_v14, %v8441_v61 }
 0x168   :  { %4736 = vrcp.f32 %v6292_v9  ;;  %v1336_v38 = vmul.f32 %v5807_v43, %v1212_v56  ;;  %v6308_v37 = vmul.f32 %v6217_v1, %v6088_v46  ;;  %v1094_v11 = vand.u32 2147483648, %v6292_v9 }
 0x169   :  { %4738 = vrcp.f32 %v6297_v39  ;;  %v1109_v49 = vand.u32 2147483648, %v6297_v39  ;;  %v1203_v26 = vadd.f32 %v1195_v8, %v1179_v0  ;;  %v1308_v15 = vadd.f32 %v1300_v22, %v1283_v54 }
 0x16a   :  { %v1309_v29 = vadd.f32 %v1301_v63, %v1284_v58  ;;  %v1318_v41 = vmul.f32 %v4975_v31, %v5805_v14  ;;  %v1092_v53 = vand.u32 2147483647, %v6292_v9  ;;  %v1107_v16 = vand.u32 2147483647, %v6297_v39 }
 0x16b   :  { %v1204_v57 = vadd.f32 %v1196_v21, %v1180_v44  ;;  %v1343_v1 = vmul.f32 %v1335_v7, %v8437_v35  ;;  %v1344_v61 = vmul.f32 %v1336_v38, %v8438_v32  ;;  %v1165_v33 = vmul.f32 %v1157_v55, %v5490_v2  ;;  %v8444_v38 = vld [vmem:[#allocation31_spill] sm:$0xff] }
 0x16c   :  { %v1326_v48 = vadd.f32 %v1318_v41, %v1308_v15  ;;  %v1327_v27 = vadd.f32 %v1319_v13, %v1309_v29  ;;  %vm1088_vm8 = vweird.f32 %v6292_v9  ;;  %v1095_v0 = vor.u32 1.1754944e-38, %v1094_v11 }
 0x16d   :  { %v1110_v8 = vor.u32 1.1754944e-38, %v1109_v49  ;;  %v1219_v54 = vmul.f32 %v1211_v45, %v5695_v52  ;;  %v1220_v31 = vmul.f32 %v1212_v56, %v5695_v52  ;;  %vm1103_vm9 = vweird.f32 %v6297_v39  ;;  %v8445_v49 = vld [vmem:[#allocation30_spill] sm:$0xff] }
 0x16e   :  { %v4737_v58 = vpop.eup %4736  ;;  %v1351_v44 = vadd.f32 %v1343_v1, %v1326_v48  ;;  %v1352_v21 = vadd.f32 %v1344_v61, %v1327_v27  ;;  %v1244_v22 = vmul.f32 %v6223_v18, %v5703_v47  ;;  %v1245_v7 = vmul.f32 %v1157_v55, %v5703_v47 }
 0x16f   :  { %v4739_v63 = vpop.eup %4738  ;;  %v1084_v2 = vmul.f32 %v4737_v58, %v6292_v9  ;;  %vm6327_vm10 = vcmp.eq.f32.partialorder %v1092_v53, 8.507059e+37  ;;  %v1173_v45 = vmul.f32 %v1165_v33, %v5926_v34  ;;  %v1227_v11 = vmul.f32 %v1219_v54, %v8444_v38  ;;  %v1213_v53 = vld [vmem:[#allocation3 + $0x29] sm:$0xff] }
 0x170   :  { %v1228_v15 = vmul.f32 %v1220_v31, %v8445_v49  ;;  %v1099_v29 = vmul.f32 %v4739_v63, %v6297_v39  ;;  %vm6335_vm11 = vcmp.eq.f32.partialorder %v1107_v16, 8.507059e+37  ;;  %v1359_v18 = vmul.f32 %v5850_v10, %v1351_v44 }
 0x171   :  { %v1360_v1 = vmul.f32 %v5850_v10, %v1352_v21  ;;  %v1269_v48 = vmul.f32 %v1212_v56, %v5760_v12  ;;  %v1085_v27 = vsub.f32 1.0, %v1084_v2  ;;  %vm1089_vm12 = vweird.f32 %v4737_v58 }
 0x172   :  { %v1235_v33 = vadd.f32 %v1227_v11, %v1203_v26  ;;  %v1236_v61 = vadd.f32 %v1228_v15, %v1204_v57  ;;  %v1100_v54 = vsub.f32 1.0, %v1099_v29  ;;  %v6343_v31 = vadd.f32 %v5867_v40, %v1359_v18  ;;  %v4544_v15 = vld [vmem:[#allocation11 + $0x78] sm:$0xff]  ;;  %vm1090_vm14 = vmor %vm1088_vm8, %vm1089_vm12 }
 0x173   :  { %v6346_v16 = vadd.f32 %v5867_v40, %v1360_v1  ;;  %v1252_v32 = vmul.f32 %v1244_v22, %v5780_v30  ;;  %v1086_v35 = vmul.f32 %v4737_v58, %v1085_v27  ;;  %vm1104_vm13 = vweird.f32 %v4739_v63  ;;  %v8448_v27 = vld [vmem:[#allocation32_spill] sm:$0xff]  ;;  %1789 = vmatpush.bf16.msrb.mxu2 %v4544_v15 }
 0x174   :  { %v1253_v44 = vmul.f32 %v1245_v7, %v8436_v28  ;;  %v1270_v21 = vmul.f32 %v1213_v53, %v5760_v12  ;;  %v1101_v56 = vmul.f32 %v4739_v63, %v1100_v54  ;;  %v4239_v2 = vmul.f32 -1.442695, %v6343_v31  ;;  %vm1105_vm15 = vmor %vm1103_vm9, %vm1104_vm13 }
 0x175   :  { %v4240_v26 = vmul.f32 -1.442695, %v6346_v16  ;;  %v1260_v57 = vadd.f32 %v1252_v32, %v1235_v33  ;;  %v1087_v11 = vadd.f32 %v4737_v58, %v1086_v35  ;;  %v1277_v18 = vmul.f32 %v1269_v48, %v8444_v38  ;;  %v1189_v33 = vld [vmem:[#allocation3 + $0x28] sm:$0xff] }
 0x176   :  { %v1261_v29 = vadd.f32 %v1253_v44, %v1236_v61  ;;  %v1278_v1 = vmul.f32 %v1270_v21, %v8445_v49  ;;  %v1102_v22 = vadd.f32 %v4739_v63, %v1101_v56  ;;  %4740 = vpow2.f32 %v4239_v2  ;;  %v1214_v61 = vld [vmem:[#allocation3 + $0x31] sm:$0xff] }
 0x177   :  { %v1294_v7 = vmul.f32 %v1157_v55, %v5771_v50  ;;  %v1295_v54 = vmul.f32 %v8448_v27, %v5771_v50  ;;  %v1091_v23 = vsel %vm1090_vm14, %v4737_v58, %v1087_v11  ;;  %4742 = vpow2.f32 %v4240_v26  ;;  %v4976_v56 = vld [vmem:[#allocation3 + $0x30] sm:$0xff] }
 0x178   :  { %v1285_v35 = vadd.f32 %v1277_v18, %v1260_v57  ;;  %v1286_v32 = vadd.f32 %v1278_v1, %v1261_v29  ;;  %v1096_v9 = vsel %vm6327_vm10, %v1095_v0, %v1091_v23  ;;  %v1106_v48 = vsel %vm1105_vm15, %v4739_v63, %v1102_v22 }
 0x179   :  { %v1302_v55 = vmul.f32 %v1294_v7, %v5780_v30  ;;  %v1303_v44 = vmul.f32 %v1295_v54, %v8436_v28  ;;  %v1111_v58 = vsel %vm6335_vm11, %v1110_v8, %v1106_v48  ;;  %v1119_v39 = vmul.f32 %v1096_v9, %v6253_v59  ;;  %v8450_v9 = vld [vmem:[#allocation27_spill] sm:$0xff] }
 0x17a   :  { %v1320_v21 = vmul.f32 %v1189_v33, %v5805_v14  ;;  %v1321_v2 = vmul.f32 %v4976_v56, %v5805_v14  ;;  %v1120_v13 = vmul.f32 %v1111_v58, %v6256_v6  ;;  %v1337_v63 = vmul.f32 %v5807_v43, %v1213_v53 }
 0x17b   :  { %v1310_v23 = vadd.f32 %v1302_v55, %v1285_v35  ;;  %v1311_v0 = vadd.f32 %v1303_v44, %v1286_v32  ;;  %v1197_v26 = vmul.f32 %v1189_v33, %v5526_v3  ;;  %v1338_v57 = vmul.f32 %v5807_v43, %v1214_v61  ;;  %v8449_v32 = vld [vmem:[#allocation36_spill] sm:$0xff]  ;;  %v8451_v55 = vld [vmem:[#allocation35_spill] sm:$0xff] }
 0x17c   :  { %v1221_v41 = vmul.f32 %v1213_v53, %v5695_v52  ;;  %v1222_v8 = vmul.f32 %v1214_v61, %v5695_v52  ;;  %v4741_v59 = vpop.eup %4740  ;;  %v1562_v11 = vpack.c.bf16 %v1120_v13, %v1119_v39  ;;  %v1181_v15 = vadd.f32 %v1173_v45, %v6082_v62  ;;  %v1215_v39 = vld [vmem:[#allocation3 + $0x39] sm:$0xff] }
 0x17d   :  { %v1328_v29 = vadd.f32 %v1320_v21, %v1310_v23  ;;  %v1345_v18 = vmul.f32 %v1337_v63, %v8444_v38  ;;  %v4743_v6 = vpop.eup %4742  ;;  %v6381_v1 = vadd.f32 1.0, %v4741_v59  ;;  %v1329_v22 = vadd.f32 %v1321_v2, %v1311_v0  ;;  %v8452_v63 = vld [vmem:[#allocation34_spill] sm:$0xff] }
 0x17e   :  { %v1346_v7 = vmul.f32 %v1338_v57, %v8445_v49  ;;  %v1246_v43 = vmul.f32 %v8448_v27, %v5703_v47  ;;  %1654 = vmatmul.bf16.gmra.mxu1 %v1562_v11  ;;  %v6386_v53 = vadd.f32 1.0, %v4743_v6  ;;  %v1229_v35 = vmul.f32 %v1221_v41, %v5987_v51 }
 0x17f   :  { %v1353_v54 = vadd.f32 %v1345_v18, %v1328_v29  ;;  %v1230_v62 = vmul.f32 %v1222_v8, %v8449_v32  ;;  %v6392_v45 = vadd.f32 %v6187_v25, %v6196_v42  ;;  %v6396_v48 = vmul.f32 %v5526_v3, %v8450_v9 }
 0x180   :  { %4744 = vrcp.f32 %v6381_v1  ;;  %v6401_v27 = vadd.f32 %v6308_v37, %v6200_v4  ;;  %v1205_v33 = vadd.f32 %v1197_v26, %v1181_v15  ;;  %v1247_v44 = vmul.f32 %v8451_v55, %v5703_v47 }
 0x181   :  { %4746 = vrcp.f32 %v6386_v53  ;;  %v1416_v58 = vand.u32 2147483647, %v6381_v1  ;;  %v1354_v25 = vadd.f32 %v1346_v7, %v1329_v22  ;;  %v1361_v42 = vmul.f32 %v5850_v10, %v1353_v54 }
 0x182   :  { %v1254_v3 = vmul.f32 %v1246_v43, %v5926_v34  ;;  %v1418_v21 = vand.u32 2147483648, %v6381_v1  ;;  %v1431_v56 = vand.u32 2147483647, %v6386_v53  ;;  %v1237_v4 = vadd.f32 %v1229_v35, %v1205_v33  ;;  %v4543_v43 = vld [vmem:[#allocation11 + $0x70] sm:$0xff] }
 0x183   :  { %v1238_v37 = vadd.f32 %v1230_v62, %v6183_v36  ;;  %v1433_v2 = vand.u32 2147483648, %v6386_v53  ;;  %v1362_v13 = vmul.f32 %v5850_v10, %v1354_v25  ;;  %v6415_v23 = vadd.f32 %v5867_v40, %v1361_v42  ;;  %v6440_v62 = vld [vmem:[#allocation3 + $0x41] sm:$0xff]  ;;  %1790 = vmatpush.bf16.msrb.mxu2 %v4543_v43  ;;  %v4977_v25 = vld [vmem:[#allocation3 + $0x38] sm:$0xff] }
 0x184   :  { %v1271_v0 = vmul.f32 %v1214_v61, %v5760_v12  ;;  %vm1412_vm0 = vweird.f32 %v6381_v1  ;;  %v1255_v26 = vmul.f32 %v1247_v44, %v8452_v63  ;;  %v1272_v57 = vmul.f32 %v1215_v39, %v5760_v12 }
 0x185   :  { %v1296_v41 = vmul.f32 %v8451_v55, %v5771_v50  ;;  %v1297_v36 = vmul.f32 %v6208_v60, %v5771_v50  ;;  %vm1427_vm1 = vweird.f32 %v6386_v53  ;;  %v6427_v10 = vadd.f32 %v5867_v40, %v1362_v13 }
 0x186   :  { %v4745_v8 = vpop.eup %4744  ;;  %v4241_v61 = vmul.f32 -1.442695, %v6415_v23  ;;  %v1262_v59 = vadd.f32 %v1254_v3, %v1237_v4  ;;  %v1279_v11 = vmul.f32 %v1271_v0, %v5987_v51  ;;  %vm6432_vm3 = vcmp.eq.f32.partialorder %v1416_v58, 8.507059e+37  ;;  %v4542_v58 = vld [vmem:[#allocation11 + $0x68] sm:$0xff] }
 0x187   :  { %v4747_v15 = vpop.eup %4746  ;;  %v1408_v29 = vmul.f32 %v4745_v8, %v6381_v1  ;;  %vm1413_vm2 = vweird.f32 %v4745_v8  ;;  %v1263_v6 = vadd.f32 %v1255_v26, %v1238_v37  ;;  %v1280_v22 = vmul.f32 %v1272_v57, %v8449_v32  ;;  %v4978_v3 = vld [vmem:[#allocation3 + $0x40] sm:$0xff]  ;;  %v6445_v26 = vld [vmem:[#allocation8 + $0x8] ss:$0 sm:$0xff]  ;;  %1791 = vmatpush.bf16.msrb.mxu2 %v4542_v58 }
 0x188   :  { %v1423_v7 = vmul.f32 %v4747_v15, %v6386_v53  ;;  %4748 = vpow2.f32 %v4241_v61  ;;  %v4242_v40 = vmul.f32 -1.442695, %v6427_v10  ;;  %v1304_v54 = vmul.f32 %v1296_v41, %v5926_v34  ;;  %vm1414_vm6 = vmor %vm1412_vm0, %vm1413_vm2 }
 0x189   :  { %v1409_v35 = vsub.f32 1.0, %v1408_v29  ;;  %v1287_v9 = vadd.f32 %v1279_v11, %v1262_v59  ;;  %v1288_v33 = vadd.f32 %v1280_v22, %v1263_v6  ;;  %v1305_v55 = vmul.f32 %v1297_v36, %v8452_v63 }
 0x18a   :  { %v1424_v44 = vsub.f32 1.0, %v1423_v7  ;;  %4750 = vpow2.f32 %v4242_v40  ;;  %v1322_v42 = vmul.f32 %v4977_v25, %v5805_v14  ;;  %v1323_v4 = vmul.f32 %v4978_v3, %v5805_v14  ;;  %v1241_v25 = vld [vmem:[#allocation3 + $0x47] sm:$0xff] }
 0x18b   :  { %v1410_v37 = vmul.f32 %v4745_v8, %v1409_v35  ;;  %v1312_v13 = vadd.f32 %v1304_v54, %v1287_v9  ;;  %v1313_v0 = vadd.f32 %v1305_v55, %v1288_v33  ;;  %v1339_v57 = vmul.f32 %v6445_v26, %v1215_v39 }
 0x18c   :  { %v1425_v41 = vmul.f32 %v4747_v15, %v1424_v44  ;;  %vm1428_vm4 = vweird.f32 %v4747_v15  ;;  %v1340_v36 = vmul.f32 %v6445_v26, %v6440_v62  ;;  %v1223_v61 = vmul.f32 %v1215_v39, %v5695_v52 }
 0x18d   :  { %v1411_v59 = vadd.f32 %v4745_v8, %v1410_v37  ;;  %v1419_v11 = vor.u32 1.1754944e-38, %v1418_v21  ;;  %vm6451_vm5 = vcmp.eq.f32.partialorder %v1431_v56, 8.507059e+37  ;;  %v1347_v6 = vmul.f32 %v1339_v57, %v5987_v51  ;;  %vm1429_vm7 = vmor %vm1427_vm1, %vm1428_vm4  ;;  %v1291_v57 = vld [vmem:[#allocation3 + $0x4f] sm:$0xff] }
 0x18e   :  { %v4749_v22 = vpop.eup %4748  ;;  %v1426_v7 = vadd.f32 %v4747_v15, %v1425_v41  ;;  %v1330_v40 = vadd.f32 %v1322_v42, %v1312_v13  ;;  %v1348_v43 = vmul.f32 %v1340_v36, %v8449_v32  ;;  %v1224_v39 = vmul.f32 %v6440_v62, %v5695_v52 }
 0x18f   :  { %v1415_v21 = vsel %vm1414_vm6, %v4745_v8, %v1411_v59  ;;  %v1434_v56 = vor.u32 1.1754944e-38, %v1433_v2  ;;  %v6465_v54 = vadd.f32 1.0, %v4749_v22  ;;  %v1331_v35 = vadd.f32 %v1323_v4, %v1313_v0  ;;  %v6483_v4 = vld [vmem:[#allocation10 + $0x2] ss:$0 sm:$0xff] }
 0x190   :  { %v4751_v9 = vpop.eup %4750  ;;  %v1420_v1 = vsel %vm6432_vm3, %v1419_v11, %v1415_v21  ;;  %v1430_v33 = vsel %vm1429_vm7, %v4747_v15, %v1426_v7  ;;  %v1355_v55 = vadd.f32 %v1347_v6, %v1330_v40  ;;  %v1231_v44 = vmul.f32 %v1223_v61, %v6125_v24 }
 0x191   :  { %v1435_v52 = vsel %vm6451_vm5, %v1434_v56, %v1430_v33  ;;  %v6472_v8 = vadd.f32 1.0, %v4751_v9  ;;  %4752 = vrcp.f32 %v6465_v54  ;;  %v1356_v53 = vadd.f32 %v1348_v43, %v1331_v35  ;;  %v4540_v33 = vld [vmem:[#allocation11 + $0x58] sm:$0xff] }
 0x192   :  { %v1208_v2 = vadd.f32 %v6396_v48, %v6401_v27  ;;  %v1527_v58 = vmul.f32 %v1420_v1, %v6343_v31  ;;  %v1528_v18 = vmul.f32 %v1435_v52, %v6346_v16  ;;  %v1232_v15 = vmul.f32 %v1224_v39, %v6127_v19  ;;  %v1266_v48 = vld [vmem:[#allocation3 + $0x49] sm:$0xff]  ;;  %v4541_v39 = vld [vmem:[#allocation11 + $0x60] sm:$0xff] }
 0x193   :  { %4754 = vrcp.f32 %v6472_v8  ;;  %v1248_v42 = vmul.f32 %v6208_v60, %v5703_v47  ;;  %v1363_v37 = vmul.f32 %v6483_v4, %v1355_v55  ;;  %v1239_v13 = vadd.f32 %v1231_v44, %v6392_v45  ;;  %v6492_v60 = vld [vmem:[#allocation10 + $0x3] ss:$0 sm:$0xff]  ;;  %1792 = vmatpush.bf16.msrb.mxu2 %v4541_v39 }
 0x194   :  { %v1563_v3 = vpack.c.bf16 %v1528_v18, %v1527_v58  ;;  %v1446_v31 = vand.u32 2147483647, %v6465_v54  ;;  %v1448_v16 = vand.u32 2147483648, %v6465_v54  ;;  %v1463_v27 = vand.u32 2147483648, %v6472_v8 }
 0x195   :  { %v1364_v0 = vmul.f32 %v6483_v4, %v1356_v53  ;;  %vm1442_vm8 = vweird.f32 %v6465_v54  ;;  %v6495_v41 = vadd.f32 %v6492_v60, %v1363_v37  ;;  %v1240_v36 = vadd.f32 %v1232_v15, %v1208_v2 }
 0x196   :  { %1659 = vmatmul.bf16.gmra.mxu1 %v1563_v3  ;;  %v1249_v45 = vmul.f32 %v1241_v25, %v5703_v47  ;;  %v1273_v61 = vmul.f32 %v6440_v62, %v5760_v12  ;;  %v1256_v29 = vmul.f32 %v1248_v42, %v6068_v5  ;;  %v1274_v6 = vmul.f32 %v1266_v48, %v5760_v12 }
 0x197   :  { %v4753_v59 = vpop.eup %4752  ;;  %v6501_v11 = vadd.f32 %v6492_v60, %v1364_v0  ;;  %v1298_v22 = vmul.f32 %v1241_v25, %v5771_v50  ;;  %vm1457_vm10 = vweird.f32 %v6472_v8  ;;  %v4243_v47 = vmul.f32 -1.442695, %v6495_v41  ;;  %1793 = vmatpush.bf16.msrb.mxu2 %v4540_v33 }
 0x198   :  { %v1438_v7 = vmul.f32 %v4753_v59, %v6465_v54  ;;  %vm1443_vm9 = vweird.f32 %v4753_v59  ;;  %v1299_v40 = vmul.f32 %v1291_v57, %v5771_v50  ;;  %v1257_v21 = vmul.f32 %v1249_v45, %v6088_v46 }
 0x199   :  { %v4755_v62 = vpop.eup %4754  ;;  %v4244_v43 = vmul.f32 -1.442695, %v6501_v11  ;;  %v1264_v56 = vadd.f32 %v1256_v29, %v1239_v13  ;;  %v1281_v12 = vmul.f32 %v1273_v61, %v6125_v24  ;;  %4756 = vpow2.f32 %v4243_v47  ;;  %vm1444_vm12 = vmor %vm1442_vm8, %vm1443_vm9 }
 0x19a   :  { %v1439_v35 = vsub.f32 1.0, %v1438_v7  ;;  %v1453_v9 = vmul.f32 %v4755_v62, %v6472_v8  ;;  %v1282_v1 = vmul.f32 %v1274_v6, %v6127_v19  ;;  %v1265_v55 = vadd.f32 %v1257_v21, %v1240_v36  ;;  %v8457_v6 = vld [vmem:[#allocation40_spill] sm:$0xff] }
 0x19b   :  { %4758 = vpow2.f32 %v4244_v43  ;;  %v1289_v50 = vadd.f32 %v1281_v12, %v1264_v56  ;;  %v1306_v44 = vmul.f32 %v1298_v22, %v6068_v5  ;;  %v1307_v2 = vmul.f32 %v1299_v40, %v6088_v46 }
 0x19c   :  { %v1440_v52 = vmul.f32 %v4753_v59, %v1439_v35  ;;  %v1454_v53 = vsub.f32 1.0, %v1453_v9  ;;  %v1324_v58 = vmul.f32 %v5805_v14, %v5978_v20  ;;  %v1290_v18 = vadd.f32 %v1282_v1, %v1265_v55  ;;  %v4539_v1 = vld [vmem:[#allocation11 + $0x50] sm:$0xff] }
 0x19d   :  { %v1314_v15 = vadd.f32 %v1306_v44, %v1289_v50  ;;  %v1341_v25 = vmul.f32 %v6445_v26, %v1266_v48  ;;  %vm1458_vm11 = vweird.f32 %v4755_v62  ;;  %v1461_v37 = vand.u32 2147483647, %v6472_v8  ;;  %1794 = vmatpush.bf16.msrb.mxu2 %v4539_v1  ;;  %v4538_v50 = vld [vmem:[#allocation11 + $0x48] sm:$0xff] }
 0x19e   :  { %v1441_v42 = vadd.f32 %v4753_v59, %v1440_v52  ;;  %v1455_v3 = vmul.f32 %v4755_v62, %v1454_v53  ;;  %v1449_v13 = vor.u32 1.1754944e-38, %v1448_v16  ;;  %v1315_v0 = vadd.f32 %v1307_v2, %v1290_v18  ;;  %vm1459_vm14 = vmor %vm1457_vm10, %vm1458_vm11 }
 0x19f   :  { %v1332_v57 = vadd.f32 %v1324_v58, %v1314_v15  ;;  %v1342_v14 = vmul.f32 %v6445_v26, %v6192_v17  ;;  %v4757_v20 = vpop.eup %4756  ;;  %vm1447_vm13 = vcmp.eq.f32.partialorder %v1446_v31, 8.507059e+37  ;;  %v1349_v45 = vmul.f32 %v1341_v25, %v6125_v24  ;;  %v4537_v25 = vld [vmem:[#allocation11 + $0x40] sm:$0xff] }
 0x1a0   :  { %v1445_v36 = vsel %vm1444_vm12, %v4753_v59, %v1441_v42  ;;  %v1456_v48 = vadd.f32 %v4755_v62, %v1455_v3  ;;  %v1464_v54 = vor.u32 1.1754944e-38, %v1463_v27  ;;  %v1403_v16 = vadd.f32 1.0, %v4757_v20 }
 0x1a1   :  { %v4759_v61 = vpop.eup %4758  ;;  %v1450_v29 = vsel %vm1447_vm13, %v1449_v13, %v1445_v36  ;;  %v1333_v22 = vadd.f32 %v1315_v0, %v8457_v6  ;;  %vm1462_vm15 = vcmp.eq.f32.partialorder %v1461_v37, 8.507059e+37  ;;  %v1357_v17 = vadd.f32 %v1349_v45, %v1332_v57  ;;  %1795 = vmatpush.bf16.msrb.mxu2 %v4538_v50 }
 0x1a2   :  { %v1460_v7 = vsel %vm1459_vm14, %v4755_v62, %v1456_v48  ;;  %v1404_v47 = vadd.f32 1.0, %v4759_v61  ;;  %4760 = vrcp.f32 %v1403_v16  ;;  %v1350_v31 = vmul.f32 %v1342_v14, %v6127_v19 }
 0x1a3   :  { %v1465_v26 = vsel %vm1462_vm15, %v1464_v54, %v1460_v7  ;;  %v1529_v59 = vmul.f32 %v1450_v29, %v6415_v23  ;;  %v1365_v27 = vmul.f32 %v6483_v4, %v1357_v17  ;;  %v1478_v55 = vand.u32 2147483648, %v1403_v16 }
 0x1a4   :  { %v1530_v40 = vmul.f32 %v1465_v26, %v6427_v10  ;;  %4762 = vrcp.f32 %v1404_v47  ;;  %v1358_v43 = vadd.f32 %v1350_v31, %v1333_v22  ;;  %v1476_v52 = vand.u32 2147483647, %v1403_v16 }
 0x1a5   :  { %v6537_v62 = vadd.f32 %v6492_v60, %v1365_v27  ;;  %v1491_v2 = vand.u32 2147483647, %v1404_v47  ;;  %vm1472_vm2 = vweird.f32 %v1403_v16  ;;  %v1479_v18 = vor.u32 1.1754944e-38, %v1478_v55  ;;  %1796 = vmatpush.bf16.msrb.mxu2 %v4537_v25 }
 0x1a6   :  { %v1564_v8 = vpack.c.bf16 %v1530_v40, %v1529_v59  ;;  %v1366_v39 = vmul.f32 %v6483_v4, %v1358_v43  ;;  %vm1487_vm4 = vweird.f32 %v1404_v47  ;;  %vm1477_vm5 = vcmp.eq.f32.partialorder %v1476_v52, 8.507059e+37  ;;  %v6546_v43 = vld [vmem:[#allocation10 + $0x4] ss:$0 sm:$0xff] }
 0x1a7   :  { %v4245_v23 = vmul.f32 -1.442695, %v6537_v62  ;;  %vm1492_vm7 = vcmp.eq.f32.partialorder %v1491_v2, 8.507059e+37 }
 0x1a8   :  { %1664 = vmatmul.bf16.gmra.mxu1 %v1564_v8  ;;  %v4761_v21 = vpop.eup %4760  ;;  %v6540_v56 = vadd.f32 %v6492_v60, %v1366_v39  ;;  %v1493_v60 = vand.u32 2147483648, %v1404_v47 }
 0x1a9   :  { %v1468_v35 = vmul.f32 %v4761_v21, %v1403_v16  ;;  %4764 = vpow2.f32 %v4245_v23  ;;  %vm1473_vm0 = vweird.f32 %v4761_v21 }
 0x1aa   :  { %v4763_v12 = vpop.eup %4762  ;;  %v4246_v9 = vmul.f32 -1.442695, %v6540_v56  ;;  %vm1474_vm3 = vmor %vm1472_vm2, %vm1473_vm0  ;;  %v1494_v37 = vor.u32 1.1754944e-38, %v1493_v60 }
 0x1ab   :  { %v1483_v10 = vmul.f32 %v4763_v12, %v1404_v47  ;;  %v1469_v33 = vsub.f32 1.0, %v1468_v35  ;;  %vm1488_vm1 = vweird.f32 %v4763_v12 }
 0x1ac   :  { %4766 = vpow2.f32 %v4246_v9  ;;  %vm1489_vm6 = vmor %vm1487_vm4, %vm1488_vm1  ;;  %v6549_v9 = vld [vmem:[#allocation10 + $0x5] ss:$0 sm:$0xff] }
 0x1ad   :  { %v1484_v4 = vsub.f32 1.0, %v1483_v10  ;;  %v1470_v44 = vmul.f32 %v4761_v21, %v1469_v33 }
 0x1af   :  { %v1485_v53 = vmul.f32 %v4763_v12, %v1484_v4  ;;  %v1471_v58 = vadd.f32 %v4761_v21, %v1470_v44  ;;  %v4765_v42 = vpop.eup %4764 }
 0x1b0   :  { %v1405_v14 = vadd.f32 1.0, %v4765_v42 }
 0x1b1   :  { %v1486_v15 = vadd.f32 %v4763_v12, %v1485_v53  ;;  %v1475_v3 = vsel %vm1474_vm3, %v4761_v21, %v1471_v58 }
 0x1b2   :  { %v4767_v13 = vpop.eup %4766  ;;  %v1480_v0 = vsel %vm1477_vm5, %v1479_v18, %v1475_v3  ;;  %4768 = vrcp.f32 %v1405_v14  ;;  %v1508_v7 = vand.u32 2147483648, %v1405_v14  ;;  %v1506_v31 = vand.u32 2147483647, %v1405_v14 }
 0x1b3   :  { %v1490_v57 = vsel %vm1489_vm6, %v4763_v12, %v1486_v15  ;;  %v1406_v36 = vadd.f32 1.0, %v4767_v13  ;;  %v1531_v48 = vmul.f32 %v1480_v0, %v6495_v41  ;;  %vm1502_vm10 = vweird.f32 %v1405_v14 }
 0x1b4   :  { %v1495_v20 = vsel %vm1492_vm7, %v1494_v37, %v1490_v57  ;;  %v1509_v8 = vor.u32 1.1754944e-38, %v1508_v7  ;;  %vm1507_vm13 = vcmp.eq.f32.partialorder %v1506_v31, 8.507059e+37 }
 0x1b5   :  { %v1532_v45 = vmul.f32 %v1495_v20, %v6501_v11  ;;  %4770 = vrcp.f32 %v1406_v36  ;;  %v1523_v59 = vand.u32 2147483648, %v1406_v36  ;;  %v1521_v11 = vand.u32 2147483647, %v1406_v36 }
 0x1b6   :  { %vm1517_vm12 = vweird.f32 %v1406_v36 }
 0x1b7   :  { %v1565_v61 = vpack.c.bf16 %v1532_v45, %v1531_v48  ;;  %v1524_v21 = vor.u32 1.1754944e-38, %v1523_v59  ;;  %vm1522_vm15 = vcmp.eq.f32.partialorder %v1521_v11, 8.507059e+37 }
 0x1b8   :  { %v4769_v29 = vpop.eup %4768 }
 0x1b9   :  { %1669 = vmatmul.bf16.gmra.mxu1 %v1565_v61  ;;  %v1498_v16 = vmul.f32 %v4769_v29, %v1405_v14  ;;  %vm1503_vm8 = vweird.f32 %v4769_v29 }
 0x1ba   :  { %vm1504_vm11 = vmor %vm1502_vm10, %vm1503_vm8 }
 0x1bb   :  { %v4771_v54 = vpop.eup %4770  ;;  %v1499_v22 = vsub.f32 1.0, %v1498_v16 }
 0x1bc   :  { %v1513_v6 = vmul.f32 %v4771_v54, %v1406_v36  ;;  %v1640_v17 = vpop.f32.mrf.mxu1  ;;  %vm1518_vm9 = vweird.f32 %v4771_v54 }
 0x1bd   :  { %v1500_v26 = vmul.f32 %v4769_v29, %v1499_v22  ;;  %vm1519_vm14 = vmor %vm1517_vm12, %vm1518_vm9  ;;  %v1682_v10 = vmul.f32 %v6546_v43, %v1640_v17 }
 0x1be   :  { %v1514_v47 = vsub.f32 1.0, %v1513_v6 }
 0x1bf   :  { %v1501_v40 = vadd.f32 %v4769_v29, %v1500_v26  ;;  %v1700_v44 = vadd.f32 %v6549_v9, %v1682_v10 }
 0x1c0   :  { %v1515_v41 = vmul.f32 %v4771_v54, %v1514_v47 }
 0x1c1   :  { %v1505_v39 = vsel %vm1504_vm11, %v4769_v29, %v1501_v40 }
 0x1c2   :  { %v1516_v27 = vadd.f32 %v4771_v54, %v1515_v41  ;;  %v1510_v12 = vsel %vm1507_vm13, %v1509_v8, %v1505_v39  ;;  %v5135_v39 = vmov 2  }
 0x1c3   :  { %v1533_v1 = vmul.f32 %v1510_v12, %v6537_v62  ;;  %4623 = vset.pattern.permute.xlu0 %v5135_v39  ;;  %4624 = vset.pattern.permute.xlu1 %v5135_v39  ;;  %v4983_v12 = vld [vmem:[%s8274_s1 + $0x10] sm:$0xff] }
 0x1c4   :  { %v1520_v35 = vsel %vm1519_vm14, %v4771_v54, %v1516_v27  ;;  %v1642_v55 = vpop.f32.mrf.mxu1  ;;  %2648 = vperm.xlu1 %4624, %v4983_v12   ;;  %4622 = vset.pattern.permute.xlu2 %v5135_v39 }
 0x1c5   :  { %v1525_v23 = vsel %vm1522_vm15, %v1524_v21, %v1520_v35  ;;  %v1683_v4 = vmul.f32 %v6546_v43, %v1642_v55  ;;  %v4982_v21 = vld [vmem:[%s8274_s1 + $0x8] sm:$0xff]  ;;  %v4984_v35 = vld [vmem:[%s8274_s1] sm:$0xff] }
 0x1c6   :  { %v1534_v33 = vmul.f32 %v1525_v23, %v6540_v56  ;;  %2644 = vperm.xlu0 %4623, %v4982_v21   ;;  %2640 = vperm.xlu2 %4622, %v4984_v35   ;;  %v6621_v21 = vld [vmem:[#allocation8 + $0x9] sm:$0xff] }
 0x1c7   :  { %v1701_v52 = vadd.f32 %v6549_v9, %v1683_v4  ;;  %v4985_v4 = vld [vmem:[%s8274_s1 + $0x20] sm:$0xff]  ;;  %v6770_v24 = vperm.slane %v6621_v21, 7 }
 0x1c8   :  { %v1566_v50 = vpack.c.bf16 %v1534_v33, %v1533_v1 }
 0x1c9   :  { %v1716_v60 = vpack.c.bf16 %v1701_v52, %v1700_v44  ;;  %v4987_v52 = vld [vmem:[%s8274_s1 + $0x18] sm:$0xff] }
 0x1ca   :  { %1674 = vmatmul.bf16.gmra.mxu1 %v1566_v50  ;;  %v4986_v50 = vld [vmem:[%s8274_s1 + $0x30] sm:$0xff] }
 0x1cb   :  { %1797 = vmatmul.bf16.vlgmr.msrb.gmra.mxu2 %v1716_v60 }
 0x1cc   :  { %2656 = vperm.xlu1 %4624, %v4985_v4  }
 0x1ce   :  { %2664 = vperm.xlu0 %4623, %v4986_v50   ;;  %2652 = vperm.xlu2 %4622, %v4987_v52  }
 0x1d0   :  { %v1645_v53 = vpop.f32.mrf.mxu1 }
 0x1d1   :  { %v1684_v2 = vmul.f32 %v6546_v43, %v1645_v53  ;;  %v4988_v53 = vld [vmem:[%s8274_s1 + $0x38] sm:$0xff] }
 0x1d3   :  { %v1702_v62 = vadd.f32 %v6549_v9, %v1684_v2  ;;  %v4989_v2 = vld [vmem:[%s8274_s1 + $0x28] sm:$0xff]  ;;  %s5136_s1 = smov [#allocation13]  }
 0x1d4   :  { %2668 = vperm.xlu1 %4624, %v4988_v53   ;;  %v6631_v53 = vperm.slane %v6621_v21, 4  ;;  %s4169_s2 = sshll.u32 %s5136_s1, 4  ;;  %s4170_s2 = int_to_ptr.vmem [resolvable:$true] %s4169_s2 }
 0x1d6   :  { %2660 = vperm.xlu2 %4622, %v4989_v2   ;;  %8459 = vst [vmem:[#allocation22_spill] sm:$0xff] %v6631_v53 }
 0x1d8   :  { %v1647_v58 = vpop.f32.mrf.mxu1 }
 0x1d9   :  { %v1685_v18 = vmul.f32 %v6546_v43, %v1647_v58  ;;  %v6604_v58 = vld [vmem:[#allocation10 + $0x6] ss:$0 sm:$0xff] }
 0x1db   :  { %v1703_v56 = vadd.f32 %v6549_v9, %v1685_v18 }
 0x1dd   :  { %v1717_v15 = vpack.c.bf16 %v1703_v56, %v1702_v62  ;;  %v6607_v56 = vld [vmem:[#allocation10 + $0x7] ss:$0 sm:$0xff] }
 0x1df   :  { %1802 = vmatmul.bf16.gmra.mxu2 %v1717_v15 }
 0x1e2   :  { %v1650_v25 = vpop.f32.mrf.mxu1 }
 0x1e3   :  { %v1686_v42 = vmul.f32 %v6546_v43, %v1650_v25 }
 0x1e5   :  { %v1704_v13 = vadd.f32 %v6549_v9, %v1686_v42 }
 0x1ea   :  { %v1652_v3 = vpop.f32.mrf.mxu1 }
 0x1eb   :  { %v1687_v37 = vmul.f32 %v6546_v43, %v1652_v3 }
 0x1ed   :  { %v1705_v0 = vadd.f32 %v6549_v9, %v1687_v37 }
 0x1ef   :  { %v1718_v57 = vpack.c.bf16 %v1705_v0, %v1704_v13 }
 0x1f1   :  { %1807 = vmatmul.bf16.gmra.mxu2 %v1718_v57 }
 0x1fb   :  { %v1655_v14 = vpop.f32.mrf.mxu1 }
 0x1fc   :  { %v1688_v20 = vmul.f32 %v6546_v43, %v1655_v14 }
 0x1fe   :  { %v1706_v45 = vadd.f32 %v6549_v9, %v1688_v20 }
 0x203   :  { %v1657_v36 = vpop.f32.mrf.mxu1 }
 0x204   :  { %v1689_v48 = vmul.f32 %v6546_v43, %v1657_v36 }
 0x206   :  { %v1707_v61 = vadd.f32 %v6549_v9, %v1689_v48 }
 0x208   :  { %v1719_v29 = vpack.c.bf16 %v1707_v61, %v1706_v45 }
 0x20a   :  { %1812 = vmatmul.bf16.gmra.mxu2 %v1719_v29 }
 0x213   :  { %v1660_v54 = vpop.f32.mrf.mxu1 }
 0x214   :  { %v1690_v16 = vmul.f32 %v6546_v43, %v1660_v54 }
 0x216   :  { %v1708_v7 = vadd.f32 %v6549_v9, %v1690_v16 }
 0x21b   :  { %v1662_v6 = vpop.f32.mrf.mxu1 }
 0x21c   :  { %v1691_v22 = vmul.f32 %v6546_v43, %v1662_v6 }
 0x21e   :  { %v1709_v47 = vadd.f32 %v6549_v9, %v1691_v22 }
 0x220   :  { %v1720_v17 = vpack.c.bf16 %v1709_v47, %v1708_v7 }
 0x222   :  { %1817 = vmatmul.bf16.gmra.mxu2 %v1720_v17 }
 0x225   :  { %v1665_v26 = vpop.f32.mrf.mxu1 }
 0x226   :  { %v1692_v31 = vmul.f32 %v6546_v43, %v1665_v26 }
 0x228   :  { %v1710_v11 = vadd.f32 %v6549_v9, %v1692_v31 }
 0x22d   :  { %v1667_v59 = vpop.f32.mrf.mxu1 }
 0x22e   :  { %v1693_v41 = vmul.f32 %v6546_v43, %v1667_v59 }
 0x230   :  { %v1711_v40 = vadd.f32 %v6549_v9, %v1693_v41 }
 0x232   :  { %v1721_v8 = vpack.c.bf16 %v1711_v40, %v1710_v11 }
 0x234   :  { %1822 = vmatmul.bf16.gmra.mxu2 %v1721_v8 }
 0x236   :  { %v1670_v27 = vpop.f32.mrf.mxu1 }
 0x237   :  { %v1694_v23 = vmul.f32 %v6546_v43, %v1670_v27 }
 0x239   :  { %v1712_v33 = vadd.f32 %v6549_v9, %v1694_v23 }
 0x23e   :  { %v1672_v10 = vpop.f32.mrf.mxu1 }
 0x23f   :  { %v1695_v1 = vmul.f32 %v6546_v43, %v1672_v10  ;;  %v6626_v10 = vperm.slane %v6621_v21, 0 }
 0x241   :  { %v1713_v55 = vadd.f32 %v6549_v9, %v1695_v1  ;;  %8458 = vst [vmem:[#allocation23_spill] sm:$0xff] %v6626_v10 }
 0x243   :  { %v1722_v44 = vpack.c.bf16 %v1713_v55, %v1712_v33 }
 0x245   :  { %1827 = vmatmul.bf16.gmra.mxu2 %v1722_v44 }
 0x247   :  { %v1675_v60 = vpop.f32.mrf.mxu1 }
 0x248   :  { %v1696_v18 = vmul.f32 %v6546_v43, %v1675_v60 }
 0x24a   :  { %v1714_v3 = vadd.f32 %v6549_v9, %v1696_v18  ;;  %v6634_v18 = vperm.slane %v6621_v21, 1 }
 0x24c   :  { %8460 = vst [vmem:[#allocation25_spill] sm:$0xff] %v6634_v18 }
 0x24e   :  { %v1798_v25 = vpop.f32.mrf.mxu2 }
 0x24f   :  { %v1677_v62 = vpop.f32.mrf.mxu1  ;;  %v1840_v42 = vmul.f32 %v6604_v58, %v1798_v25 }
 0x250   :  { %v1697_v15 = vmul.f32 %v6546_v43, %v1677_v62 }
 0x251   :  { %v1858_v13 = vadd.f32 %v6607_v56, %v1840_v42 }
 0x252   :  { %v1715_v37 = vadd.f32 %v6549_v9, %v1697_v15  ;;  %v8461_v15 = vld [vmem:[#allocation21_spill] sm:$0xff] }
 0x253   :  { %v4311_v57 = vmul.f32 -1.442695, %v1858_v13 }
 0x254   :  { %v1723_v0 = vpack.c.bf16 %v1715_v37, %v1714_v3 }
 0x255   :  { %4772 = vpow2.f32 %v4311_v57 }
 0x256   :  { %1832 = vmatmul.bf16.gmra.mxu2 %v1723_v0  ;;  %v1800_v36 = vpop.f32.mrf.mxu2 }
 0x257   :  { %v1841_v48 = vmul.f32 %v6604_v58, %v1800_v36 }
 0x259   :  { %v1859_v43 = vadd.f32 %v6607_v56, %v1841_v48 }
 0x25b   :  { %v4773_v14 = vpop.eup %4772  ;;  %v4312_v61 = vmul.f32 -1.442695, %v1859_v43 }
 0x25c   :  { %v1922_v20 = vadd.f32 1.0, %v4773_v14 }
 0x25e   :  { %4774 = vrcp.f32 %v1922_v20  ;;  %v1949_v9 = vand.u32 2147483648, %v1922_v20  ;;  %v1947_v6 = vand.u32 2147483647, %v1922_v20  ;;  %vm1943_vm1 = vweird.f32 %v1922_v20 }
 0x25f   :  { %4776 = vpow2.f32 %v4312_v61 }
 0x260   :  { %v1950_v47 = vor.u32 1.1754944e-38, %v1949_v9  ;;  %vm1948_vm3 = vcmp.eq.f32.partialorder %v1947_v6, 8.507059e+37 }
 0x262   :  { %v1803_v41 = vpop.f32.mrf.mxu2 }
 0x263   :  { %v1842_v11 = vmul.f32 %v6604_v58, %v1803_v41 }
 0x264   :  { %v4775_v45 = vpop.eup %4774 }
 0x265   :  { %v1939_v29 = vmul.f32 %v4775_v45, %v1922_v20  ;;  %vm1944_vm0 = vweird.f32 %v4775_v45  ;;  %v4777_v7 = vpop.eup %4776  ;;  %v1860_v40 = vadd.f32 %v6607_v56, %v1842_v11 }
 0x266   :  { %vm1945_vm2 = vmor %vm1943_vm1, %vm1944_vm0  ;;  %v1923_v26 = vadd.f32 1.0, %v4777_v7 }
 0x267   :  { %v1940_v54 = vsub.f32 1.0, %v1939_v29  ;;  %v4313_v27 = vmul.f32 -1.442695, %v1860_v40 }
 0x268   :  { %4778 = vrcp.f32 %v1923_v26  ;;  %v1964_v23 = vand.u32 2147483648, %v1923_v26  ;;  %v1962_v33 = vand.u32 2147483647, %v1923_v26  ;;  %vm1958_vm5 = vweird.f32 %v1923_v26 }
 0x269   :  { %v1941_v16 = vmul.f32 %v4775_v45, %v1940_v54  ;;  %4780 = vpow2.f32 %v4313_v27 }
 0x26a   :  { %v1965_v44 = vor.u32 1.1754944e-38, %v1964_v23  ;;  %vm1963_vm7 = vcmp.eq.f32.partialorder %v1962_v33, 8.507059e+37  ;;  %v1805_v42 = vpop.f32.mrf.mxu2 }
 0x26b   :  { %v1942_v22 = vadd.f32 %v4775_v45, %v1941_v16  ;;  %v1843_v37 = vmul.f32 %v6604_v58, %v1805_v42 }
 0x26d   :  { %v1946_v17 = vsel %vm1945_vm2, %v4775_v45, %v1942_v22  ;;  %v1861_v57 = vadd.f32 %v6607_v56, %v1843_v37 }
 0x26e   :  { %v1951_v31 = vsel %vm1948_vm3, %v1950_v47, %v1946_v17  ;;  %v4779_v8 = vpop.eup %4778 }
 0x26f   :  { %v6616_v59 = vmul.f32 %v1951_v31, %v1858_v13  ;;  %v1954_v39 = vmul.f32 %v4779_v8, %v1923_v26  ;;  %vm1959_vm4 = vweird.f32 %v4779_v8  ;;  %v4781_v50 = vpop.eup %4780  ;;  %v4314_v36 = vmul.f32 -1.442695, %v1861_v57 }
 0x270   :  { %vm1960_vm6 = vmor %vm1958_vm5, %vm1959_vm4  ;;  %v1924_v60 = vadd.f32 1.0, %v4781_v50 }
 0x271   :  { %2222 = vst [vmem:[#allocation3 + $0x10] sm:$0xff] %v6616_v59  ;;  %v1955_v12 = vsub.f32 1.0, %v1954_v39  ;;  %v2282_v0 = vmul.f32 %v6634_v18, %v6616_v59 }
 0x272   :  { %4782 = vrcp.f32 %v1924_v60  ;;  %v1979_v61 = vand.u32 2147483648, %v1924_v60  ;;  %v1977_v54 = vand.u32 2147483647, %v1924_v60  ;;  %vm1973_vm9 = vweird.f32 %v1924_v60 }
 0x273   :  { %v1956_v1 = vmul.f32 %v4779_v8, %v1955_v12  ;;  %4784 = vpow2.f32 %v4314_v36 }
 0x274   :  { %v1980_v22 = vor.u32 1.1754944e-38, %v1979_v61  ;;  %vm1978_vm11 = vcmp.eq.f32.partialorder %v1977_v54, 8.507059e+37  ;;  %v1808_v41 = vpop.f32.mrf.mxu2 }
 0x275   :  { %v1957_v55 = vadd.f32 %v4779_v8, %v1956_v1 }
 0x277   :  { %v1961_v52 = vsel %vm1960_vm6, %v4779_v8, %v1957_v55  ;;  %v1844_v8 = vmul.f32 %v6604_v58, %v1808_v41 }
 0x278   :  { %v6623_v35 = vld [vmem:[#allocation3 + $0xf] sm:$0xff]  ;;  %v1966_v2 = vsel %vm1963_vm7, %v1965_v44, %v1961_v52  ;;  %v4783_v14 = vpop.eup %4782 }
 0x279   :  { %v2249_v4 = vmul.f32 %v6626_v10, %v6623_v35  ;;  %v6636_v62 = vmul.f32 %v1966_v2, %v1859_v43  ;;  %v1969_v48 = vmul.f32 %v4783_v14, %v1924_v60  ;;  %vm1974_vm8 = vweird.f32 %v4783_v14  ;;  %v4785_v6 = vpop.eup %4784 }
 0x27a   :  { %vm1975_vm10 = vmor %vm1973_vm9, %vm1974_vm8  ;;  %v1925_v47 = vadd.f32 1.0, %v4785_v6  ;;  %v1862_v12 = vadd.f32 %v6607_v56, %v1844_v8 }
 0x27b   :  { %v2257_v25 = vmul.f32 %v2249_v4, %v8461_v15  ;;  %2223 = vst [vmem:[#allocation3 + $0x18] sm:$0xff] %v6636_v62  ;;  %v2232_v3 = vmul.f32 %v6631_v53, %v6636_v62  ;;  %v1970_v43 = vsub.f32 1.0, %v1969_v48  ;;  %v2283_v39 = vmul.f32 %v6634_v18, %v6636_v62 }
 0x27c   :  { %4786 = vrcp.f32 %v1925_v47  ;;  %v4315_v33 = vmul.f32 -1.442695, %v1862_v12  ;;  %v1994_v50 = vand.u32 2147483648, %v1925_v47  ;;  %v1992_v52 = vand.u32 2147483647, %v1925_v47  ;;  %v1810_v48 = vpop.f32.mrf.mxu2 }
 0x27d   :  { %v2265_v13 = vadd.f32 %v2257_v25, %v2232_v3  ;;  %v1971_v29 = vmul.f32 %v4783_v14, %v1970_v43  ;;  %vm1988_vm13 = vweird.f32 %v1925_v47  ;;  %v1845_v43 = vmul.f32 %v6604_v58, %v1810_v48 }
 0x27e   :  { %4788 = vpow2.f32 %v4315_v33  ;;  %v1995_v25 = vor.u32 1.1754944e-38, %v1994_v50  ;;  %vm1993_vm15 = vcmp.eq.f32.partialorder %v1992_v52, 8.507059e+37 }
 0x27f   :  { %v6646_v20 = vadd.f32 %v2282_v0, %v2265_v13  ;;  %v1972_v9 = vadd.f32 %v4783_v14, %v1971_v29  ;;  %v1863_v54 = vadd.f32 %v6607_v56, %v1845_v43 }
 0x281   :  { %v1976_v7 = vsel %vm1975_vm10, %v4783_v14, %v1972_v9 }
 0x282   :  { %v6648_v45 = vld [vmem:[#allocation3 + $0x17] sm:$0xff]  ;;  %v1981_v17 = vsel %vm1978_vm11, %v1980_v22, %v1976_v7  ;;  %v4787_v23 = vpop.eup %4786 }
 0x283   :  { %v2250_v16 = vmul.f32 %v6626_v10, %v6648_v45  ;;  %v6652_v26 = vmul.f32 %v1981_v17, %v1860_v40  ;;  %v1984_v1 = vmul.f32 %v4787_v23, %v1925_v47  ;;  %vm1989_vm12 = vweird.f32 %v4787_v23 }
 0x284   :  { %vm1990_vm14 = vmor %vm1988_vm13, %vm1989_vm12  ;;  %v4789_v42 = vpop.eup %4788 }
 0x285   :  { %v2258_v31 = vmul.f32 %v2250_v16, %v5780_v30  ;;  %2224 = vst [vmem:[#allocation3 + $0x20] sm:$0xff] %v6652_v26  ;;  %v2233_v11 = vmul.f32 %v6631_v53, %v6652_v26  ;;  %v1985_v55 = vsub.f32 1.0, %v1984_v1  ;;  %v1926_v13 = vadd.f32 1.0, %v4789_v42 }
 0x286   :  { %v2284_v29 = vmul.f32 %v6634_v18, %v6652_v26  ;;  %v4316_v16 = vmul.f32 -1.442695, %v1863_v54 }
 0x287   :  { %v2266_v27 = vadd.f32 %v2258_v31, %v2233_v11  ;;  %v1986_v44 = vmul.f32 %v4787_v23, %v1985_v55  ;;  %4790 = vrcp.f32 %v1926_v13  ;;  %v2009_v47 = vand.u32 2147483648, %v1926_v13 }
 0x288   :  { %4792 = vpow2.f32 %v4316_v16  ;;  %v2007_v31 = vand.u32 2147483647, %v1926_v13  ;;  %vm2003_vm1 = vweird.f32 %v1926_v13 }
 0x289   :  { %v6662_v40 = vadd.f32 %v2283_v39, %v2266_v27  ;;  %v1987_v60 = vadd.f32 %v4787_v23, %v1986_v44  ;;  %v2010_v27 = vor.u32 1.1754944e-38, %v2009_v47 }
 0x28a   :  { %vm2008_vm3 = vcmp.eq.f32.partialorder %v2007_v31, 8.507059e+37 }
 0x28b   :  { %v1991_v3 = vsel %vm1990_vm14, %v4787_v23, %v1987_v60 }
 0x28c   :  { %v6664_v4 = vld [vmem:[#allocation3 + $0x1f] sm:$0xff]  ;;  %v1996_v37 = vsel %vm1993_vm15, %v1995_v25, %v1991_v3 }
 0x28d   :  { %v2251_v2 = vmul.f32 %v6626_v10, %v6664_v4  ;;  %v6668_v0 = vmul.f32 %v1996_v37, %v1861_v57  ;;  %v4791_v57 = vpop.eup %4790  ;;  %v1813_v50 = vpop.f32.mrf.mxu2 }
 0x28e   :  { %v1999_v6 = vmul.f32 %v4791_v57, %v1926_v13  ;;  %vm2004_vm0 = vweird.f32 %v4791_v57  ;;  %v4793_v8 = vpop.eup %4792  ;;  %v1846_v52 = vmul.f32 %v6604_v58, %v1813_v50 }
 0x28f   :  { %v2259_v14 = vmul.f32 %v2251_v2, %v8436_v28  ;;  %2225 = vst [vmem:[#allocation3 + $0x28] sm:$0xff] %v6668_v0  ;;  %v2234_v36 = vmul.f32 %v6631_v53, %v6668_v0  ;;  %vm2005_vm2 = vmor %vm2003_vm1, %vm2004_vm0  ;;  %v1927_v23 = vadd.f32 1.0, %v4793_v8  ;;  %v2285_v2 = vmul.f32 %v6634_v18, %v6668_v0 }
 0x290   :  { %v2000_v22 = vsub.f32 1.0, %v1999_v6  ;;  %v1864_v25 = vadd.f32 %v6607_v56, %v1846_v52 }
 0x291   :  { %v2267_v61 = vadd.f32 %v2259_v14, %v2234_v36  ;;  %4794 = vrcp.f32 %v1927_v23  ;;  %v2024_v36 = vand.u32 2147483648, %v1927_v23  ;;  %v2022_v43 = vand.u32 2147483647, %v1927_v23 }
 0x292   :  { %v2001_v17 = vmul.f32 %v4791_v57, %v2000_v22  ;;  %v4317_v37 = vmul.f32 -1.442695, %v1864_v25  ;;  %vm2018_vm5 = vweird.f32 %v1927_v23 }
 0x293   :  { %v6678_v9 = vadd.f32 %v2284_v29, %v2267_v61  ;;  %vm2023_vm7 = vcmp.eq.f32.partialorder %v2022_v43, 8.507059e+37 }
 0x294   :  { %v2002_v41 = vadd.f32 %v4791_v57, %v2001_v17  ;;  %4796 = vpow2.f32 %v4317_v37 }
 0x296   :  { %v6680_v7 = vld [vmem:[#allocation3 + $0x27] sm:$0xff]  ;;  %v2006_v39 = vsel %vm2005_vm2, %v4791_v57, %v2002_v41  ;;  %v2025_v57 = vor.u32 1.1754944e-38, %v2024_v36 }
 0x297   :  { %v2252_v11 = vmul.f32 %v6626_v10, %v6680_v7  ;;  %v2011_v1 = vsel %vm2008_vm3, %v2010_v27, %v2006_v39  ;;  %v4795_v42 = vpop.eup %4794 }
 0x298   :  { %v6684_v33 = vmul.f32 %v2011_v1, %v1862_v12  ;;  %v2014_v3 = vmul.f32 %v4795_v42, %v1927_v23  ;;  %vm2019_vm4 = vweird.f32 %v4795_v42 }
 0x299   :  { %v2260_v55 = vmul.f32 %v2252_v11, %v5926_v34  ;;  %vm2020_vm6 = vmor %vm2018_vm5, %vm2019_vm4  ;;  %v1815_v11 = vpop.f32.mrf.mxu2 }
 0x29a   :  { %2226 = vst [vmem:[#allocation3 + $0x30] sm:$0xff] %v6684_v33  ;;  %v2235_v44 = vmul.f32 %v6631_v53, %v6684_v33  ;;  %v2015_v13 = vsub.f32 1.0, %v2014_v3  ;;  %v4797_v16 = vpop.eup %4796  ;;  %v1847_v8 = vmul.f32 %v6604_v58, %v1815_v11  ;;  %v2286_v39 = vmul.f32 %v6634_v18, %v6684_v33 }
 0x29b   :  { %v1928_v47 = vadd.f32 1.0, %v4797_v16 }
 0x29c   :  { %v2268_v60 = vadd.f32 %v2260_v55, %v2235_v44  ;;  %v2016_v48 = vmul.f32 %v4795_v42, %v2015_v13  ;;  %v1865_v23 = vadd.f32 %v6607_v56, %v1847_v8 }
 0x29d   :  { %4798 = vrcp.f32 %v1928_v47  ;;  %v2039_v52 = vand.u32 2147483648, %v1928_v47  ;;  %vm2033_vm9 = vweird.f32 %v1928_v47 }
 0x29e   :  { %v6694_v12 = vadd.f32 %v2285_v2, %v2268_v60  ;;  %v2017_v61 = vadd.f32 %v4795_v42, %v2016_v48  ;;  %v4318_v55 = vmul.f32 -1.442695, %v1865_v23  ;;  %v2037_v2 = vand.u32 2147483647, %v1928_v47 }
 0x29f   :  { %v2040_v37 = vor.u32 1.1754944e-38, %v2039_v52 }
 0x2a0   :  { %v2021_v6 = vsel %vm2020_vm6, %v4795_v42, %v2017_v61  ;;  %4800 = vpow2.f32 %v4318_v55  ;;  %vm2038_vm11 = vcmp.eq.f32.partialorder %v2037_v2, 8.507059e+37 }
 0x2a1   :  { %v6696_v14 = vld [vmem:[#allocation3 + $0x2f] sm:$0xff]  ;;  %v2026_v22 = vsel %vm2023_vm7, %v2025_v57, %v2021_v6 }
 0x2a2   :  { %v2253_v29 = vmul.f32 %v6626_v10, %v6696_v14  ;;  %v6700_v17 = vmul.f32 %v2026_v22, %v1863_v54 }
 0x2a3   :  { %v4799_v54 = vpop.eup %4798 }
 0x2a4   :  { %v2261_v31 = vmul.f32 %v2253_v29, %v8452_v63  ;;  %2227 = vst [vmem:[#allocation3 + $0x38] sm:$0xff] %v6700_v17  ;;  %v2236_v41 = vmul.f32 %v6631_v53, %v6700_v17  ;;  %v2029_v50 = vmul.f32 %v4799_v54, %v1928_v47  ;;  %vm2034_vm8 = vweird.f32 %v4799_v54 }
 0x2a5   :  { %vm2035_vm10 = vmor %vm2033_vm9, %vm2034_vm8  ;;  %v1818_v61 = vpop.f32.mrf.mxu2 }
 0x2a6   :  { %v2269_v27 = vadd.f32 %v2261_v31, %v2236_v41  ;;  %v2030_v44 = vsub.f32 1.0, %v2029_v50  ;;  %v4801_v3 = vpop.eup %4800  ;;  %v1848_v29 = vmul.f32 %v6604_v58, %v1818_v61 }
 0x2a7   :  { %v1929_v36 = vadd.f32 1.0, %v4801_v3 }
 0x2a8   :  { %v6710_v1 = vadd.f32 %v2286_v39, %v2269_v27  ;;  %v2031_v60 = vmul.f32 %v4799_v54, %v2030_v44  ;;  %v1866_v16 = vadd.f32 %v6607_v56, %v1848_v29 }
 0x2a9   :  { %4802 = vrcp.f32 %v1929_v36  ;;  %v2054_v31 = vand.u32 2147483648, %v1929_v36  ;;  %v2052_v11 = vand.u32 2147483647, %v1929_v36  ;;  %vm2048_vm13 = vweird.f32 %v1929_v36 }
 0x2aa   :  { %8462 = vst [vmem:[#allocation29_spill] sm:$0xff] %v6710_v1  ;;  %v2032_v42 = vadd.f32 %v4799_v54, %v2031_v60  ;;  %v4319_v22 = vmul.f32 -1.442695, %v1866_v16 }
 0x2ab   :  { %vm2053_vm15 = vcmp.eq.f32.partialorder %v2052_v11, 8.507059e+37  ;;  %v2231_v11 = vmul.f32 %v6631_v53, %v6616_v59 }
 0x2ac   :  { %v2036_v13 = vsel %vm2035_vm10, %v4799_v54, %v2032_v42  ;;  %4804 = vpow2.f32 %v4319_v22 }
 0x2ad   :  { %v2041_v48 = vsel %vm2038_vm11, %v2040_v37, %v2036_v13  ;;  %v1820_v44 = vpop.f32.mrf.mxu2 }
 0x2ae   :  { %v6712_v43 = vmul.f32 %v2041_v48, %v1864_v25  ;;  %v2055_v25 = vor.u32 1.1754944e-38, %v2054_v31  ;;  %v1849_v52 = vmul.f32 %v6604_v58, %v1820_v44  ;;  %v2297_v31 = vld [vmem:[#allocation3 + $0x9] sm:$0xff]  ;;  %v2298_v44 = vld [vmem:[#allocation3 + $0x11] sm:$0xff] }
 0x2af   :  { %v4803_v57 = vpop.eup %4802 }
 0x2b0   :  { %8463 = vst [vmem:[#allocation26_spill] sm:$0xff] %v6712_v43  ;;  %v2044_v6 = vmul.f32 %v4803_v57, %v1929_v36  ;;  %vm2049_vm12 = vweird.f32 %v4803_v57  ;;  %v6722_v60 = vadd.f32 %v6607_v56, %v1849_v52  ;;  %v2239_v36 = vld [vmem:[#allocation3 + $0x7] sm:$0xff] }
 0x2b1   :  { %2228 = vst [vmem:[#allocation3 + $0x40] sm:$0xff] %v6712_v43  ;;  %vm2050_vm14 = vmor %vm2048_vm13, %vm2049_vm12 }
 0x2b2   :  { %v2045_v47 = vsub.f32 1.0, %v2044_v6  ;;  %v4805_v39 = vpop.eup %4804  ;;  %v4320_v2 = vmul.f32 -1.442695, %v6722_v60  ;;  %v6727_v6 = vperm.slane %v6621_v21, 2 }
 0x2b3   :  { %v1930_v50 = vadd.f32 1.0, %v4805_v39  ;;  %v8465_v39 = vld [vmem:[#allocation18_spill] sm:$0xff] }
 0x2b4   :  { %v2046_v41 = vmul.f32 %v4803_v57, %v2045_v47 }
 0x2b5   :  { %4806 = vrcp.f32 %v1930_v50  ;;  %v2069_v13 = vand.u32 2147483648, %v1930_v50  ;;  %v2067_v48 = vand.u32 2147483647, %v1930_v50  ;;  %vm2063_vm1 = vweird.f32 %v1930_v50 }
 0x2b6   :  { %v2047_v8 = vadd.f32 %v4803_v57, %v2046_v41  ;;  %4808 = vpow2.f32 %v4320_v2 }
 0x2b7   :  { %v2070_v22 = vor.u32 1.1754944e-38, %v2069_v13  ;;  %vm2068_vm3 = vcmp.eq.f32.partialorder %v2067_v48, 8.507059e+37  ;;  %v8466_v13 = vld [vmem:[#allocation20_spill] sm:$0xff] }
 0x2b8   :  { %v2051_v27 = vsel %vm2050_vm14, %v4803_v57, %v2047_v8  ;;  %v2248_v57 = vmul.f32 %v6626_v10, %v2239_v36 }
 0x2b9   :  { %v2056_v54 = vsel %vm2053_vm15, %v2055_v25, %v2051_v27  ;;  %v1823_v27 = vpop.f32.mrf.mxu2 }
 0x2ba   :  { %v6717_v55 = vmul.f32 %v2056_v54, %v1865_v23  ;;  %v6734_v54 = vmul.f32 %v2248_v57, %v8465_v39  ;;  %v1850_v52 = vmul.f32 %v6604_v58, %v1823_v27  ;;  %v6755_v57 = vperm.slane %v6621_v21, 5 }
 0x2bb   :  { %v4807_v42 = vpop.eup %4806  ;;  %v2307_v27 = vmul.f32 %v6727_v6, %v2298_v44 }
 0x2bc   :  { %8464 = vst [vmem:[#allocation28_spill] sm:$0xff] %v6717_v55  ;;  %v2059_v3 = vmul.f32 %v4807_v42, %v1930_v50  ;;  %vm2064_vm0 = vweird.f32 %v4807_v42  ;;  %v4809_v61 = vpop.eup %4808  ;;  %v2306_v50 = vmul.f32 %v6727_v6, %v2297_v31  ;;  %v2264_v2 = vadd.f32 %v6734_v54, %v2231_v11 }
 0x2bd   :  { %2229 = vst [vmem:[#allocation3 + $0x48] sm:$0xff] %v6717_v55  ;;  %vm2065_vm2 = vmor %vm2063_vm1, %vm2064_vm0  ;;  %v1931_v47 = vadd.f32 1.0, %v4809_v61  ;;  %v6758_v31 = vperm.slane %v6621_v21, 6 }
 0x2be   :  { %v2060_v37 = vsub.f32 1.0, %v2059_v3  ;;  %v6747_v3 = vadd.f32 %v6607_v56, %v1850_v52  ;;  %v2314_v36 = vmul.f32 %v2306_v50, %v8466_v13 }
 0x2bf   :  { %4810 = vrcp.f32 %v1931_v47  ;;  %v2084_v11 = vand.u32 2147483648, %v1931_v47  ;;  %v2082_v52 = vand.u32 2147483647, %v1931_v47  ;;  %vm2078_vm5 = vweird.f32 %v1931_v47 }
 0x2c0   :  { %v2061_v23 = vmul.f32 %v4807_v42, %v2060_v37 }
 0x2c1   :  { %vm2083_vm7 = vcmp.eq.f32.partialorder %v2082_v52, 8.507059e+37 }
 0x2c2   :  { %v2062_v29 = vadd.f32 %v4807_v42, %v2061_v23  ;;  %v4321_v23 = vmul.f32 -1.442695, %v6747_v3 }
 0x2c4   :  { %v2066_v41 = vsel %vm2065_vm2, %v4807_v42, %v2062_v29  ;;  %v4990_v42 = vld [vmem:[#allocation3] sm:$0xff]  ;;  %4812 = vpow2.f32 %v4321_v23 }
 0x2c5   :  { %v2071_v8 = vsel %vm2068_vm3, %v2070_v22, %v2066_v41  ;;  %v6741_v59 = vmul.f32 %v4990_v42, %v6634_v18  ;;  %v4811_v37 = vpop.eup %4810  ;;  %v2384_v42 = vmul.f32 %v6758_v31, %v6648_v45 }
 0x2c6   :  { %v6731_v25 = vmul.f32 %v2071_v8, %v1866_v16  ;;  %v6744_v16 = vperm.slane %v6621_v21, 3  ;;  %v2074_v48 = vmul.f32 %v4811_v37, %v1931_v47  ;;  %vm2079_vm4 = vweird.f32 %v4811_v37 }
 0x2c7   :  { %v2289_v61 = vadd.f32 %v6741_v59, %v2264_v2  ;;  %vm2080_vm6 = vmor %vm2078_vm5, %vm2079_vm4  ;;  %v2392_v1 = vmul.f32 %v2384_v42, %v8465_v39 }
 0x2c8   :  { %2702 = vst [vmem:[#allocation3 + $0x10] sm:$0xff] %v6731_v25  ;;  %v2332_v29 = vmul.f32 %v6744_v16, %v6623_v35  ;;  %v2075_v22 = vsub.f32 1.0, %v2074_v48  ;;  %v2358_v35 = vmul.f32 %v6755_v57, %v2298_v44  ;;  %v2333_v47 = vmul.f32 %v6744_v16, %v6648_v45 }
 0x2c9   :  { %v2322_v41 = vadd.f32 %v2314_v36, %v2289_v61 }
 0x2ca   :  { %v2076_v50 = vmul.f32 %v4811_v37, %v2075_v22  ;;  %v2340_v2 = vmul.f32 %v2332_v29, %v8465_v39  ;;  %v4813_v48 = vpop.eup %4812  ;;  %v2085_v22 = vor.u32 1.1754944e-38, %v2084_v11  ;;  %v2366_v55 = vmul.f32 %v2358_v35, %v8466_v13  ;;  %v8467_v29 = vld [vmem:[#allocation24_spill] sm:$0xff] }
 0x2cb   :  { %v2315_v46 = vmul.f32 %v2307_v27, %v8467_v29  ;;  %v1932_v19 = vadd.f32 1.0, %v4813_v48  ;;  %v1825_v27 = vpop.f32.mrf.mxu2 }
 0x2cc   :  { %v2077_v23 = vadd.f32 %v4811_v37, %v2076_v50  ;;  %v2348_v61 = vadd.f32 %v2340_v2, %v2322_v41  ;;  %v6777_v41 = vld [vmem:[#allocation3 + $0x19] sm:$0xff] }
 0x2cd   :  { %4814 = vrcp.f32 %v1932_v19  ;;  %v2323_v2 = vadd.f32 %v2315_v46, %v6646_v20  ;;  %v2308_v35 = vmul.f32 %v6727_v6, %v6777_v41  ;;  %v2385_v20 = vmul.f32 %v6758_v31, %v6664_v4 }
 0x2ce   :  { %v2081_v44 = vsel %vm2080_vm6, %v4811_v37, %v2077_v23  ;;  %v2374_v63 = vadd.f32 %v2366_v55, %v2348_v61  ;;  %v2411_v37 = vmul.f32 %v6770_v24, %v6636_v62  ;;  %v1851_v55 = vmul.f32 %v6604_v58, %v1825_v27 }
 0x2cf   :  { %v6760_v8 = vld [vmem:[#allocation3 + $0xf] sm:$0xff]  ;;  %v2086_v50 = vsel %vm2083_vm7, %v2085_v22, %v2081_v44  ;;  %v2359_v62 = vmul.f32 %v6755_v57, %v6777_v41  ;;  %v2393_v27 = vmul.f32 %v2385_v20, %v8461_v15  ;;  %vm2093_vm9 = vweird.f32 %v1932_v19 }
 0x2d0   :  { %v2727_v36 = vmul.f32 %v6760_v8, %v6626_v10  ;;  %v6780_v21 = vmul.f32 %v2086_v50, %v6722_v60  ;;  %v2400_v52 = vadd.f32 %v2392_v1, %v2374_v63  ;;  %v2341_v60 = vmul.f32 %v2333_v47, %v8461_v15 }
 0x2d1   :  { %v2759_v63 = vmul.f32 %v6634_v18, %v6731_v25  ;;  %v6798_v46 = vadd.f32 %v6607_v56, %v1851_v55  ;;  %v2367_v22 = vmul.f32 %v2359_v62, %v8467_v29  ;;  %v2316_v47 = vmul.f32 %v2308_v35, %v8444_v38 }
 0x2d2   :  { %v2735_v11 = vmul.f32 %v2727_v36, %v8461_v15  ;;  %2703 = vst [vmem:[#allocation3 + $0x18] sm:$0xff] %v6780_v21  ;;  %v2711_v45 = vmul.f32 %v6631_v53, %v6780_v21  ;;  %v6793_v42 = vadd.f32 %v2411_v37, %v2400_v52  ;;  %v2349_v36 = vadd.f32 %v2341_v60, %v2323_v2 }
 0x2d3   :  { %v4815_v1 = vpop.eup %4814  ;;  %v4322_v61 = vmul.f32 -1.442695, %v6798_v46  ;;  %v2334_v52 = vmul.f32 %v6744_v16, %v6664_v4  ;;  %v2412_v2 = vmul.f32 %v6770_v24, %v6652_v26  ;;  %v2099_v55 = vand.u32 2147483648, %v1932_v19 }
 0x2d4   :  { %v2743_v23 = vadd.f32 %v2735_v11, %v2711_v45  ;;  %v2089_v44 = vmul.f32 %v4815_v1, %v1932_v19  ;;  %v2375_v50 = vadd.f32 %v2367_v22, %v2349_v36  ;;  %v6809_v11 = vld [vmem:[#allocation3 + $0x21] sm:$0xff]  ;;  %vm2094_vm8 = vweird.f32 %v4815_v1 }
 0x2d5   :  { %4816 = vpow2.f32 %v4322_v61  ;;  %v2309_v62 = vmul.f32 %v6727_v6, %v6809_v11  ;;  %v2342_v61 = vmul.f32 %v2334_v52, %v5780_v30  ;;  %vm2095_vm10 = vmor %vm2093_vm9, %vm2094_vm8  ;;  %v2100_v22 = vor.u32 1.1754944e-38, %v2099_v55 }
 0x2d6   :  { %v6804_v48 = vadd.f32 %v2759_v63, %v2743_v23  ;;  %v2090_v37 = vsub.f32 1.0, %v2089_v44  ;;  %v2097_v23 = vand.u32 2147483647, %v1932_v19  ;;  %v2401_v35 = vadd.f32 %v2393_v27, %v2375_v50 }
 0x2d7   :  { %v2324_v63 = vadd.f32 %v2316_v47, %v6662_v40  ;;  %v2360_v44 = vmul.f32 %v6755_v57, %v6809_v11  ;;  %v2386_v40 = vmul.f32 %v6758_v31, %v6680_v7 }
 0x2d8   :  { %v2091_v60 = vmul.f32 %v4815_v1, %v2090_v37  ;;  %v6823_v20 = vadd.f32 %v2412_v2, %v2401_v35  ;;  %vm2098_vm11 = vcmp.eq.f32.partialorder %v2097_v23, 8.507059e+37  ;;  %v2317_v37 = vmul.f32 %v2309_v62, %v8445_v49  ;;  %v1828_v23 = vpop.f32.mrf.mxu2 }
 0x2d9   :  { %v6816_v45 = vld [vmem:[#allocation3 + $0x17] sm:$0xff]  ;;  %v2350_v19 = vadd.f32 %v2342_v61, %v2324_v63  ;;  %v2368_v2 = vmul.f32 %v2360_v44, %v8444_v38  ;;  %v2394_v63 = vmul.f32 %v2386_v40, %v5780_v30  ;;  %v2710_v61 = vmul.f32 %v6631_v53, %v6731_v25 }
 0x2da   :  { %v2092_v36 = vadd.f32 %v4815_v1, %v2091_v60  ;;  %v2728_v4 = vmul.f32 %v6816_v45, %v6626_v10  ;;  %v2335_v60 = vmul.f32 %v6744_v16, %v6680_v7  ;;  %v2760_v44 = vmul.f32 %v6634_v18, %v6780_v21 }
 0x2db   :  { %v4817_v26 = vpop.eup %4816  ;;  %v2376_v35 = vadd.f32 %v2368_v2, %v2350_v19  ;;  %v2387_v2 = vmul.f32 %v6758_v31, %v6696_v14 }
 0x2dc   :  { %v2096_v47 = vsel %vm2095_vm10, %v4815_v1, %v2092_v36  ;;  %v6830_v50 = vadd.f32 1.0, %v4817_v26  ;;  %v2736_v55 = vmul.f32 %v2728_v4, %v5780_v30  ;;  %v6841_v1 = vld [vmem:[#allocation3 + $0x29] sm:$0xff]  ;;  %v2413_v36 = vmul.f32 %v6770_v24, %v6668_v0 }
 0x2dd   :  { %v2101_v27 = vsel %vm2098_vm11, %v2100_v22, %v2096_v47  ;;  %v2774_v4 = vld [vmem:[#allocation3 + $0x9] sm:$0xff]  ;;  %v1852_v26 = vmul.f32 %v6604_v58, %v1828_v23  ;;  %v2402_v7 = vadd.f32 %v2394_v63, %v2376_v35  ;;  %v2361_v40 = vmul.f32 %v6755_v57, %v6841_v1  ;;  %v6872_v63 = vld [vmem:[#allocation3 + $0x11] sm:$0xff] }
 0x2de   :  { %v6835_v52 = vmul.f32 %v2101_v27, %v6747_v3  ;;  %4818 = vrcp.f32 %v6830_v50  ;;  %v2325_v3 = vadd.f32 %v2317_v37, %v6678_v9  ;;  %v2343_v47 = vmul.f32 %v2335_v60, %v8436_v28 }
 0x2df   :  { %v6859_v9 = vadd.f32 %v6607_v56, %v1852_v26  ;;  %v6861_v0 = vadd.f32 %v2413_v36, %v2402_v7  ;;  %v2782_v37 = vmul.f32 %v2774_v4, %v6727_v6  ;;  %v2369_v25 = vmul.f32 %v2361_v40, %v8445_v49 }
 0x2e0   :  { %2704 = vst [vmem:[#allocation3 + $0x20] sm:$0xff] %v6835_v52  ;;  %v2712_v62 = vmul.f32 %v6631_v53, %v6835_v52  ;;  %v2742_v35 = vadd.f32 %v2710_v61, %v6734_v54  ;;  %v2114_v7 = vand.u32 2147483648, %v6830_v50  ;;  %v2112_v54 = vand.u32 2147483647, %v6830_v50 }
 0x2e1   :  { %v4323_v60 = vmul.f32 -1.442695, %v6859_v9  ;;  %v2790_v4 = vmul.f32 %v2782_v37, %v8466_v13  ;;  %v2414_v61 = vmul.f32 %v6770_v24, %v6684_v33  ;;  %vm2108_vm13 = vweird.f32 %v6830_v50 }
 0x2e2   :  { %v2744_v22 = vadd.f32 %v2736_v55, %v2712_v62  ;;  %v2351_v55 = vadd.f32 %v2343_v47, %v2325_v3  ;;  %v2807_v3 = vmul.f32 %v6760_v8, %v6744_v16  ;;  %v2766_v40 = vadd.f32 %v2742_v35, %v6741_v59 }
 0x2e3   :  { %4820 = vpow2.f32 %v4323_v60  ;;  %v2832_v47 = vmul.f32 %v6872_v63, %v6755_v57  ;;  %vm2113_vm15 = vcmp.eq.f32.partialorder %v2112_v54, 8.507059e+37 }
 0x2e4   :  { %v4819_v19 = vpop.eup %4818  ;;  %v6864_v27 = vadd.f32 %v2760_v44, %v2744_v22  ;;  %v2377_v36 = vadd.f32 %v2369_v25, %v2351_v55  ;;  %v2395_v22 = vmul.f32 %v2387_v2, %v8436_v28  ;;  %v2798_v8 = vadd.f32 %v2790_v4, %v2766_v40 }
 0x2e5   :  { %v2104_v23 = vmul.f32 %v4819_v19, %v6830_v50  ;;  %vm2109_vm12 = vweird.f32 %v4819_v19  ;;  %v2115_v55 = vor.u32 1.1754944e-38, %v2114_v7  ;;  %v2815_v59 = vmul.f32 %v2807_v3, %v8465_v39 }
 0x2e6   :  { %v2403_v37 = vadd.f32 %v2395_v22, %v2377_v36  ;;  %vm2110_vm14 = vmor %vm2108_vm13, %vm2109_vm12  ;;  %v2761_v40 = vmul.f32 %v6634_v18, %v6835_v52 }
 0x2e7   :  { %v2105_v62 = vsub.f32 1.0, %v2104_v23  ;;  %v6875_v26 = vld [vmem:[#allocation3 + $0x1f] sm:$0xff]  ;;  %v6890_v23 = vld [vmem:[#allocation8 + $0x11] ss:$0 sm:$0xff] }
 0x2e8   :  { %v2729_v2 = vmul.f32 %v6875_v26, %v6626_v10  ;;  %v6892_v60 = vadd.f32 %v2414_v61, %v2403_v37  ;;  %v2429_v50 = vmul.f32 %v6890_v23, %v6777_v41  ;;  %v2430_v61 = vmul.f32 %v6890_v23, %v6809_v11 }
 0x2e9   :  { %v2106_v44 = vmul.f32 %v4819_v19, %v2105_v62  ;;  %v4821_v33 = vpop.eup %4820  ;;  %v2840_v62 = vmul.f32 %v2832_v47, %v8466_v13  ;;  %v2857_v41 = vmul.f32 %v6816_v45, %v6758_v31  ;;  %v2310_v47 = vmul.f32 %v6727_v6, %v6841_v1 }
 0x2ea   :  { %v1934_v22 = vadd.f32 1.0, %v4821_v33  ;;  %v2737_v7 = vmul.f32 %v2729_v2, %v8436_v28  ;;  %v2437_v3 = vmul.f32 %v2429_v50, %v8466_v13  ;;  %v2438_v37 = vmul.f32 %v2430_v61, %v8467_v29 }
 0x2eb   :  { %v2107_v25 = vadd.f32 %v4819_v19, %v2106_v44  ;;  %v2823_v44 = vadd.f32 %v2815_v59, %v2798_v8  ;;  %v2865_v11 = vmul.f32 %v2857_v41, %v8465_v39  ;;  %v2883_v8 = vmul.f32 %v6770_v24, %v6780_v21 }
 0x2ec   :  { %4822 = vrcp.f32 %v1934_v22  ;;  %v2445_v33 = vadd.f32 %v2437_v3, %v6793_v42  ;;  %v2446_v39 = vadd.f32 %v2438_v37, %v6823_v20  ;;  %v2129_v21 = vand.u32 2147483648, %v1934_v22  ;;  %v1830_v20 = vpop.f32.mrf.mxu2 }
 0x2ed   :  { %v2111_v35 = vsel %vm2110_vm14, %v4819_v19, %v2107_v25  ;;  %v2848_v54 = vadd.f32 %v2840_v62, %v2823_v44  ;;  %v2318_v62 = vmul.f32 %v2310_v47, %v5987_v51  ;;  %v2336_v44 = vmul.f32 %v6744_v16, %v6696_v14 }
 0x2ee   :  { %v2116_v36 = vsel %vm2113_vm15, %v2115_v55, %v2111_v35  ;;  %v6920_v55 = vld [vmem:[#allocation10 + $0x8] ss:$0 sm:$0xff]  ;;  %vm2123_vm1 = vweird.f32 %v1934_v22 }
 0x2ef   :  { %v6899_v4 = vmul.f32 %v2116_v36, %v6798_v46  ;;  %v2873_v59 = vadd.f32 %v2865_v11, %v2848_v54  ;;  %v6924_v36 = vld [vmem:[#allocation3 + $0x31] sm:$0xff]  ;;  %v2454_v42 = vmul.f32 %v6920_v55, %v2445_v33  ;;  %v2127_v54 = vand.u32 2147483647, %v1934_v22 }
 0x2f0   :  { %v2362_v41 = vmul.f32 %v6755_v57, %v6924_v36  ;;  %v1853_v11 = vmul.f32 %v6604_v58, %v1830_v20  ;;  %v2344_v37 = vmul.f32 %v2336_v44, %v5926_v34  ;;  %v2311_v44 = vmul.f32 %v6727_v6, %v6924_v36 }
 0x2f1   :  { %2705 = vst [vmem:[#allocation3 + $0x28] sm:$0xff] %v6899_v4  ;;  %v2713_v19 = vmul.f32 %v6631_v53, %v6899_v4  ;;  %v6926_v50 = vadd.f32 %v2883_v8, %v2873_v59  ;;  %v2130_v8 = vor.u32 1.1754944e-38, %v2129_v21  ;;  %v2245_v59 = vld [vmem:[#allocation3 + $0x37] sm:$0xff]  ;;  %vm2128_vm3 = vcmp.eq.f32.partialorder %v2127_v54, 8.507059e+37 }
 0x2f2   :  { %v4823_v2 = vpop.eup %4822  ;;  %v2388_v54 = vmul.f32 %v6758_v31, %v2245_v59 }
 0x2f3   :  { %v2745_v46 = vadd.f32 %v2737_v7, %v2713_v19  ;;  %v2119_v35 = vmul.f32 %v4823_v2, %v1934_v22  ;;  %v6933_v19 = vld [vmem:[#allocation10 + $0x9] ss:$0 sm:$0xff]  ;;  %vm2124_vm0 = vweird.f32 %v4823_v2  ;;  %v6950_v22 = vadd.f32 %v6607_v56, %v1853_v11  ;;  %v6975_v11 = vld [vmem:[#allocation10 + $0x6] ss:$0 sm:$0xff] }
 0x2f4   :  { %vm2125_vm2 = vmor %vm2123_vm1, %vm2124_vm0  ;;  %v6945_v33 = vadd.f32 %v6933_v19, %v2454_v42  ;;  %v2254_v56 = vmul.f32 %v6626_v10, %v2245_v59 }
 0x2f5   :  { %v6916_v25 = vadd.f32 %v2761_v40, %v2745_v46  ;;  %v2120_v7 = vsub.f32 1.0, %v2119_v35  ;;  %v2326_v46 = vadd.f32 %v2318_v62, %v6694_v12  ;;  %v2455_v40 = vmul.f32 %v6920_v55, %v2446_v39 }
 0x2f6   :  { %8468 = vst [vmem:[#allocation19_spill] sm:$0xff] %v6945_v33  ;;  %v2431_v12 = vmul.f32 %v6890_v23, %v6841_v1  ;;  %v2370_v62 = vmul.f32 %v2362_v41, %v5987_v51  ;;  %v4327_v42 = vmul.f32 -1.442695, %v6945_v33  ;;  %v2783_v41 = vmul.f32 %v6872_v63, %v6727_v6 }
 0x2f7   :  { %v2121_v3 = vmul.f32 %v4823_v2, %v2120_v7  ;;  %v2352_v39 = vadd.f32 %v2344_v37, %v2326_v46  ;;  %v6954_v7 = vadd.f32 %v6933_v19, %v2455_v40  ;;  %v1833_v40 = vpop.f32.mrf.mxu2  ;;  %v2396_v63 = vmul.f32 %v2388_v54, %v5926_v34 }
 0x2f8   :  { %v6931_v61 = vld [vmem:[#allocation3 + $0x27] sm:$0xff]  ;;  %v1854_v37 = vmul.f32 %v6975_v11, %v1833_v40  ;;  %v2776_v40 = vld [vmem:[#allocation3 + $0x19] sm:$0xff] }
 0x2f9   :  { %v2122_v47 = vadd.f32 %v4823_v2, %v2121_v3  ;;  %v2730_v14 = vmul.f32 %v6931_v61, %v6626_v10  ;;  %8469 = vst [vmem:[#allocation30_spill] sm:$0xff] %v6954_v7  ;;  %v2439_v3 = vmul.f32 %v2431_v12, %v8444_v38  ;;  %v2378_v46 = vadd.f32 %v2370_v62, %v2352_v39 }
 0x2fa   :  { %v4328_v20 = vmul.f32 -1.442695, %v6954_v7  ;;  %v2319_v12 = vmul.f32 %v2311_v44, %v8449_v32  ;;  %v2262_v39 = vmul.f32 %v2254_v56, %v6068_v5 }
 0x2fb   :  { %v2126_v35 = vsel %vm2125_vm2, %v4823_v2, %v2122_v47  ;;  %v2738_v1 = vmul.f32 %v2730_v14, %v5926_v34  ;;  %v4324_v2 = vmul.f32 -1.442695, %v6950_v22  ;;  %v2762_v14 = vmul.f32 %v6634_v18, %v6899_v4 }
 0x2fc   :  { %v2131_v58 = vsel %vm2128_vm3, %v2130_v8, %v2126_v35  ;;  %v2427_v8 = vld [vmem:[#allocation3 + $0x51] sm:$0xff]  ;;  %v2415_v35 = vmul.f32 %v6770_v24, %v6700_v17  ;;  %v2447_v62 = vadd.f32 %v2439_v3, %v6861_v0  ;;  %v2237_v34 = vmul.f32 %v6631_v53, %v6712_v43 }
 0x2fd   :  { %v6959_v21 = vmul.f32 %v2131_v58, %v6859_v9  ;;  %4824 = vpow2.f32 %v4324_v2  ;;  %v2791_v58 = vmul.f32 %v2783_v41, %v8467_v29  ;;  %v2404_v2 = vadd.f32 %v2396_v63, %v2378_v46  ;;  %v8471_v41 = vld [vmem:[#allocation29_spill] sm:$0xff] }
 0x2fe   :  { %4826 = vpow2.f32 %v4327_v42  ;;  %v2436_v54 = vmul.f32 %v6890_v23, %v2427_v8  ;;  %v2808_v0 = vmul.f32 %v6816_v45, %v6744_v16  ;;  %v4992_v42 = vld [vmem:[#allocation10 + $0x7] ss:$0 sm:$0xff]  ;;  %v2327_v46 = vadd.f32 %v2319_v12, %v8471_v41 }
 0x2ff   :  { %2706 = vst [vmem:[#allocation3 + $0x30] sm:$0xff] %v6959_v21  ;;  %v2714_v9 = vmul.f32 %v6631_v53, %v6959_v21  ;;  %4828 = vpow2.f32 %v4328_v20  ;;  %v6993_v56 = vadd.f32 %v4992_v42, %v1854_v37  ;;  %v6995_v3 = vadd.f32 %v2415_v35, %v2404_v2  ;;  %v8473_v37 = vld [vmem:[#allocation39_spill] sm:$0xff] }
 0x300   :  { %v2270_v20 = vadd.f32 %v2262_v39, %v2237_v34  ;;  %v2833_v63 = vmul.f32 %v2776_v40, %v6755_v57  ;;  %v2784_v45 = vmul.f32 %v2776_v40, %v6727_v6  ;;  %v7007_v35 = vmul.f32 %v2436_v54, %v8473_v37 }
 0x301   :  { %v2746_v47 = vadd.f32 %v2738_v1, %v2714_v9  ;;  %v2337_v9 = vmul.f32 %v6744_v16, %v2245_v59  ;;  %v2456_v59 = vmul.f32 %v6920_v55, %v2447_v62  ;;  %v2287_v12 = vmul.f32 %v6634_v18, %v6700_v17 }
 0x302   :  { %8474 = vst [vmem:[#allocation36_spill] sm:$0xff] %v7007_v35  ;;  %v2816_v62 = vmul.f32 %v2808_v0, %v8461_v15  ;;  %v4325_v34 = vmul.f32 -1.442695, %v6993_v56  ;;  %v7019_v2 = vmul.f32 %v6634_v18, %v6712_v43  ;;  %v2809_v35 = vmul.f32 %v6875_v26, %v6744_v16  ;;  %v1835_v43 = vpop.f32.mrf.mxu2 }
 0x303   :  { %v6985_v1 = vadd.f32 %v2762_v14, %v2746_v47  ;;  %v4825_v44 = vpop.eup %4824  ;;  %v2799_v14 = vadd.f32 %v2791_v58, %v6804_v48  ;;  %v7015_v58 = vld [vmem:[#allocation3 + $0x39] sm:$0xff]  ;;  %v7023_v54 = vadd.f32 %v6933_v19, %v2456_v59  ;;  %v7027_v17 = vadd.f32 %v2287_v12, %v2270_v20  ;;  %v7045_v12 = vld [vmem:[#allocation3 + $0x21] sm:$0xff] }
 0x304   :  { %v6998_v47 = vadd.f32 1.0, %v4825_v44  ;;  %v4827_v8 = vpop.eup %4826  ;;  %v7025_v44 = vld [vmem:[#allocation3 + $0x3f] sm:$0xff]  ;;  %v2432_v59 = vmul.f32 %v6890_v23, %v6924_v36  ;;  %v2312_v20 = vmul.f32 %v6727_v6, %v7015_v58  ;;  %v2884_v36 = vmul.f32 %v6770_v24, %v6835_v52 }
 0x305   :  { %8470 = vst [vmem:[#allocation32_spill] sm:$0xff] %v6985_v1  ;;  %v8472_v1 = vld [vmem:[#allocation34_spill] sm:$0xff]  ;;  %v4829_v48 = vpop.eup %4828  ;;  %v2824_v0 = vadd.f32 %v2816_v62, %v2799_v14  ;;  %v7029_v41 = vadd.f32 1.0, %v4827_v8 }
 0x306   :  { %v2345_v7 = vmul.f32 %v2337_v9, %v8472_v1  ;;  %4830 = vrcp.f32 %v6998_v47  ;;  %v2900_v9 = vmul.f32 %v6890_v23, %v2776_v40  ;;  %8476 = vst [vmem:[#allocation35_spill] sm:$0xff] %v7023_v54  ;;  %v2858_v40 = vmul.f32 %v6875_v26, %v6758_v31 }
 0x307   :  { %8477 = vst [vmem:[#allocation40_spill] sm:$0xff] %v7025_v44  ;;  %v7041_v14 = vadd.f32 1.0, %v4829_v48  ;;  %4832 = vpow2.f32 %v4325_v34  ;;  %v1855_v34 = vmul.f32 %v6975_v11, %v1835_v43  ;;  %v2144_v43 = vand.u32 2147483648, %v6998_v47 }
 0x308   :  { %v7013_v39 = vadd.f32 %v2345_v7, %v2327_v46  ;;  %v2841_v7 = vmul.f32 %v2833_v63, %v8467_v29  ;;  %v2792_v46 = vmul.f32 %v2784_v45, %v8444_v38  ;;  %v2255_v45 = vmul.f32 %v6626_v10, %v7025_v44 }
 0x309   :  { %v2908_v62 = vmul.f32 %v2900_v9, %v8466_v13  ;;  %v2866_v26 = vmul.f32 %v2858_v40, %v8461_v15  ;;  %4834 = vrcp.f32 %v7029_v41  ;;  %v2440_v13 = vmul.f32 %v2432_v59, %v8445_v49  ;;  %v7063_v40 = vld [vmem:[#allocation3 + $0x2f] sm:$0xff] }
 0x30a   :  { %8475 = vst [vmem:[#allocation27_spill] sm:$0xff] %v7013_v39  ;;  %v2849_v8 = vadd.f32 %v2841_v7, %v2824_v0  ;;  %v4329_v39 = vmul.f32 -1.442695, %v7023_v54  ;;  %v2800_v0 = vadd.f32 %v2792_v46, %v6864_v27  ;;  %v2817_v7 = vmul.f32 %v2809_v35, %v5780_v30 }
 0x30b   :  { %v2834_v15 = vmul.f32 %v7045_v12, %v6755_v57  ;;  %4836 = vrcp.f32 %v7041_v14  ;;  %v7061_v52 = vadd.f32 %v4992_v42, %v1855_v34  ;;  %v2916_v54 = vadd.f32 %v2908_v62, %v6926_v50 }
 0x30c   :  { %v4831_v63 = vpop.eup %4830  ;;  %v2874_v33 = vadd.f32 %v2866_v26, %v2849_v8  ;;  %4838 = vpow2.f32 %v4329_v39  ;;  %v2142_v46 = vand.u32 2147483647, %v6998_v47  ;;  %vm2138_vm5 = vweird.f32 %v6998_v47 }
 0x30d   :  { %v2134_v48 = vmul.f32 %v4831_v63, %v6998_v47  ;;  %v4833_v11 = vpop.eup %4832  ;;  %vm2139_vm4 = vweird.f32 %v4831_v63  ;;  %v4326_v59 = vmul.f32 -1.442695, %v7061_v52  ;;  %v2859_v8 = vmul.f32 %v6931_v61, %v6758_v31 }
 0x30e   :  { %v7067_v27 = vadd.f32 %v2884_v36, %v2874_v33  ;;  %v7072_v42 = vadd.f32 1.0, %v4833_v11  ;;  %v2448_v50 = vadd.f32 %v2440_v13, %v6892_v60  ;;  %v2731_v39 = vmul.f32 %v7063_v40, %v6626_v10  ;;  %v8479_v36 = vld [vmem:[#allocation37_spill] sm:$0xff]  ;;  %vm2140_vm6 = vmor %vm2138_vm5, %vm2139_vm4  ;;  %v7090_v13 = vld [vmem:[#allocation3 + $0x41] sm:$0xff] }
 0x30f   :  { %v2135_v9 = vsub.f32 1.0, %v2134_v48  ;;  %v7077_v62 = vpop.eup %4834  ;;  %v2842_v26 = vmul.f32 %v2834_v15, %v8444_v38  ;;  %4840 = vpow2.f32 %v4326_v59  ;;  %v2263_v48 = vmul.f32 %v2255_v45, %v8479_v36  ;;  %v8480_v59 = vld [vmem:[#allocation28_spill] sm:$0xff]  ;;  %v8481_v38 = vld [vmem:[#allocation38_spill] sm:$0xff] }
 0x310   :  { %8478 = vst [vmem:[#allocation21_spill] sm:$0xff] %v7067_v27  ;;  %v2825_v34 = vadd.f32 %v2817_v7, %v2800_v0  ;;  %v2145_v47 = vor.u32 1.1754944e-38, %v2144_v43  ;;  %4842 = vrcp.f32 %v7072_v42  ;;  %v7088_v60 = vmul.f32 %v6744_v16, %v7025_v44  ;;  %v7095_v0 = vld [vmem:[#allocation3 + $0x47] sm:$0xff] }
 0x311   :  { %v2136_v35 = vmul.f32 %v4831_v63, %v2135_v9  ;;  %v7084_v9 = vpop.eup %4836  ;;  %v2924_v11 = vmul.f32 %v6920_v55, %v2916_v54  ;;  %vm2143_vm7 = vcmp.eq.f32.partialorder %v2142_v46, 8.507059e+37  ;;  %v2238_v45 = vmul.f32 %v6631_v53, %v8480_v59 }
 0x312   :  { %v4839_v15 = vpop.eup %4838  ;;  %v2850_v43 = vadd.f32 %v2842_v26, %v2825_v34  ;;  %v2867_v10 = vmul.f32 %v2859_v8, %v5780_v30  ;;  %v7099_v27 = vmul.f32 %v2312_v20, %v8481_v38  ;;  %v2739_v54 = vmul.f32 %v2731_v39, %v8472_v1  ;;  %v7120_v39 = vld [vmem:[#allocation3 + $0x49] sm:$0xff] }
 0x313   :  { %v2137_v33 = vadd.f32 %v4831_v63, %v2136_v35  ;;  %v2271_v46 = vadd.f32 %v2263_v48, %v2238_v45  ;;  %v2339_v30 = vmul.f32 %v6744_v16, %v7095_v0  ;;  %v7115_v20 = vadd.f32 %v6933_v19, %v2924_v11  ;;  %8483 = vst [vmem:[#allocation20_spill] sm:$0xff] %v7120_v39 }
 0x314   :  { %v2875_v26 = vadd.f32 %v2867_v10, %v2850_v43  ;;  %v2785_v10 = vmul.f32 %v7045_v12, %v6727_v6  ;;  %v2763_v11 = vmul.f32 %v6634_v18, %v6959_v21  ;;  %vm2508_vm9 = vweird.f32 %v7029_v41 }
 0x315   :  { %v2141_v35 = vsel %vm2140_vm6, %v4831_v63, %v2137_v33  ;;  %v2457_v63 = vmul.f32 %v6920_v55, %v2448_v50  ;;  %v2313_v33 = vmul.f32 %v6727_v6, %v7090_v13  ;;  %v4841_v34 = vpop.eup %4840  ;;  %8482 = vst [vmem:[#allocation18_spill] sm:$0xff] %v7115_v20  ;;  %vm2153_vm10 = vweird.f32 %v7072_v42 }
 0x316   :  { %v2146_v7 = vsel %vm2143_vm7, %v2145_v47, %v2141_v35  ;;  %v2885_v47 = vmul.f32 %v6770_v24, %v6899_v4  ;;  %v4843_v50 = vpop.eup %4842  ;;  %v7124_v4 = vadd.f32 1.0, %v4839_v15  ;;  %v7128_v35 = vadd.f32 1.0, %v4841_v34 }
 0x317   :  { %v7102_v44 = vmul.f32 %v2146_v7, %v6950_v22  ;;  %v2504_v22 = vmul.f32 %v7077_v62, %v7029_v41  ;;  %v2149_v7 = vmul.f32 %v4843_v50, %v7072_v42  ;;  %v7134_v43 = vadd.f32 %v6933_v19, %v2457_v63 }
 0x318   :  { %v7126_v48 = vadd.f32 %v2885_v47, %v2875_v26  ;;  %v2321_v59 = vmul.f32 %v2313_v33, %v8473_v37  ;;  %v2519_v15 = vmul.f32 %v7084_v9, %v7041_v14  ;;  %4844 = vrcp.f32 %v7128_v35 }
 0x319   :  { %2707 = vst [vmem:[#allocation3 + $0x38] sm:$0xff] %v7102_v44  ;;  %v2715_v8 = vmul.f32 %v6631_v53, %v7102_v44  ;;  %v2296_v53 = vadd.f32 %v7019_v2, %v2271_v46  ;;  %v4335_v47 = vmul.f32 -1.442695, %v7115_v20  ;;  %v2150_v34 = vsub.f32 1.0, %v2149_v7 }
 0x31a   :  { %8484 = vst [vmem:[#allocation24_spill] sm:$0xff] %v7126_v48  ;;  %v7149_v63 = vmul.f32 %v2339_v30, %v8479_v36  ;;  %v2793_v2 = vmul.f32 %v2785_v10, %v8445_v49  ;;  %v2505_v46 = vsub.f32 1.0, %v2504_v22  ;;  %v2514_v33 = vand.u32 2147483648, %v7029_v41 }
 0x31b   :  { %v2747_v45 = vadd.f32 %v2739_v54, %v2715_v8  ;;  %8485 = vst [vmem:[#allocation29_spill] sm:$0xff] %v7134_v43  ;;  %v7143_v54 = vmul.f32 %v6755_v57, %v7120_v39  ;;  %v2151_v8 = vmul.f32 %v4843_v50, %v2150_v34  ;;  %v2159_v48 = vand.u32 2147483648, %v7072_v42 }
 0x31c   :  { %4846 = vrcp.f32 %v7124_v4  ;;  %v4330_v39 = vmul.f32 -1.442695, %v7134_v43  ;;  %v7156_v18 = vadd.f32 %v2321_v59, %v2296_v53  ;;  %vm2154_vm8 = vweird.f32 %v4843_v50 }
 0x31d   :  { %v7146_v26 = vadd.f32 %v2763_v11, %v2747_v45  ;;  %v7158_v45 = vld [vmem:[#allocation3 + $0x29] sm:$0xff]  ;;  %v2520_v11 = vsub.f32 1.0, %v2519_v15  ;;  %v2157_v30 = vand.u32 2147483647, %v7072_v42  ;;  %v2810_v22 = vmul.f32 %v6931_v61, %v6744_v16  ;;  %vm2155_vm11 = vmor %vm2153_vm10, %vm2154_vm8 }
 0x31e   :  { %v2512_v10 = vand.u32 2147483647, %v7029_v41  ;;  %4848 = vpow2.f32 %v4335_v47  ;;  %v7165_v7 = vpop.eup %4844  ;;  %v2506_v34 = vmul.f32 %v7077_v62, %v2505_v46  ;;  %v7168_v53 = vor.u32 1.1754944e-38, %v2514_v33 }
 0x31f   :  { %v2152_v59 = vadd.f32 %v4843_v50, %v2151_v8  ;;  %v2801_v15 = vadd.f32 %v2793_v2, %v6916_v25  ;;  %v2835_v20 = vmul.f32 %v7158_v45, %v6755_v57  ;;  %v2160_v61 = vor.u32 1.1754944e-38, %v2159_v48 }
 0x320   :  { %4850 = vpow2.f32 %v4330_v39  ;;  %vm2509_vm12 = vweird.f32 %v7077_v62  ;;  %v2521_v47 = vmul.f32 %v7084_v9, %v2520_v11  ;;  %vm2158_vm13 = vcmp.eq.f32.partialorder %v2157_v30, 8.507059e+37 }
 0x321   :  { %v2156_v43 = vsel %vm2155_vm11, %v4843_v50, %v2152_v59  ;;  %v2818_v33 = vmul.f32 %v2810_v22, %v8436_v28  ;;  %vm2523_vm14 = vweird.f32 %v7041_v14  ;;  %v2164_v25 = vmul.f32 %v7165_v7, %v7128_v35  ;;  %vm7205_vm1 = vmor %vm2508_vm9, %vm2509_vm12 }
 0x322   :  { %v7176_v46 = vpop.eup %4846  ;;  %v2161_v42 = vsel %vm2158_vm13, %v2160_v61, %v2156_v43  ;;  %v2507_v2 = vadd.f32 %v7077_v62, %v2506_v34  ;;  %v2527_v39 = vand.u32 2147483647, %v7041_v14  ;;  %v2529_v48 = vand.u32 2147483648, %v7041_v14 }
 0x323   :  { %v7186_v8 = vmul.f32 %v2161_v42, %v6993_v56  ;;  %v2826_v11 = vadd.f32 %v2818_v33, %v2801_v15  ;;  %vm7188_vm15 = vcmp.eq.f32.partialorder %v2512_v10, 8.507059e+37  ;;  %vm2524_vm0 = vweird.f32 %v7084_v9 }
 0x324   :  { %v4849_v50 = vpop.eup %4848  ;;  %v2165_v43 = vsub.f32 1.0, %v2164_v25  ;;  %v2843_v22 = vmul.f32 %v2835_v20, %v8445_v49  ;;  %v2522_v34 = vadd.f32 %v7084_v9, %v2521_v47  ;;  %v2534_v59 = vmul.f32 %v7176_v46, %v7124_v4  ;;  %vm7223_vm3 = vmor %vm2523_vm14, %vm2524_vm0 }
 0x325   :  { %8486 = vst [vmem:[#allocation34_spill] sm:$0xff] %v7186_v8  ;;  %v2174_v56 = vand.u32 2147483648, %v7128_v35  ;;  %v2433_v10 = vmul.f32 %v6890_v23, %v7015_v58  ;;  %vm2169_vm2 = vweird.f32 %v7165_v7  ;;  %v2860_v33 = vmul.f32 %v7063_v40, %v6758_v31 }
 0x326   :  { %2708 = vst [vmem:[#allocation3 + $0x40] sm:$0xff] %v7186_v8  ;;  %v4851_v15 = vpop.eup %4850  ;;  %v2166_v20 = vmul.f32 %v7165_v7, %v2165_v43  ;;  %v2851_v47 = vadd.f32 %v2843_v22, %v2826_v11  ;;  %v2511_v42 = vsel %vm7205_vm1, %v7077_v62, %v2507_v2  ;;  %v7216_v25 = vadd.f32 1.0, %v4849_v50  ;;  %v8499_v43 = vld [vmem:[#allocation40_spill] sm:$0xff] }
 0x327   :  { %v2530_v36 = vor.u32 1.1754944e-38, %v2529_v48  ;;  %v2172_v41 = vand.u32 2147483647, %v7128_v35  ;;  %v2901_v11 = vmul.f32 %v6890_v23, %v7045_v12  ;;  %vm2168_vm4 = vweird.f32 %v7128_v35 }
 0x328   :  { %v2167_v22 = vadd.f32 %v7165_v7, %v2166_v20  ;;  %v2868_v62 = vmul.f32 %v2860_v33, %v8436_v28  ;;  %v2526_v2 = vsel %vm7223_vm3, %v7084_v9, %v2522_v34  ;;  %v2535_v48 = vsub.f32 1.0, %v2534_v59  ;;  %vm2170_vm5 = vmor %vm2168_vm4, %vm2169_vm2 }
 0x329   :  { %v7235_v14 = vadd.f32 1.0, %v4851_v15  ;;  %v2441_v50 = vmul.f32 %v2433_v10, %v5987_v51  ;;  %v2886_v61 = vmul.f32 %v6770_v24, %v6959_v21  ;;  %v2175_v20 = vor.u32 1.1754944e-38, %v2174_v56  ;;  %v7269_v15 = vld [vmem:[#allocation3 + $0x31] sm:$0xff] }
 0x32a   :  { %v2171_v12 = vsel %vm2170_vm5, %v7165_v7, %v2167_v22  ;;  %v2876_v8 = vadd.f32 %v2868_v62, %v2851_v47  ;;  %v2786_v28 = vmul.f32 %v7158_v45, %v6727_v6  ;;  %4852 = vrcp.f32 %v7216_v25 }
 0x32b   :  { %vm2173_vm6 = vcmp.eq.f32.partialorder %v2172_v41, 8.507059e+37  ;;  %v2363_v9 = vmul.f32 %v6755_v57, %v7015_v58  ;;  %vm2528_vm7 = vcmp.eq.f32.partialorder %v2527_v39, 8.507059e+37  ;;  %v2909_v35 = vmul.f32 %v2901_v11, %v8467_v29 }
 0x32c   :  { %v2176_v34 = vsel %vm2173_vm6, %v2175_v20, %v2171_v12  ;;  %v7247_v59 = vadd.f32 %v2886_v61, %v2876_v8  ;;  %v2516_v21 = vsel %vm7188_vm15, %v7168_v53, %v2511_v42  ;;  %v2531_v7 = vsel %vm2528_vm7, %v2530_v36, %v2526_v2  ;;  %v7266_v53 = vld [vmem:[#allocation3 + $0x4f] sm:$0xff]  ;;  %v7285_v42 = vpop.permute.xlu2 %2640  ;;  %v7295_v2 = vpop.permute.xlu0 %2644  ;;  %v8501_v12 = vld [vmem:[#allocation32_spill] sm:$0xff] }
 0x32d   :  { %v2536_v56 = vmul.f32 %v7176_v46, %v2535_v48  ;;  %4854 = vrcp.f32 %v7235_v14  ;;  %v2328_v10 = vadd.f32 %v7099_v27, %v7027_v17  ;;  %v2346_v58 = vmul.f32 %v7088_v60, %v6068_v5  ;;  %v8493_v27 = vld [vmem:[#allocation19_spill] sm:$0xff] }
 0x32e   :  { %v7259_v29 = vmul.f32 %v2176_v34, %v7061_v52  ;;  %v2449_v39 = vadd.f32 %v2441_v50, %v6995_v3  ;;  %v2355_v8 = vadd.f32 %v7149_v63, %v7156_v18  ;;  %v2373_v36 = vmul.f32 %v7143_v54, %v8473_v37  ;;  %v8495_v52 = vld [vmem:[#allocation30_spill] sm:$0xff]  ;;  %v8497_v3 = vld [vmem:[#allocation21_spill] sm:$0xff]  ;;  %8498 = vst [vmem:[#allocation19_spill] sm:$0xff] %v7285_v42 }
 0x32f   :  { %v2794_v30 = vmul.f32 %v2786_v28, %v5987_v51  ;;  %v2371_v17 = vmul.f32 %v2363_v9, %v8449_v32  ;;  %v7273_v60 = vmul.f32 %v2516_v21, %v8493_v27  ;;  %v7276_v47 = vmul.f32 %v2531_v7, %v8495_v52  ;;  %8500 = vst [vmem:[#allocation30_spill] sm:$0xff] %v7295_v2  ;;  %v8502_v28 = vld [vmem:[#allocation27_spill] sm:$0xff] }
 0x330   :  { %v2917_v33 = vadd.f32 %v2909_v35, %v8497_v3  ;;  %v2542_v18 = vand.u32 2147483647, %v7124_v4  ;;  %2709 = vst [vmem:[#allocation3 + $0x48] sm:$0xff] %v7259_v29  ;;  %v7281_v54 = vpop.eup %4852  ;;  %v2811_v63 = vmul.f32 %v7063_v40, %v6744_v16  ;;  %v2537_v41 = vadd.f32 %v7176_v46, %v2536_v56  ;;  %v2724_v21 = vld [vmem:[#allocation3 + $0x37] sm:$0xff] }
 0x331   :  { %8494 = vst [vmem:[#allocation39_spill] sm:$0xff] %v7273_v60  ;;  %vm2539_vm8 = vweird.f32 %v7176_v46  ;;  %v2389_v11 = vmul.f32 %v6758_v31, %v8499_v43  ;;  %v7291_v22 = vadd.f32 %v2346_v58, %v2328_v10  ;;  %v2836_v62 = vmul.f32 %v7269_v15, %v6755_v57  ;;  %v8505_v10 = vld [vmem:[#allocation33_spill] sm:$0xff] }
 0x332   :  { %8496 = vst [vmem:[#allocation38_spill] sm:$0xff] %v7276_v47  ;;  %v2544_v48 = vand.u32 2147483648, %v7124_v4  ;;  %v2458_v40 = vmul.f32 %v6920_v55, %v2449_v39  ;;  %v7301_v61 = vadd.f32 %v2373_v36, %v2355_v8  ;;  %v2802_v20 = vadd.f32 %v2794_v30, %v8501_v12 }
 0x333   :  { %v7299_v50 = vpop.eup %4854  ;;  %vm2538_vm9 = vweird.f32 %v7124_v4  ;;  %v2379_v9 = vadd.f32 %v2371_v17, %v8502_v28  ;;  %v2671_v35 = vmul.f32 %v7285_v42, %v7273_v60  ;;  %v2973_v34 = vmul.f32 %v7281_v54, %v7216_v25 }
 0x334   :  { %v2925_v7 = vmul.f32 %v6920_v55, %v2917_v33  ;;  %vm7313_vm10 = vmor %vm2538_vm9, %vm2539_vm8  ;;  %vm2543_vm11 = vcmp.eq.f32.partialorder %v2542_v18, 8.507059e+37  ;;  %v2819_v4 = vmul.f32 %v2811_v63, %v8505_v10  ;;  %v2672_v58 = vmul.f32 %v7295_v2, %v7276_v47  ;;  %v4993_v2 = vld [vmem:[#allocation3] sm:$0xff] }
 0x335   :  { %v2541_v39 = vsel %vm7313_vm10, %v7176_v46, %v2537_v41  ;;  %v2397_v8 = vmul.f32 %v2389_v11, %v8472_v1  ;;  %v2545_v36 = vor.u32 1.1754944e-38, %v2544_v48  ;;  %v2549_v30 = vmul.f32 %v7299_v50, %v7235_v14 }
 0x336   :  { %v7327_v17 = vadd.f32 %v6933_v19, %v2458_v40  ;;  %v2844_v27 = vmul.f32 %v2836_v62, %v5987_v51  ;;  %v2827_v52 = vadd.f32 %v2819_v4, %v2802_v20  ;;  %v2861_v3 = vmul.f32 %v2724_v21, %v6758_v31  ;;  %v8506_v40 = vld [vmem:[#allocation26_spill] sm:$0xff] }
 0x337   :  { %v2405_v33 = vadd.f32 %v2397_v8, %v2379_v9  ;;  %v2434_v18 = vmul.f32 %v6890_v23, %v7090_v13  ;;  %v2974_v63 = vsub.f32 1.0, %v2973_v34  ;;  %v7334_v46 = vadd.f32 %v6933_v19, %v2925_v7  ;;  %v8507_v7 = vld [vmem:[#allocation35_spill] sm:$0xff] }
 0x338   :  { %v2546_v41 = vsel %vm2543_vm11, %v2545_v36, %v2541_v39  ;;  %v2902_v43 = vmul.f32 %v6890_v23, %v7158_v45  ;;  %v2787_v11 = vmul.f32 %v7269_v15, %v6727_v6  ;;  %v7340_v48 = vadd.f32 %v2672_v58, %v2671_v35  ;;  %v8509_v36 = vld [vmem:[#allocation31_spill] sm:$0xff] }
 0x339   :  { %v2852_v62 = vadd.f32 %v2844_v27, %v2827_v52  ;;  %v2416_v12 = vmul.f32 %v6770_v24, %v8506_v40  ;;  %v2983_v28 = vand.u32 2147483648, %v7216_v25  ;;  %v2550_v9 = vsub.f32 1.0, %v2549_v30  ;;  %v7358_v52 = vpop.permute.xlu1 %2648 }
 0x33a   :  { %v4331_v34 = vmul.f32 -1.442695, %v7327_v17  ;;  %v7348_v56 = vmul.f32 %v2546_v41, %v8507_v7  ;;  %v2869_v45 = vmul.f32 %v2861_v3, %v8505_v10  ;;  %v2442_v35 = vmul.f32 %v2434_v18, %v8449_v32  ;;  %8510 = vst [vmem:[#allocation40_spill] sm:$0xff] %v7358_v52 }
 0x33b   :  { %v2424_v4 = vadd.f32 %v2416_v12, %v2405_v33  ;;  %v2975_v58 = vmul.f32 %v7281_v54, %v2974_v63  ;;  %v4336_v39 = vmul.f32 -1.442695, %v7334_v46  ;;  %v2887_v8 = vmul.f32 %v6770_v24, %v7102_v44  ;;  %v2780_v33 = vld [vmem:[#allocation3 + $0x39] sm:$0xff] }
 0x33c   :  { %8508 = vst [vmem:[#allocation21_spill] sm:$0xff] %v7348_v56  ;;  %v2910_v27 = vmul.f32 %v2902_v43, %v8509_v36  ;;  %v2795_v30 = vmul.f32 %v2787_v11, %v8449_v32  ;;  %v2877_v41 = vadd.f32 %v2869_v45, %v2852_v62  ;;  %v2364_v10 = vmul.f32 %v6755_v57, %v7090_v13  ;;  %v8511_v12 = vld [vmem:[#allocation23_spill] sm:$0xff] }
 0x33d   :  { %v2450_v40 = vadd.f32 %v2442_v35, %v2424_v4  ;;  %v2812_v3 = vmul.f32 %v2724_v21, %v6744_v16  ;;  %v2551_v18 = vmul.f32 %v7299_v50, %v2550_v9  ;;  %4856 = vpow2.f32 %v4331_v34  ;;  %v8512_v34 = vld [vmem:[#allocation25_spill] sm:$0xff] }
 0x33e   :  { %v2390_v63 = vmul.f32 %v6758_v31, %v7095_v0  ;;  %v2732_v43 = vmul.f32 %v2724_v21, %v8511_v12  ;;  %v7367_v7 = vadd.f32 %v2887_v8, %v2877_v41  ;;  %v2372_v62 = vmul.f32 %v2364_v10, %v8481_v38  ;;  %v2725_v8 = vld [vmem:[#allocation3 + $0x3f] sm:$0xff] }
 0x33f   :  { %v2459_v11 = vmul.f32 %v6920_v55, %v2450_v40  ;;  %v7372_v45 = vadd.f32 %v7281_v54, %v2975_v58  ;;  %v7374_v13 = vor.u32 1.1754944e-38, %v2983_v28  ;;  %v7378_v9 = vmul.f32 %v7358_v52, %v7348_v56  ;;  %v8513_v41 = vld [vmem:[#allocation20_spill] sm:$0xff] }
 0x340   :  { %v2903_v0 = vmul.f32 %v6890_v23, %v7269_v15  ;;  %v2803_v21 = vadd.f32 %v2795_v30, %v7146_v26  ;;  %4858 = vpow2.f32 %v4336_v39  ;;  %v2764_v4 = vmul.f32 %v8512_v34, %v7102_v44  ;;  %v8514_v39 = vld [vmem:[#allocation24_spill] sm:$0xff] }
 0x341   :  { %v2837_v35 = vmul.f32 %v2780_v33, %v6755_v57  ;;  %v7387_v58 = vadd.f32 %v6933_v19, %v2459_v11  ;;  %v2380_v28 = vadd.f32 %v2372_v62, %v7291_v22  ;;  %v2398_v36 = vmul.f32 %v2390_v63, %v6068_v5  ;;  %v8515_v62 = vld [vmem:[#allocation28_spill] sm:$0xff] }
 0x342   :  { %v2435_v40 = vmul.f32 %v6890_v23, %v8513_v41  ;;  %v2820_v15 = vmul.f32 %v2812_v3, %v8472_v1  ;;  %v2740_v26 = vmul.f32 %v2732_v43, %v6068_v5  ;;  %v2918_v30 = vadd.f32 %v2910_v27, %v8514_v39  ;;  %v7407_v43 = vld [vmem:[#allocation3 + $0x41] sm:$0xff]  ;;  %v8517_v39 = vld [vmem:[#allocation22_spill] sm:$0xff] }
 0x343   :  { %v7397_v44 = vadd.f32 %v7299_v50, %v2551_v18  ;;  %v4857_v10 = vpop.eup %4856  ;;  %v2911_v11 = vmul.f32 %v2903_v0, %v8445_v49  ;;  %v4332_v20 = vmul.f32 -1.442695, %v7387_v58  ;;  %v2406_v22 = vadd.f32 %v2398_v36, %v2380_v28  ;;  %v8516_v36 = vld [vmem:[#allocation34_spill] sm:$0xff] }
 0x344   :  { %v2417_v63 = vmul.f32 %v6770_v24, %v8515_v62  ;;  %v2828_v56 = vadd.f32 %v2820_v15, %v2803_v21  ;;  %v2845_v41 = vmul.f32 %v2837_v35, %v8449_v32  ;;  %v2862_v3 = vmul.f32 %v2725_v8, %v6758_v31 }
 0x345   :  { %v2391_v27 = vmul.f32 %v6758_v31, %v7266_v53  ;;  %v2904_v18 = vmul.f32 %v6890_v23, %v2780_v33  ;;  %4860 = vpow2.f32 %v4332_v20  ;;  %v2443_v0 = vmul.f32 %v2435_v40, %v8481_v38 }
 0x346   :  { %v2425_v49 = vadd.f32 %v2417_v63, %v2406_v22  ;;  %v4859_v28 = vpop.eup %4858  ;;  %v2716_v62 = vmul.f32 %v8517_v39, %v8516_v36  ;;  %v2788_v21 = vmul.f32 %v2780_v33, %v6727_v6  ;;  %v2926_v35 = vmul.f32 %v6920_v55, %v2918_v30  ;;  %v8518_v33 = vld [vmem:[#allocation37_spill] sm:$0xff] }
 0x347   :  { %v7415_v15 = vadd.f32 1.0, %v4857_v10  ;;  %vm2553_vm12 = vweird.f32 %v7235_v14  ;;  %v2919_v53 = vadd.f32 %v2911_v11, %v7247_v59  ;;  %v2853_v47 = vadd.f32 %v2845_v41, %v2828_v56 }
 0x348   :  { %v2870_v20 = vmul.f32 %v2862_v3, %v8472_v1  ;;  %v2451_v22 = vadd.f32 %v2443_v0, %v2425_v49  ;;  %v2748_v63 = vadd.f32 %v2740_v26, %v2716_v62  ;;  %v2888_v40 = vmul.f32 %v6770_v24, %v8516_v36 }
 0x349   :  { %v2905_v60 = vmul.f32 %v6890_v23, %v7407_v43  ;;  %v2399_v52 = vmul.f32 %v2391_v27, %v8518_v33  ;;  %v2912_v30 = vmul.f32 %v2904_v18, %v5987_v51  ;;  %v7428_v59 = vmul.f32 %v4993_v2, %v6770_v24 }
 0x34a   :  { %v2878_v10 = vadd.f32 %v2870_v20, %v2853_v47  ;;  %v2460_v42 = vmul.f32 %v6920_v55, %v2451_v22  ;;  %v7431_v1 = vadd.f32 %v6933_v19, %v2926_v35  ;;  %vm2554_vm13 = vweird.f32 %v7299_v50  ;;  %v2806_v20 = vld [vmem:[#allocation3 + $0x47] sm:$0xff] }
 0x34b   :  { %4862 = vrcp.f32 %v7415_v15  ;;  %v2407_v56 = vadd.f32 %v2399_v52, %v7301_v61  ;;  %v4861_v26 = vpop.eup %4860  ;;  %v2796_v11 = vmul.f32 %v2788_v21, %v8481_v38  ;;  %v2927_v51 = vmul.f32 %v6920_v55, %v2919_v53  ;;  %vm7470_vm14 = vmor %vm2553_vm12, %vm2554_vm13 }
 0x34c   :  { %v2896_v47 = vadd.f32 %v2888_v40, %v2878_v10  ;;  %v7439_v41 = vadd.f32 %v6933_v19, %v2460_v42  ;;  %v7441_v2 = vadd.f32 1.0, %v4859_v28  ;;  %v7443_v3 = vadd.f32 1.0, %v4861_v26  ;;  %v7488_v10 = vld [vmem:[#allocation3 + $0x49] sm:$0xff] }
 0x34d   :  { %v2913_v27 = vmul.f32 %v2905_v60, %v8449_v32  ;;  %v2426_v18 = vadd.f32 %v7428_v59, %v2407_v56  ;;  %v2772_v49 = vadd.f32 %v2764_v4, %v2748_v63  ;;  %v2733_v61 = vmul.f32 %v2725_v8, %v8511_v12 }
 0x34e   :  { %v2920_v52 = vadd.f32 %v2912_v30, %v7367_v7  ;;  %v4333_v0 = vmul.f32 -1.442695, %v7439_v41  ;;  %v2813_v62 = vmul.f32 %v2725_v8, %v6744_v16  ;;  %v4337_v42 = vmul.f32 -1.442695, %v7431_v1 }
 0x34f   :  { %v2557_v28 = vand.u32 2147483647, %v7235_v14  ;;  %4864 = vrcp.f32 %v7443_v3  ;;  %v2804_v21 = vadd.f32 %v2796_v11, %v2772_v49  ;;  %v7456_v32 = vadd.f32 %v7340_v48, %v7378_v9  ;;  %v8521_v9 = vld [vmem:[#allocation36_spill] sm:$0xff] }
 0x350   :  { %v2559_v60 = vand.u32 2147483648, %v7235_v14  ;;  %v7460_v12 = vadd.f32 %v6933_v19, %v2927_v51  ;;  %v2838_v4 = vmul.f32 %v7407_v43, %v6755_v57  ;;  %v2921_v48 = vadd.f32 %v2913_v27, %v2896_v47 }
 0x351   :  { %v7462_v7 = vpop.eup %4862  ;;  %4866 = vpow2.f32 %v4333_v0  ;;  %v2452_v35 = vadd.f32 %v8521_v9, %v2426_v18  ;;  %vm2978_vm15 = vweird.f32 %v7281_v54  ;;  %v2741_v53 = vmul.f32 %v2733_v61, %v8518_v33 }
 0x352   :  { %4868 = vrcp.f32 %v7441_v2  ;;  %v2556_v14 = vsel %vm7470_vm14, %v7299_v50, %v7397_v44  ;;  %v2928_v22 = vmul.f32 %v6920_v55, %v2920_v52  ;;  %v2821_v63 = vmul.f32 %v2813_v62, %v6068_v5 }
 0x353   :  { %4870 = vpow2.f32 %v4337_v42  ;;  %vm2558_vm0 = vcmp.eq.f32.partialorder %v2557_v28, 8.507059e+37  ;;  %v2461_v40 = vmul.f32 %v6920_v55, %v2452_v35  ;;  %vm2977_vm1 = vweird.f32 %v7216_v25  ;;  %v8522_v35 = vld [vmem:[#allocation29_spill] sm:$0xff] }
 0x354   :  { %v2717_v30 = vmul.f32 %v8517_v39, %v7259_v29  ;;  %v2560_v56 = vor.u32 1.1754944e-38, %v2559_v60  ;;  %v4338_v26 = vmul.f32 -1.442695, %v7460_v12  ;;  %v2564_v50 = vmul.f32 %v7462_v7, %v7415_v15  ;;  %vm7543_vm2 = vmor %vm2977_vm1, %vm2978_vm15 }
 0x355   :  { %v7493_v44 = vpop.eup %4864  ;;  %v2829_v11 = vadd.f32 %v2821_v63, %v2804_v21  ;;  %v2929_v51 = vmul.f32 %v6920_v55, %v2921_v48  ;;  %v2846_v47 = vmul.f32 %v2838_v4, %v8481_v38  ;;  %v2863_v27 = vmul.f32 %v2806_v20, %v6758_v31 }
 0x356   :  { %v2749_v18 = vadd.f32 %v2741_v53, %v2717_v30  ;;  %v2789_v39 = vmul.f32 %v7407_v43, %v6727_v6  ;;  %v2561_v49 = vsel %vm2558_vm0, %v2560_v56, %v2556_v14  ;;  %v7501_v61 = vadd.f32 %v6933_v19, %v2928_v22 }
 0x357   :  { %v4867_v52 = vpop.eup %4866  ;;  %v2854_v0 = vadd.f32 %v2846_v47, %v2829_v11  ;;  %v2871_v62 = vmul.f32 %v2863_v27, %v6068_v5  ;;  %v2906_v42 = vmul.f32 %v6890_v23, %v7488_v10  ;;  %v7507_v55 = vadd.f32 %v6933_v19, %v2461_v40 }
 0x358   :  { %v7509_v28 = vpop.eup %4868  ;;  %4872 = vpow2.f32 %v4338_v26  ;;  %v2565_v21 = vsub.f32 1.0, %v2564_v50  ;;  %v2579_v6 = vmul.f32 %v7493_v44, %v7443_v3  ;;  %v7513_v43 = vadd.f32 1.0, %v4867_v52 }
 0x359   :  { %v4871_v60 = vpop.eup %4870  ;;  %v7516_v4 = vadd.f32 %v6933_v19, %v2929_v51  ;;  %v2879_v5 = vadd.f32 %v2871_v62, %v2854_v0  ;;  %v2889_v23 = vmul.f32 %v6770_v24, %v7259_v29  ;;  %v4334_v8 = vmul.f32 -1.442695, %v7507_v55 }
 0x35a   :  { %v2765_v48 = vmul.f32 %v8512_v34, %v8516_v36  ;;  %v7524_v53 = vmul.f32 %v2561_v49, %v8522_v35  ;;  %v4339_v14 = vmul.f32 -1.442695, %v7501_v61  ;;  %4874 = vrcp.f32 %v7513_v43  ;;  %v7537_v36 = vpop.permute.xlu2 %2652 }
 0x35b   :  { %v2797_v22 = vmul.f32 %v2789_v39, %v8473_v37  ;;  %v2897_v19 = vadd.f32 %v2889_v23, %v2879_v5  ;;  %v2914_v63 = vmul.f32 %v2906_v42, %v8481_v38  ;;  %4876 = vpow2.f32 %v4334_v8  ;;  %v7560_v39 = vld [vmem:[#allocation10 + $0x8] ss:$0 sm:$0xff]  ;;  %v7580_v8 = vld [vmem:[#allocation10 + $0x9] ss:$0 sm:$0xff] }
 0x35c   :  { %v7532_v24 = vmul.f32 %v7509_v28, %v7441_v2  ;;  %v7534_v29 = vadd.f32 1.0, %v4871_v60  ;;  %v2814_v34 = vmul.f32 %v2806_v20, %v6744_v16  ;;  %v2580_v40 = vsub.f32 1.0, %v2579_v6 }
 0x35d   :  { %v2773_v38 = vadd.f32 %v2765_v48, %v2749_v18  ;;  %v2566_v56 = vmul.f32 %v7462_v7, %v2565_v21  ;;  %v4340_v26 = vmul.f32 -1.442695, %v7516_v4  ;;  %v2922_v50 = vadd.f32 %v2914_v63, %v2897_v19 }
 0x35e   :  { %v4873_v11 = vpop.eup %4872  ;;  %v2980_v16 = vsel %vm7543_vm2, %v7281_v54, %v7372_v45  ;;  %v2996_v20 = vand.u32 2147483647, %v7441_v2  ;;  %v2572_v51 = vand.u32 2147483647, %v7415_v15  ;;  %4878 = vpow2.f32 %v4339_v14 }
 0x35f   :  { %v2805_v47 = vadd.f32 %v2797_v22, %v2773_v38  ;;  %v7557_v27 = vmul.f32 %v7537_v36, %v7524_v53  ;;  %v2574_v18 = vand.u32 2147483648, %v7415_v15  ;;  %v2930_v49 = vmul.f32 %v7560_v39, %v2922_v50 }
 0x360   :  { %v7563_v52 = vpop.eup %4874  ;;  %v2989_v0 = vsub.f32 1.0, %v7532_v24  ;;  %4880 = vrcp.f32 %v7534_v29  ;;  %v2822_v62 = vmul.f32 %v2814_v34, %v8518_v33  ;;  %v2581_v42 = vmul.f32 %v7493_v44, %v2580_v40 }
 0x361   :  { %v4877_v21 = vpop.eup %4876  ;;  %v2567_v6 = vadd.f32 %v7462_v7, %v2566_v56  ;;  %vm2569_vm3 = vweird.f32 %v7462_v7  ;;  %4882 = vpow2.f32 %v4340_v26  ;;  %v2594_v60 = vmul.f32 %v7563_v52, %v7513_v43 }
 0x362   :  { %v2839_v5 = vmul.f32 %v7488_v10, %v6755_v57  ;;  %vm2568_vm4 = vweird.f32 %v7415_v15  ;;  %vm7576_vm5 = vcmp.eq.f32.partialorder %v2572_v51, 8.507059e+37  ;;  %v7583_v48 = vadd.f32 %v7580_v8, %v2930_v49 }
 0x363   :  { %v2830_v35 = vadd.f32 %v2822_v62, %v2805_v47  ;;  %v2575_v14 = vor.u32 1.1754944e-38, %v2574_v18  ;;  %v2595_v22 = vsub.f32 1.0, %v2594_v60  ;;  %v7585_v19 = vadd.f32 1.0, %v4877_v21  ;;  %vm7589_vm6 = vmor %vm2568_vm4, %vm2569_vm3  ;;  %v2856_v60 = vld [vmem:[#allocation3 + $0x4f] sm:$0xff] }
 0x364   :  { %v4879_v63 = vpop.eup %4878  ;;  %v7587_v24 = vadd.f32 1.0, %v4873_v11  ;;  %v2582_v15 = vadd.f32 %v7493_v44, %v2581_v42  ;;  %vm2584_vm7 = vweird.f32 %v7493_v44  ;;  %v4341_v10 = vmul.f32 -1.442695, %v7583_v48 }
 0x365   :  { %v2571_v34 = vsel %vm7589_vm6, %v7462_v7, %v2567_v6  ;;  %v2589_v40 = vand.u32 2147483648, %v7443_v3  ;;  %v2596_v38 = vmul.f32 %v7563_v52, %v2595_v22  ;;  %4884 = vrcp.f32 %v7585_v19 }
 0x366   :  { %v7602_v56 = vpop.eup %4880  ;;  %vm2583_vm8 = vweird.f32 %v7443_v3  ;;  %v2587_v26 = vand.u32 2147483647, %v7443_v3  ;;  %vm2599_vm9 = vweird.f32 %v7563_v52  ;;  %4886 = vpow2.f32 %v4341_v10 }
 0x367   :  { %v4883_v50 = vpop.eup %4882  ;;  %v2847_v11 = vmul.f32 %v2839_v5, %v8473_v37  ;;  %v7608_v51 = vadd.f32 1.0, %v4879_v63  ;;  %vm7610_vm10 = vmor %vm2583_vm8, %vm2584_vm7  ;;  %v2597_v47 = vadd.f32 %v7563_v52, %v2596_v38  ;;  %v2604_v18 = vand.u32 2147483648, %v7513_v43 }
 0x368   :  { %v2576_v49 = vsel %vm7576_vm5, %v2575_v14, %v2571_v34  ;;  %v2586_v3 = vsel %vm7610_vm10, %v7493_v44, %v2582_v15  ;;  %vm2598_vm11 = vweird.f32 %v7513_v43  ;;  %v2602_v37 = vand.u32 2147483647, %v7513_v43  ;;  %v7643_v15 = vpop.permute.xlu1 %2656 }
 0x369   :  { %v3003_v62 = vmul.f32 %v7602_v56, %v7534_v29  ;;  %v2855_v42 = vadd.f32 %v2847_v11, %v2830_v35  ;;  %4888 = vrcp.f32 %v7587_v24  ;;  %v2590_v21 = vor.u32 1.1754944e-38, %v2589_v40  ;;  %vm7628_vm12 = vmor %vm2598_vm11, %vm2599_vm9  ;;  %v7659_v11 = vpop.permute.xlu2 %2660 }
 0x36a   :  { %vm2588_vm13 = vcmp.eq.f32.partialorder %v2587_v26, 8.507059e+37  ;;  %v7632_v44 = vadd.f32 1.0, %v4883_v50  ;;  %v2601_v43 = vsel %vm7628_vm12, %v7563_v52, %v2597_v47  ;;  %v2864_v5 = vmul.f32 %v2856_v60, %v6758_v31 }
 0x36b   :  { %v4885_v23 = vpop.eup %4884  ;;  %v7639_v35 = vmul.f32 %v2576_v49, %v7327_v17  ;;  %4890 = vrcp.f32 %v7608_v51  ;;  %v2591_v14 = vsel %vm2588_vm13, %v2590_v21, %v2586_v3  ;;  %v2605_v22 = vor.u32 1.1754944e-38, %v2604_v18 }
 0x36c   :  { %v4887_v63 = vpop.eup %4886  ;;  %v2990_v57 = vmul.f32 %v7509_v28, %v2989_v0  ;;  %vm2603_vm14 = vcmp.eq.f32.partialorder %v2602_v37, 8.507059e+37  ;;  %v2609_v10 = vmul.f32 %v4885_v23, %v7585_v19  ;;  %v2872_v52 = vmul.f32 %v2864_v5, %v8518_v33 }
 0x36d   :  { %v3004_v34 = vsub.f32 1.0, %v3003_v62  ;;  %v2606_v31 = vsel %vm2603_vm14, %v2605_v22, %v2601_v43  ;;  %v7647_v40 = vadd.f32 1.0, %v4887_v63  ;;  %vm2992_vm15 = vweird.f32 %v7441_v2 }
 0x36e   :  { %v7651_v17 = vmul.f32 %v2591_v14, %v7387_v58  ;;  %4892 = vrcp.f32 %v7632_v44  ;;  %v2610_v38 = vsub.f32 1.0, %v2609_v10  ;;  %v2880_v0 = vadd.f32 %v2872_v52, %v2855_v42  ;;  %v7679_v42 = vpop.permute.xlu0 %2664 }
 0x36f   :  { %v7654_v26 = vpop.eup %4888  ;;  %v2998_v50 = vand.u32 2147483648, %v7441_v2  ;;  %v2675_v33 = vmul.f32 %v7643_v15, %v7639_v35  ;;  %v2617_v7 = vand.u32 2147483647, %v7585_v19  ;;  %v2619_v47 = vand.u32 2147483648, %v7585_v19 }
 0x370   :  { %v8533_v58 = vand.u32 2147483647, %v7216_v25  ;;  %v7670_v49 = vmul.f32 %v2606_v31, %v7439_v41  ;;  %4894 = vrcp.f32 %v7647_v40  ;;  %v2611_v3 = vmul.f32 %v4885_v23, %v2610_v38 }
 0x371   :  { %vm2614_vm1 = vweird.f32 %v4885_v23  ;;  %v7673_v37 = vpop.eup %4890  ;;  %v2991_v62 = vadd.f32 %v7509_v28, %v2990_v57  ;;  %vm2993_vm3 = vweird.f32 %v7509_v28  ;;  %v2681_v25 = vadd.f32 %v7456_v32, %v7557_v27  ;;  %v7697_v57 = vpop.permute.xlu1 %2668 }
 0x372   :  { %vm7665_vm0 = vcmp.eq.f32.partialorder %v8533_v58, 8.507059e+37  ;;  %v2898_v21 = vadd.f32 %v2880_v0, %v7428_v59  ;;  %v3005_v41 = vmul.f32 %v7602_v56, %v3004_v34  ;;  %v2676_v6 = vmul.f32 %v7659_v11, %v7651_v17  ;;  %vm7711_vm9 = vmor %vm2992_vm15, %vm2993_vm3 }
 0x373   :  { %v2612_v60 = vadd.f32 %v4885_v23, %v2611_v3  ;;  %vm2613_vm4 = vweird.f32 %v7585_v19  ;;  %v3018_v43 = vmul.f32 %v7654_v26, %v7587_v24  ;;  %v2682_v5 = vadd.f32 %v2681_v25, %v2675_v33 }
 0x374   :  { %vm2615_vm5 = vmor %vm2613_vm4, %vm2614_vm1  ;;  %v2620_v14 = vor.u32 1.1754944e-38, %v2619_v47  ;;  %v2923_v32 = vadd.f32 %v2898_v21, %v8521_v9  ;;  %v7689_v27 = vpop.eup %4892  ;;  %v3033_v59 = vmul.f32 %v7673_v37, %v7608_v51  ;;  %v2677_v22 = vmul.f32 %v7679_v42, %v7670_v49 }
 0x375   :  { %v2616_v63 = vsel %vm2615_vm5, %v4885_v23, %v2612_v60  ;;  %vm2618_vm6 = vcmp.eq.f32.partialorder %v2617_v7, 8.507059e+37  ;;  %vm3007_vm7 = vweird.f32 %v7534_v29  ;;  %v3013_v19 = vand.u32 2147483648, %v7534_v29 }
 0x376   :  { %v2621_v10 = vsel %vm2618_vm6, %v2620_v14, %v2616_v63  ;;  %v2931_v52 = vmul.f32 %v7560_v39, %v2923_v32  ;;  %v7700_v9 = vpop.eup %4894  ;;  %v3006_v34 = vadd.f32 %v7602_v56, %v3005_v41  ;;  %vm3008_vm8 = vweird.f32 %v7602_v56 }
 0x377   :  { %v2683_v31 = vadd.f32 %v2682_v5, %v2676_v6  ;;  %v7705_v38 = vmul.f32 %v2621_v10, %v7507_v55  ;;  %v3011_v39 = vand.u32 2147483647, %v7534_v29  ;;  %v3019_v0 = vsub.f32 1.0, %v3018_v43  ;;  %vm3009_vm10 = vmor %vm3007_vm7, %vm3008_vm8 }
 0x378   :  { %v3048_v33 = vmul.f32 %v7689_v27, %v7632_v44  ;;  %v7719_v7 = vadd.f32 %v7580_v8, %v2931_v52  ;;  %v2995_v55 = vsel %vm7711_vm9, %v7509_v28, %v2991_v62  ;;  %v3034_v47 = vsub.f32 1.0, %v3033_v59 }
 0x379   :  { %v2684_v58 = vadd.f32 %v2683_v31, %v2677_v22  ;;  %v2678_v3 = vmul.f32 %v7697_v57, %v7705_v38  ;;  %v2985_v25 = vsel %vm7665_vm0, %v7374_v13, %v2980_v16  ;;  %v2999_v8 = vor.u32 1.1754944e-38, %v2998_v50 }
 0x37a   :  { %v3063_v28 = vmul.f32 %v7700_v9, %v7647_v40  ;;  %v4342_v62 = vmul.f32 -1.442695, %v7719_v7  ;;  %vm2997_vm11 = vcmp.eq.f32.partialorder %v2996_v20, 8.507059e+37  ;;  %v3010_v30 = vsel %vm3009_vm10, %v7602_v56, %v3006_v34  ;;  %v8538_v20 = vld [vmem:[#allocation18_spill] sm:$0xff] }
 0x37b   :  { %v3014_v21 = vor.u32 1.1754944e-38, %v3013_v19  ;;  %v2685_v54 = vadd.f32 %v2684_v58, %v2678_v3  ;;  %v3000_v45 = vsel %vm2997_vm11, %v2999_v8, %v2995_v55  ;;  %v3020_v18 = vmul.f32 %v7654_v26, %v3019_v0 }
 0x37c   :  { %v3049_v13 = vsub.f32 1.0, %v3048_v33  ;;  %4896 = vpow2.f32 %v4342_v62  ;;  %vm3012_vm2 = vcmp.eq.f32.partialorder %v3011_v39, 8.507059e+37  ;;  %v3035_v29 = vmul.f32 %v7673_v37, %v3034_v47 }
 0x37d   :  { %v2686_v16 = vrot.slane %v2685_v54, 4  ;;  %v3015_v50 = vsel %vm3012_vm2, %v3014_v21, %v3010_v30  ;;  %v3026_v41 = vand.u32 2147483647, %v7587_v24  ;;  %v3028_v6 = vand.u32 2147483648, %v7587_v24  ;;  %v8547_v30 = vld [vmem:[#allocation30_spill] sm:$0xff] }
 0x37e   :  { %v3064_v2 = vsub.f32 1.0, %v3063_v28  ;;  %v7747_v60 = vmul.f32 %v2985_v25, %v8538_v20  ;;  %v7750_v56 = vmul.f32 %v3000_v45, %v7334_v46  ;;  %v3021_v5 = vadd.f32 %v7654_v26, %v3020_v18  ;;  %v4545_v45 = vld [vmem:[#allocation11 + $0x80] sm:$0xff] }
 0x37f   :  { %v2687_v43 = vadd.f32 %v2686_v16, %v2685_v54  ;;  %vm3023_vm12 = vweird.f32 %v7654_v26  ;;  %v3043_v14 = vand.u32 2147483648, %v7608_v51  ;;  %v3050_v32 = vmul.f32 %v7689_v27, %v3049_v13  ;;  %v8550_v13 = vld [vmem:[#allocation19_spill] sm:$0xff] }
 0x380   :  { %v7757_v59 = vmul.f32 %v3015_v50, %v7431_v1  ;;  %v3036_v22 = vadd.f32 %v7673_v37, %v3035_v29  ;;  %vm3038_vm13 = vweird.f32 %v7673_v37  ;;  %vm3022_vm14 = vweird.f32 %v7587_v24 }
 0x381   :  { %v2688_v63 = vrot.slane %v2687_v43, 2  ;;  %vm7762_vm15 = vcmp.eq.f32.partialorder %v3026_v41, 8.507059e+37  ;;  %v3029_v10 = vor.u32 1.1754944e-38, %v3028_v6  ;;  %v3065_v52 = vmul.f32 %v7700_v9, %v3064_v2  ;;  %vm7767_vm0 = vmor %vm3022_vm14, %vm3023_vm12  ;;  %v8551_v41 = vld [vmem:[#allocation40_spill] sm:$0xff] }
 0x382   :  { %v4897_v19 = vpop.eup %4896  ;;  %vm3037_vm1 = vweird.f32 %v7608_v51  ;;  %v3041_v1 = vand.u32 2147483647, %v7608_v51  ;;  %v3025_v24 = vsel %vm7767_vm0, %v7654_v26, %v3021_v5  ;;  %v3044_v0 = vor.u32 1.1754944e-38, %v3043_v14  ;;  %v4551_v5 = vld [vmem:[#allocation11 + $0xb0] sm:$0xff] }
 0x383   :  { %v2689_v31 = vadd.f32 %v2688_v63, %v2687_v43  ;;  %v7773_v23 = vadd.f32 1.0, %v4897_v19  ;;  %vm7778_vm3 = vmor %vm3037_vm1, %vm3038_vm13  ;;  %v3051_v33 = vadd.f32 %v7689_v27, %v3050_v32  ;;  %vm3053_vm4 = vweird.f32 %v7689_v27 }
 0x384   :  { %v3040_v51 = vsel %vm7778_vm3, %v7673_v37, %v3036_v22  ;;  %v3058_v55 = vand.u32 2147483648, %v7632_v44  ;;  %vm3052_vm5 = vweird.f32 %v7632_v44  ;;  %v3056_v26 = vand.u32 2147483647, %v7632_v44 }
 0x385   :  { %v2690_v47 = vrot.slane %v2689_v31, 1  ;;  %4898 = vrcp.f32 %v7773_v23  ;;  %v3066_v58 = vadd.f32 %v7700_v9, %v3065_v52  ;;  %vm3068_vm6 = vweird.f32 %v7700_v9  ;;  %vm7795_vm8 = vmor %vm3052_vm5, %vm3053_vm4 }
 0x386   :  { %v3030_v3 = vsel %vm7762_vm15, %v3029_v10, %v3025_v24  ;;  %vm3042_vm7 = vcmp.eq.f32.partialorder %v3041_v1, 8.507059e+37  ;;  %v3073_v37 = vand.u32 2147483648, %v7647_v40  ;;  %v3055_v44 = vsel %vm7795_vm8, %v7689_v27, %v3051_v33  ;;  %v4552_v27 = vld [vmem:[#allocation11 + $0xb8] sm:$0xff]  ;;  %v4550_v1 = vld [vmem:[#allocation11 + $0xa8] sm:$0xff] }
 0x387   :  { %v2691_v8 = vadd.f32 %v2690_v47, %v2689_v31  ;;  %v3045_v28 = vsel %vm3042_vm7, %v3044_v0, %v3040_v51  ;;  %vm3067_vm9 = vweird.f32 %v7647_v40  ;;  %v3071_v62 = vand.u32 2147483647, %v7647_v40  ;;  %3200 = vmatpush.bf16.msra.mxu3 %v4552_v27  ;;  %v4549_v51 = vld [vmem:[#allocation11 + $0xa0] sm:$0xff]  ;;  %v4637_v27 = vld [vmem:[#allocation10 + $0xa] ss:$0 sm:$0xff] }
 0x388   :  { %v3109_v21 = vmul.f32 %v7750_v56, %v8547_v30  ;;  %v3059_v54 = vor.u32 1.1754944e-38, %v3058_v55  ;;  %vm7807_vm10 = vmor %vm3067_vm9, %vm3068_vm6  ;;  %v3108_v29 = vmul.f32 %v7747_v60, %v8550_v13  ;;  %v7814_v16 = vmul.f32 %v3030_v3, %v7460_v12 }
 0x389   :  { %v2692_v18 = vmul.f32 0.0625, %v2691_v8  ;;  %vm3057_vm11 = vcmp.eq.f32.partialorder %v3056_v26, 8.507059e+37  ;;  %v3070_v40 = vsel %vm7807_vm10, %v7700_v9, %v3066_v58  ;;  %v3110_v6 = vmul.f32 %v7757_v59, %v8551_v41  ;;  %v4547_v8 = vld [vmem:[#allocation11 + $0x90] sm:$0xff] }
 0x38a   :  { %v7822_v2 = vmul.f32 %v3045_v28, %v7501_v61  ;;  %v3060_v20 = vsel %vm3057_vm11, %v3059_v54, %v3055_v44  ;;  %v3074_v43 = vor.u32 1.1754944e-38, %v3073_v37  ;;  %vm3072_vm2 = vcmp.eq.f32.partialorder %v3071_v62, 8.507059e+37  ;;  %v4546_v62 = vld [vmem:[#allocation11 + $0x88] sm:$0xff] }
 0x38b   :  { %v4899_v50 = vpop.eup %4898  ;;  %2693 = vst [vmem:[#allocation4] sm:$0x1] %v2692_v18  ;;  %v3116_v14 = vadd.f32 %v3109_v21, %v3108_v29  ;;  %v3111_v9 = vmul.f32 %v7814_v16, %v7537_v36  ;;  %v7828_v22 = vmul.f32 %v3060_v20, %v7516_v4  ;;  %v3088_v46 = vand.u32 2147483648, %v7773_v23  ;;  %3201 = vmatpush.bf16.msra.mxu3 %v4551_v5  ;;  %v4560_v20 = vld [vmem:[#allocation11 + $0xf8] sm:$0xff]  ;;  %v4558_v5 = vld [vmem:[#allocation11 + $0xe8] sm:$0xff] }
 0x38c   :  { %v3078_v12 = vmul.f32 %v4899_v50, %v7773_v23  ;;  %v3075_v32 = vsel %vm3072_vm2, %v3074_v43, %v3070_v40  ;;  %v3112_v61 = vmul.f32 %v7822_v2, %v7643_v15  ;;  %vm3083_vm12 = vweird.f32 %v4899_v50 }
 0x38d   :  { %v3117_v19 = vadd.f32 %v3116_v14, %v3110_v6  ;;  %v7834_v10 = vmul.f32 %v3075_v32, %v7583_v48  ;;  %v3086_v34 = vand.u32 2147483647, %v7773_v23  ;;  %v3113_v4 = vmul.f32 %v7828_v22, %v7659_v11 }
 0x38e   :  { %v3079_v63 = vsub.f32 1.0, %v3078_v12  ;;  %vm3082_vm13 = vweird.f32 %v7773_v23  ;;  %v3089_v39 = vor.u32 1.1754944e-38, %v3088_v46  ;;  %v4548_v23 = vld [vmem:[#allocation11 + $0x98] sm:$0xff]  ;;  %v4559_v12 = vld [vmem:[#allocation11 + $0xf0] sm:$0xff] }
 0x38f   :  { %v3118_v31 = vadd.f32 %v3117_v19, %v3111_v9  ;;  %vm3084_vm14 = vmor %vm3082_vm13, %vm3083_vm12  ;;  %v3114_v48 = vmul.f32 %v7834_v10, %v7679_v42  ;;  %vm3087_vm15 = vcmp.eq.f32.partialorder %v3086_v34, 8.507059e+37  ;;  %3202 = vmatpush.bf16.msra.mxu3 %v4550_v1  ;;  %v4557_v9 = vld [vmem:[#allocation11 + $0xe0] sm:$0xff]  ;;  %v4556_v19 = vld [vmem:[#allocation11 + $0xd8] sm:$0xff] }
 0x390   :  { %v3080_v52 = vmul.f32 %v4899_v50, %v3079_v63  ;;  %v4554_v1 = vld [vmem:[#allocation11 + $0xc8] sm:$0xff] }
 0x391   :  { %v3119_v0 = vadd.f32 %v3118_v31, %v3112_v61  ;;  %v4555_v61 = vld [vmem:[#allocation11 + $0xd0] sm:$0xff] }
 0x392   :  { %v3081_v24 = vadd.f32 %v4899_v50, %v3080_v52 }
 0x393   :  { %v3120_v47 = vadd.f32 %v3119_v0, %v3113_v4  ;;  %3203 = vmatpush.bf16.msra.mxu3 %v4549_v51  ;;  %v4553_v0 = vld [vmem:[#allocation11 + $0xc0] sm:$0xff] }
 0x394   :  { %v3085_v33 = vsel %vm3084_vm14, %v4899_v50, %v3081_v24 }
 0x395   :  { %v3090_v55 = vsel %vm3087_vm15, %v3089_v39, %v3085_v33  ;;  %v3121_v58 = vadd.f32 %v3120_v47, %v3114_v48 }
 0x396   :  { %v7843_v26 = vmul.f32 %v3090_v55, %v7719_v7 }
 0x397   :  { %3204 = vmatpush.bf16.msra.mxu3 %v4548_v23 }
 0x398   :  { %v3115_v3 = vmul.f32 %v7843_v26, %v7697_v57 }
 0x39a   :  { %v3122_v25 = vadd.f32 %v3121_v58, %v3115_v3  ;;  %v4638_v58 = vld [vmem:[#allocation10 + $0xb] ss:$0 sm:$0xff]  ;;  %v4568_v3 = vld [vmem:[#allocation11 + $0x138] sm:$0xff] }
 0x39b   :  { %3205 = vmatpush.bf16.msra.mxu3 %v4547_v8 }
 0x39c   :  { %v3123_v37 = vrot.slane %v3122_v25, 4 }
 0x39e   :  { %v3124_v28 = vadd.f32 %v3123_v37, %v3122_v25  ;;  %v4567_v37 = vld [vmem:[#allocation11 + $0x130] sm:$0xff] }
 0x39f   :  { %3206 = vmatpush.bf16.msra.mxu3 %v4546_v62  ;;  %v4565_v62 = vld [vmem:[#allocation11 + $0x120] sm:$0xff] }
 0x3a0   :  { %v3125_v44 = vrot.slane %v3124_v28, 2 }
 0x3a2   :  { %v3126_v21 = vadd.f32 %v3125_v44, %v3124_v28  ;;  %v4566_v28 = vld [vmem:[#allocation11 + $0x128] sm:$0xff] }
 0x3a3   :  { %3207 = vmatpush.bf16.msra.mxu3 %v4545_v45  ;;  %v4564_v45 = vld [vmem:[#allocation11 + $0x118] sm:$0xff] }
 0x3a4   :  { %v3127_v54 = vrot.slane %v3126_v21, 1 }
 0x3a6   :  { %v3128_v7 = vadd.f32 %v3127_v54, %v3126_v21 }
 0x3a7   :  { %3301 = vmatpush.bf16.msrb.mxu3 %v4560_v20 }
 0x3a8   :  { %v3129_v18 = vmul.f32 0.0625, %v3128_v7  ;;  %v4563_v7 = vld [vmem:[#allocation11 + $0x110] sm:$0xff] }
 0x3aa   :  { %3130 = vst [vmem:[#allocation4 + $0x1] sm:$0x1] %v3129_v18 }
 0x3ab   :  { %3302 = vmatpush.bf16.msrb.mxu3 %v4559_v12 }
 0x3af   :  { %3303 = vmatpush.bf16.msrb.mxu3 %v4558_v5 }
 0x3b1   :  { %v3131_v29 = vld [vmem:[#allocation4] sm:$0x3] }
 0x3b2   :  { %v3132_v40 = vpack.c.bf16 %v3131_v29, %v3131_v29 }
 0x3b3   :  { %3304 = vmatpush.bf16.msrb.mxu3 %v4557_v9 }
 0x3b4   :  { %3208 = vmatmul.bf16.vlgmr.msra.gmra.mxu3 %v3132_v40  ;;  %v4562_v40 = vld [vmem:[#allocation11 + $0x108] sm:$0xff] }
 0x3b7   :  { %3305 = vmatpush.bf16.msrb.mxu3 %v4556_v19 }
 0x3bb   :  { %3306 = vmatpush.bf16.msrb.mxu3 %v4555_v61  ;;  %v8553_v61 = vld [vmem:[#allocation38_spill] sm:$0xff] }
 0x3bf   :  { %3307 = vmatpush.bf16.msrb.mxu3 %v4554_v1 }
 0x3c3   :  { %3308 = vmatpush.bf16.msrb.mxu3 %v4553_v0 }
 0x3c7   :  { %3472 = vmatpush.bf16.msra.mxu3 %v4568_v3 }
 0x3cb   :  { %3473 = vmatpush.bf16.msra.mxu3 %v4567_v37 }
 0x3cf   :  { %3474 = vmatpush.bf16.msra.mxu3 %v4566_v28 }
 0x3d3   :  { %3475 = vmatpush.bf16.msra.mxu3 %v4565_v62 }
 0x3d7   :  { %3476 = vmatpush.bf16.msra.mxu3 %v4564_v45  ;;  %v4640_v45 = vld [vmem:[#allocation10 + $0xd] ss:$0 sm:$0xff] }
 0x3db   :  { %3477 = vmatpush.bf16.msra.mxu3 %v4563_v7 }
 0x3df   :  { %3478 = vmatpush.bf16.msra.mxu3 %v4562_v40 }
 0x437   :  { %v3209_v50 = vpop.f32.mrf.mxu3 }
 0x438   :  { %v3210_v6 = vadd.f32 %v4637_v27, %v3209_v50 }
 0x43a   :  { %v4375_v43 = vmul.f32 -1.442695, %v3210_v6 }
 0x43c   :  { %4900 = vpow2.f32 %v4375_v43  ;;  %v4561_v43 = vld [vmem:[#allocation11 + $0x100] sm:$0xff] }
 0x43d   :  { %3479 = vmatpush.bf16.msra.mxu3 %v4561_v43 }
 0x43f   :  { %v3211_v14 = vpop.f32.mrf.mxu3 }
 0x442   :  { %v4901_v32 = vpop.eup %4900 }
 0x443   :  { %v3216_v63 = vadd.f32 1.0, %v4901_v32 }
 0x445   :  { %4902 = vrcp.f32 %v3216_v63  ;;  %v3228_v31 = vand.u32 2147483648, %v3216_v63  ;;  %v3226_v24 = vand.u32 2147483647, %v3216_v63  ;;  %vm3222_vm1 = vweird.f32 %v3216_v63 }
 0x447   :  { %v3229_v48 = vor.u32 1.1754944e-38, %v3228_v31  ;;  %vm3227_vm4 = vcmp.eq.f32.partialorder %v3226_v24, 8.507059e+37 }
 0x44b   :  { %v4903_v46 = vpop.eup %4902 }
 0x44c   :  { %v3218_v52 = vmul.f32 %v4903_v46, %v3216_v63  ;;  %vm3223_vm0 = vweird.f32 %v4903_v46  ;;  %v8552_v63 = vld [vmem:[#allocation39_spill] sm:$0xff] }
 0x44d   :  { %vm3224_vm3 = vmor %vm3222_vm1, %vm3223_vm0 }
 0x44e   :  { %v3219_v34 = vsub.f32 1.0, %v3218_v52 }
 0x450   :  { %v3220_v4 = vmul.f32 %v4903_v46, %v3219_v34  ;;  %v8554_v34 = vld [vmem:[#allocation21_spill] sm:$0xff] }
 0x452   :  { %v3221_v39 = vadd.f32 %v4903_v46, %v3220_v4 }
 0x454   :  { %v3225_v33 = vsel %vm3224_vm3, %v4903_v46, %v3221_v39 }
 0x455   :  { %v3230_v51 = vsel %vm3227_vm4, %v3229_v48, %v3225_v33 }
 0x456   :  { %v3232_v55 = vmul.f32 %v3230_v51, %v3210_v6 }
 0x458   :  { %v3233_v47 = vpack.c.bf16 %v3232_v55, %v3232_v55 }
 0x45a   :  { %3309 = vmatmul.bf16.vlgmr.msrb.gmra.mxu3 %v3233_v47 }
 0x4dd   :  { %v3310_v23 = vpop.f32.mrf.mxu3 }
 0x4de   :  { %v3311_v25 = vadd.f32 %v4638_v58, %v3310_v23  ;;  %v4576_v23 = vld [vmem:[#allocation11 + $0x178] sm:$0xff] }
 0x4df   :  { %3630 = vmatpush.bf16.msrb.mxu0 %v4576_v23 }
 0x4e0   :  { %v4408_v8 = vmul.f32 -1.442695, %v3311_v25 }
 0x4e2   :  { %4904 = vpow2.f32 %v4408_v8  ;;  %v4572_v8 = vld [vmem:[#allocation11 + $0x158] sm:$0xff] }
 0x4e5   :  { %v3312_v44 = vpop.f32.mrf.mxu3 }
 0x4e8   :  { %v4905_v21 = vpop.eup %4904 }
 0x4e9   :  { %v3317_v54 = vadd.f32 1.0, %v4905_v21  ;;  %v4569_v21 = vld [vmem:[#allocation11 + $0x140] sm:$0xff] }
 0x4eb   :  { %4906 = vrcp.f32 %v3317_v54  ;;  %v3329_v50 = vand.u32 2147483648, %v3317_v54  ;;  %v3327_v20 = vand.u32 2147483647, %v3317_v54  ;;  %vm3323_vm6 = vweird.f32 %v3317_v54 }
 0x4ed   :  { %v3330_v5 = vor.u32 1.1754944e-38, %v3329_v50  ;;  %vm3328_vm8 = vcmp.eq.f32.partialorder %v3327_v20, 8.507059e+37 }
 0x4f1   :  { %v4907_v18 = vpop.eup %4906 }
 0x4f2   :  { %v3319_v29 = vmul.f32 %v4907_v18, %v3317_v54  ;;  %vm3324_vm5 = vweird.f32 %v4907_v18 }
 0x4f3   :  { %vm3325_vm7 = vmor %vm3323_vm6, %vm3324_vm5 }
 0x4f4   :  { %v3320_v27 = vsub.f32 1.0, %v3319_v29 }
 0x4f6   :  { %v3321_v6 = vmul.f32 %v4907_v18, %v3320_v27 }
 0x4f8   :  { %v3322_v12 = vadd.f32 %v4907_v18, %v3321_v6 }
 0x4fa   :  { %v3326_v14 = vsel %vm3325_vm7, %v4907_v18, %v3322_v12 }
 0x4fb   :  { %v3331_v32 = vsel %vm3328_vm8, %v3330_v5, %v3326_v14 }
 0x4fc   :  { %v3341_v9 = vperm.slane %v3331_v32, 0  ;;  %v3366_v55 = vperm.slane %v3331_v32, 1 }
 0x4fe   :  { %v3342_v19 = vmul.f32 %v3341_v9, %v8552_v63  ;;  %v3343_v46 = vmul.f32 %v3341_v9, %v8553_v61  ;;  %v3344_v1 = vmul.f32 %v3341_v9, %v8554_v34  ;;  %v3345_v31 = vmul.f32 %v3341_v9, %v7524_v53 }
 0x4ff   :  { %v3346_v24 = vmul.f32 %v3341_v9, %v7639_v35  ;;  %v3347_v39 = vmul.f32 %v3341_v9, %v7651_v17  ;;  %v3348_v48 = vmul.f32 %v3341_v9, %v7670_v49  ;;  %v3349_v33 = vmul.f32 %v3341_v9, %v7705_v38  ;;  %v4575_v49 = vld [vmem:[#allocation11 + $0x170] sm:$0xff]  ;;  %v4574_v38 = vld [vmem:[#allocation11 + $0x168] sm:$0xff] }
 0x500   :  { %v3399_v52 = vpack.c.bf16 %v3343_v46, %v3342_v19  ;;  %v3400_v4 = vpack.c.bf16 %v3345_v31, %v3344_v1  ;;  %v3367_v47 = vmul.f32 %v3366_v55, %v7747_v60  ;;  %v3368_v58 = vmul.f32 %v3366_v55, %v7750_v56  ;;  %3631 = vmatpush.bf16.msrb.mxu0 %v4575_v49  ;;  %v4573_v60 = vld [vmem:[#allocation11 + $0x160] sm:$0xff] }
 0x501   :  { %v3401_v0 = vpack.c.bf16 %v3347_v39, %v3346_v24  ;;  %v3402_v51 = vpack.c.bf16 %v3349_v33, %v3348_v48  ;;  %v3369_v3 = vmul.f32 %v3366_v55, %v7757_v59  ;;  %v3370_v35 = vmul.f32 %v3366_v55, %v7814_v16  ;;  %v4571_v59 = vld [vmem:[#allocation11 + $0x150] sm:$0xff]  ;;  %v4570_v16 = vld [vmem:[#allocation11 + $0x148] sm:$0xff] }
 0x502   :  { %3480 = vmatmul.bf16.vlgmr.msra.gmra.mxu3 %v3399_v52  ;;  %v3403_v53 = vpack.c.bf16 %v3368_v58, %v3367_v47  ;;  %v3371_v25 = vmul.f32 %v3366_v55, %v7822_v2  ;;  %v3372_v37 = vmul.f32 %v3366_v55, %v7828_v22  ;;  %v3373_v28 = vmul.f32 %v3366_v55, %v7834_v10  ;;  %v4639_v22 = vld [vmem:[#allocation10 + $0xc] ss:$0 sm:$0xff] }
 0x503   :  { %v3404_v17 = vpack.c.bf16 %v3370_v35, %v3369_v3  ;;  %v3374_v44 = vmul.f32 %v3366_v55, %v7843_v26 }
 0x504   :  { %3632 = vmatpush.bf16.msrb.mxu0 %v4574_v38  ;;  %v3405_v56 = vpack.c.bf16 %v3372_v37, %v3371_v25 }
 0x505   :  { %v3406_v62 = vpack.c.bf16 %v3374_v44, %v3373_v28 }
 0x508   :  { %3633 = vmatpush.bf16.msrb.mxu0 %v4573_v60 }
 0x50c   :  { %3634 = vmatpush.bf16.msrb.mxu0 %v4572_v8 }
 0x510   :  { %3635 = vmatpush.bf16.msrb.mxu0 %v4571_v59 }
 0x512   :  { %3485 = vmatmul.bf16.gmra.mxu3 %v3400_v4 }
 0x514   :  { %3636 = vmatpush.bf16.msrb.mxu0 %v4570_v16 }
 0x518   :  { %3637 = vmatpush.bf16.msrb.mxu0 %v4569_v21 }
 0x522   :  { %3490 = vmatmul.bf16.gmra.mxu3 %v3401_v0 }
 0x532   :  { %3495 = vmatmul.bf16.gmra.mxu3 %v3402_v51 }
 0x542   :  { %3500 = vmatmul.bf16.gmra.mxu3 %v3403_v53 }
 0x552   :  { %3505 = vmatmul.bf16.gmra.mxu3 %v3404_v17 }
 0x562   :  { %3510 = vmatmul.bf16.gmra.mxu3 %v3405_v56 }
 0x572   :  { %3515 = vmatmul.bf16.gmra.mxu3 %v3406_v62 }
 0x585   :  { %v3481_v2 = vpop.f32.mrf.mxu3 }
 0x586   :  { %v3523_v54 = vmul.f32 %v4639_v22, %v3481_v2 }
 0x588   :  { %v3541_v29 = vadd.f32 %v4640_v45, %v3523_v54 }
 0x58d   :  { %v3483_v7 = vpop.f32.mrf.mxu3 }
 0x58e   :  { %v3524_v18 = vmul.f32 %v4639_v22, %v3483_v7 }
 0x590   :  { %v3542_v40 = vadd.f32 %v4640_v45, %v3524_v18  ;;  %v7863_v18 = vld [vmem:[#allocation10 + $0xe] ss:$0 sm:$0xff] }
 0x592   :  { %v3557_v27 = vpack.c.bf16 %v3542_v40, %v3541_v29 }
 0x594   :  { %3638 = vmatmul.bf16.vlgmr.msrb.gmra.mxu0 %v3557_v27  ;;  %v7866_v27 = vld [vmem:[#allocation10 + $0xf] ss:$0 sm:$0xff] }
 0x595   :  { %v3486_v50 = vpop.f32.mrf.mxu3 }
 0x596   :  { %v3525_v6 = vmul.f32 %v4639_v22, %v3486_v50 }
 0x598   :  { %v3543_v26 = vadd.f32 %v4640_v45, %v3525_v6 }
 0x59d   :  { %v3488_v10 = vpop.f32.mrf.mxu3 }
 0x59e   :  { %v3526_v20 = vmul.f32 %v4639_v22, %v3488_v10 }
 0x5a0   :  { %v3544_v43 = vadd.f32 %v4640_v45, %v3526_v20 }
 0x5a2   :  { %v3558_v12 = vpack.c.bf16 %v3544_v43, %v3543_v26 }
 0x5a4   :  { %3643 = vmatmul.bf16.gmra.mxu0 %v3558_v12 }
 0x5a5   :  { %v3491_v5 = vpop.f32.mrf.mxu3 }
 0x5a6   :  { %v3527_v14 = vmul.f32 %v4639_v22, %v3491_v5 }
 0x5a8   :  { %v3545_v63 = vadd.f32 %v4640_v45, %v3527_v14 }
 0x5ad   :  { %v3493_v32 = vpop.f32.mrf.mxu3 }
 0x5ae   :  { %v3528_v9 = vmul.f32 %v4639_v22, %v3493_v32 }
 0x5b0   :  { %v3546_v19 = vadd.f32 %v4640_v45, %v3528_v9 }
 0x5b2   :  { %v3559_v61 = vpack.c.bf16 %v3546_v19, %v3545_v63 }
 0x5b4   :  { %3648 = vmatmul.bf16.gmra.mxu0 %v3559_v61 }
 0x5b5   :  { %v3496_v46 = vpop.f32.mrf.mxu3 }
 0x5b6   :  { %v3529_v52 = vmul.f32 %v4639_v22, %v3496_v46 }
 0x5b8   :  { %v3547_v31 = vadd.f32 %v4640_v45, %v3529_v52 }
 0x5bd   :  { %v3498_v34 = vpop.f32.mrf.mxu3 }
 0x5be   :  { %v3530_v1 = vmul.f32 %v4639_v22, %v3498_v34 }
 0x5c0   :  { %v3548_v4 = vadd.f32 %v4640_v45, %v3530_v1 }
 0x5c2   :  { %v3560_v24 = vpack.c.bf16 %v3548_v4, %v3547_v31 }
 0x5c4   :  { %3653 = vmatmul.bf16.gmra.mxu0 %v3560_v24 }
 0x5c5   :  { %v3501_v39 = vpop.f32.mrf.mxu3 }
 0x5c6   :  { %v3531_v0 = vmul.f32 %v4639_v22, %v3501_v39 }
 0x5c8   :  { %v3549_v51 = vadd.f32 %v4640_v45, %v3531_v0 }
 0x5cd   :  { %v3503_v48 = vpop.f32.mrf.mxu3 }
 0x5ce   :  { %v3532_v33 = vmul.f32 %v4639_v22, %v3503_v48 }
 0x5d0   :  { %v3550_v55 = vadd.f32 %v4640_v45, %v3532_v33 }
 0x5d2   :  { %v3561_v47 = vpack.c.bf16 %v3550_v55, %v3549_v51 }
 0x5d4   :  { %3658 = vmatmul.bf16.gmra.mxu0 %v3561_v47 }
 0x5d5   :  { %v3506_v58 = vpop.f32.mrf.mxu3 }
 0x5d6   :  { %v3533_v53 = vmul.f32 %v4639_v22, %v3506_v58 }
 0x5d8   :  { %v3551_v17 = vadd.f32 %v4640_v45, %v3533_v53 }
 0x5dd   :  { %v3508_v3 = vpop.f32.mrf.mxu3 }
 0x5de   :  { %v3534_v35 = vmul.f32 %v4639_v22, %v3508_v3 }
 0x5e0   :  { %v3552_v23 = vadd.f32 %v4640_v45, %v3534_v35 }
 0x5e2   :  { %v3562_v49 = vpack.c.bf16 %v3552_v23, %v3551_v17 }
 0x5e4   :  { %3663 = vmatmul.bf16.gmra.mxu0 %v3562_v49 }
 0x5e5   :  { %v3511_v38 = vpop.f32.mrf.mxu3 }
 0x5e6   :  { %v3535_v25 = vmul.f32 %v4639_v22, %v3511_v38 }
 0x5e8   :  { %v3553_v56 = vadd.f32 %v4640_v45, %v3535_v25 }
 0x5ed   :  { %v3513_v37 = vpop.f32.mrf.mxu3 }
 0x5ee   :  { %v3536_v60 = vmul.f32 %v4639_v22, %v3513_v37 }
 0x5f0   :  { %v3554_v8 = vadd.f32 %v4640_v45, %v3536_v60 }
 0x5f2   :  { %v3563_v59 = vpack.c.bf16 %v3554_v8, %v3553_v56 }
 0x5f4   :  { %3668 = vmatmul.bf16.gmra.mxu0 %v3563_v59 }
 0x5f5   :  { %v3516_v16 = vpop.f32.mrf.mxu3 }
 0x5f6   :  { %v3537_v28 = vmul.f32 %v4639_v22, %v3516_v16 }
 0x5f8   :  { %v3555_v21 = vadd.f32 %v4640_v45, %v3537_v28 }
 0x5fd   :  { %v3518_v44 = vpop.f32.mrf.mxu3 }
 0x5fe   :  { %v3538_v62 = vmul.f32 %v4639_v22, %v3518_v44 }
 0x600   :  { %v3556_v2 = vadd.f32 %v4640_v45, %v3538_v62  ;;  %v4584_v62 = vld [vmem:[#allocation11 + $0x1b8] sm:$0xff] }
 0x601   :  { %4150 = vmatpush.bf16.msra.mxu1 %v4584_v62 }
 0x602   :  { %v3564_v54 = vpack.c.bf16 %v3556_v2, %v3555_v21 }
 0x604   :  { %3673 = vmatmul.bf16.gmra.mxu0 %v3564_v54 }
 0x611   :  { %v3639_v7 = vpop.f32.mrf.mxu0 }
 0x612   :  { %v3681_v40 = vmul.f32 %v7863_v18, %v3639_v7 }
 0x614   :  { %v7870_v6 = vadd.f32 %v7866_v27, %v3681_v40 }
 0x616   :  { %v4473_v20 = vmul.f32 -1.442695, %v7870_v6 }
 0x618   :  { %4908 = vpow2.f32 %v4473_v20 }
 0x619   :  { %v3641_v29 = vpop.f32.mrf.mxu0 }
 0x61a   :  { %v3682_v50 = vmul.f32 %v7863_v18, %v3641_v29 }
 0x61c   :  { %v7873_v10 = vadd.f32 %v7866_v27, %v3682_v50 }
 0x61e   :  { %v4474_v43 = vmul.f32 -1.442695, %v7873_v10  ;;  %v4909_v9 = vpop.eup %4908 }
 0x61f   :  { %v7887_v46 = vadd.f32 1.0, %v4909_v9 }
 0x620   :  { %4910 = vpow2.f32 %v4474_v43 }
 0x621   :  { %v3644_v22 = vpop.f32.mrf.mxu0  ;;  %v3788_v2 = vand.u32 2147483647, %v7887_v46  ;;  %v3790_v54 = vand.u32 2147483648, %v7887_v46  ;;  %vm3784_vm9 = vweird.f32 %v7887_v46 }
 0x622   :  { %v3683_v45 = vmul.f32 %v7863_v18, %v3644_v22 }
 0x623   :  { %vm7949_vm11 = vcmp.eq.f32.partialorder %v3788_v2, 8.507059e+37 }
 0x624   :  { %v7878_v26 = vadd.f32 %v7866_v27, %v3683_v45 }
 0x626   :  { %v4475_v12 = vmul.f32 -1.442695, %v7878_v26  ;;  %v4911_v19 = vpop.eup %4910 }
 0x627   :  { %v7889_v34 = vadd.f32 1.0, %v4911_v19 }
 0x628   :  { %4912 = vpow2.f32 %v4475_v12 }
 0x629   :  { %v3646_v5 = vpop.f32.mrf.mxu0  ;;  %vm3799_vm13 = vweird.f32 %v7889_v34 }
 0x62a   :  { %v3684_v14 = vmul.f32 %v7863_v18, %v3646_v5  ;;  %v3791_v5 = vor.u32 1.1754944e-38, %v3790_v54 }
 0x62c   :  { %v7884_v32 = vadd.f32 %v7866_v27, %v3684_v14  ;;  %v3803_v14 = vand.u32 2147483647, %v7889_v34 }
 0x62e   :  { %v4476_v63 = vmul.f32 -1.442695, %v7884_v32  ;;  %v4913_v61 = vpop.eup %4912  ;;  %vm7979_vm0 = vcmp.eq.f32.partialorder %v3803_v14, 8.507059e+37 }
 0x62f   :  { %v7892_v31 = vadd.f32 1.0, %v4913_v61 }
 0x630   :  { %4914 = vpow2.f32 %v4476_v63 }
 0x631   :  { %v3649_v52 = vpop.f32.mrf.mxu0  ;;  %4916 = vrcp.f32 %v7887_v46  ;;  %vm3814_vm1 = vweird.f32 %v7892_v31 }
 0x632   :  { %v3685_v1 = vmul.f32 %v7863_v18, %v3649_v52  ;;  %4918 = vrcp.f32 %v7889_v34  ;;  %v3805_v52 = vand.u32 2147483648, %v7889_v34 }
 0x633   :  { %4920 = vrcp.f32 %v7892_v31 }
 0x634   :  { %v7895_v4 = vadd.f32 %v7866_v27, %v3685_v1 }
 0x636   :  { %v4477_v24 = vmul.f32 -1.442695, %v7895_v4  ;;  %v4915_v39 = vpop.eup %4914 }
 0x637   :  { %v7901_v48 = vadd.f32 1.0, %v4915_v39  ;;  %v7904_v51 = vpop.eup %4916 }
 0x638   :  { %4922 = vpow2.f32 %v4477_v24  ;;  %v7906_v55 = vpop.eup %4918  ;;  %v3780_v3 = vmul.f32 %v7904_v51, %v7887_v46  ;;  %vm3785_vm10 = vweird.f32 %v7904_v51 }
 0x639   :  { %v3651_v0 = vpop.f32.mrf.mxu0  ;;  %v7911_v58 = vpop.eup %4920  ;;  %4924 = vrcp.f32 %v7901_v48  ;;  %v3795_v23 = vmul.f32 %v7906_v55, %v7889_v34  ;;  %vm3800_vm2 = vweird.f32 %v7906_v55  ;;  %vm7959_vm12 = vmor %vm3784_vm9, %vm3785_vm10  ;;  %v3835_v2 = vand.u32 2147483648, %v7901_v48 }
 0x63a   :  { %v3686_v33 = vmul.f32 %v7863_v18, %v3651_v0  ;;  %v3810_v49 = vmul.f32 %v7911_v58, %v7892_v31  ;;  %v3781_v25 = vsub.f32 1.0, %v3780_v3  ;;  %vm3815_vm14 = vweird.f32 %v7911_v58  ;;  %vm7975_vm15 = vmor %vm3799_vm13, %vm3800_vm2 }
 0x63b   :  { %v3796_v56 = vsub.f32 1.0, %v3795_v23  ;;  %v3818_v0 = vand.u32 2147483647, %v7892_v31  ;;  %vm7990_vm3 = vmor %vm3814_vm1, %vm3815_vm14  ;;  %vm3829_vm7 = vweird.f32 %v7901_v48 }
 0x63c   :  { %v7909_v47 = vadd.f32 %v7866_v27, %v3686_v33  ;;  %v3811_v59 = vsub.f32 1.0, %v3810_v49  ;;  %v3782_v28 = vmul.f32 %v7904_v51, %v3781_v25  ;;  %v3820_v33 = vand.u32 2147483648, %v7892_v31 }
 0x63d   :  { %v3797_v40 = vmul.f32 %v7906_v55, %v3796_v56  ;;  %v3806_v56 = vor.u32 1.1754944e-38, %v3805_v52  ;;  %vm3819_vm4 = vcmp.eq.f32.partialorder %v3818_v0, 8.507059e+37 }
 0x63e   :  { %v4923_v53 = vpop.eup %4922  ;;  %v4478_v35 = vmul.f32 -1.442695, %v7909_v47  ;;  %v3812_v22 = vmul.f32 %v7911_v58, %v3811_v59  ;;  %v3783_v20 = vadd.f32 %v7904_v51, %v3782_v28 }
 0x63f   :  { %v7917_v17 = vadd.f32 1.0, %v4923_v53  ;;  %v7925_v60 = vpop.eup %4924  ;;  %v3798_v63 = vadd.f32 %v7906_v55, %v3797_v40 }
 0x640   :  { %4926 = vpow2.f32 %v4478_v35  ;;  %v3825_v7 = vmul.f32 %v7925_v60, %v7901_v48  ;;  %v3813_v1 = vadd.f32 %v7911_v58, %v3812_v22  ;;  %v3787_v39 = vsel %vm7959_vm12, %v7904_v51, %v3783_v20 }
 0x641   :  { %4928 = vrcp.f32 %v7917_v17  ;;  %v3654_v38 = vpop.f32.mrf.mxu0  ;;  %v3802_v49 = vsel %vm7975_vm15, %v7906_v55, %v3798_v63  ;;  %v3792_v31 = vsel %vm7949_vm11, %v3791_v5, %v3787_v39  ;;  %v3821_v55 = vor.u32 1.1754944e-38, %v3820_v33 }
 0x642   :  { %v3687_v37 = vmul.f32 %v7863_v18, %v3654_v38  ;;  %v3826_v9 = vsub.f32 1.0, %v3825_v7  ;;  %v3817_v59 = vsel %vm7990_vm3, %v7911_v58, %v3813_v1  ;;  %vm3830_vm5 = vweird.f32 %v7925_v60 }
 0x643   :  { %v3822_v54 = vsel %vm3819_vm4, %v3821_v55, %v3817_v59  ;;  %v3848_v40 = vand.u32 2147483647, %v7917_v17  ;;  %vm8017_vm8 = vmor %vm3829_vm7, %vm3830_vm5  ;;  %vm3844_vm10 = vweird.f32 %v7917_v17 }
 0x644   :  { %v7928_v8 = vadd.f32 %v7866_v27, %v3687_v37  ;;  %v3827_v51 = vmul.f32 %v7925_v60, %v3826_v9  ;;  %v4021_v14 = vmul.f32 %v3822_v54, %v7878_v26  ;;  %v3836_v9 = vor.u32 1.1754944e-38, %v3835_v2 }
 0x645   :  { %vm3849_vm12 = vcmp.eq.f32.partialorder %v3848_v40, 8.507059e+37 }
 0x646   :  { %v4927_v16 = vpop.eup %4926  ;;  %v4479_v44 = vmul.f32 -1.442695, %v7928_v8  ;;  %v3828_v62 = vadd.f32 %v7925_v60, %v3827_v51 }
 0x647   :  { %v7932_v21 = vpop.eup %4928  ;;  %v7938_v29 = vadd.f32 1.0, %v4927_v16  ;;  %v3833_v16 = vand.u32 2147483647, %v7901_v48 }
 0x648   :  { %v3840_v50 = vmul.f32 %v7932_v21, %v7917_v17  ;;  %4930 = vpow2.f32 %v4479_v44  ;;  %v3807_v44 = vsel %vm7979_vm0, %v3806_v56, %v3802_v49  ;;  %vm3845_vm6 = vweird.f32 %v7932_v21 }
 0x649   :  { %4932 = vrcp.f32 %v7938_v29  ;;  %v3656_v45 = vpop.f32.mrf.mxu0  ;;  %v4020_v20 = vmul.f32 %v3807_v44, %v7873_v10  ;;  %vm8021_vm9 = vcmp.eq.f32.partialorder %v3833_v16, 8.507059e+37  ;;  %vm3846_vm11 = vmor %vm3844_vm10, %vm3845_vm6  ;;  %v3865_v46 = vand.u32 2147483648, %v7938_v29 }
 0x64a   :  { %v3688_v43 = vmul.f32 %v7863_v18, %v3656_v45  ;;  %v3841_v19 = vsub.f32 1.0, %v3840_v50  ;;  %v3850_v50 = vand.u32 2147483648, %v7917_v17  ;;  %v4019_v45 = vmul.f32 %v3792_v31, %v7870_v6 }
 0x64b   :  { %v3832_v6 = vsel %vm8017_vm8, %v7925_v60, %v3828_v62  ;;  %vm3859_vm13 = vweird.f32 %v7938_v29  ;;  %v3863_v52 = vand.u32 2147483647, %v7938_v29  ;;  %v3866_v51 = vor.u32 1.1754944e-38, %v3865_v46 }
 0x64c   :  { %v7957_v61 = vadd.f32 %v7866_v27, %v3688_v43  ;;  %v3842_v25 = vmul.f32 %v7932_v21, %v3841_v19  ;;  %v3851_v26 = vor.u32 1.1754944e-38, %v3850_v50  ;;  %v3837_v60 = vsel %vm8021_vm9, %v3836_v9, %v3832_v6 }
 0x64d   :  { %v4035_v35 = vmul.f32 %v4019_v45, %v8550_v13  ;;  %v4022_v34 = vmul.f32 %v3837_v60, %v7884_v32  ;;  %v4037_v49 = vmul.f32 %v4021_v14, %v8551_v41  ;;  %vm3864_vm0 = vcmp.eq.f32.partialorder %v3863_v52, 8.507059e+37 }
 0x64e   :  { %v4931_v24 = vpop.eup %4930  ;;  %v4480_v53 = vmul.f32 -1.442695, %v7957_v61  ;;  %v3843_v7 = vadd.f32 %v7932_v21, %v3842_v25  ;;  %v4583_v25 = vld [vmem:[#allocation11 + $0x1b0] sm:$0xff] }
 0x64f   :  { %v7973_v3 = vpop.eup %4932  ;;  %v7985_v23 = vadd.f32 1.0, %v4931_v24  ;;  %4151 = vmatpush.bf16.msra.mxu1 %v4583_v25  ;;  %v4038_v44 = vmul.f32 %v4022_v34, %v7537_v36 }
 0x650   :  { %v3855_v37 = vmul.f32 %v7973_v3, %v7938_v29  ;;  %4934 = vpow2.f32 %v4480_v53  ;;  %v3847_v63 = vsel %vm3846_vm11, %v7932_v21, %v3843_v7  ;;  %vm3860_vm2 = vweird.f32 %v7973_v3 }
 0x651   :  { %4936 = vrcp.f32 %v7985_v23  ;;  %v3659_v48 = vpop.f32.mrf.mxu0  ;;  %v3852_v1 = vsel %vm3849_vm12, %v3851_v26, %v3847_v63  ;;  %vm8044_vm14 = vmor %vm3859_vm13, %vm3860_vm2  ;;  %v3880_v39 = vand.u32 2147483648, %v7985_v23  ;;  %v3878_v53 = vand.u32 2147483647, %v7985_v23 }
 0x652   :  { %v3856_v28 = vsub.f32 1.0, %v3855_v37  ;;  %v4036_v29 = vmul.f32 %v4020_v20, %v8547_v30  ;;  %vm3874_vm1 = vweird.f32 %v7985_v23  ;;  %v4023_v31 = vmul.f32 %v3852_v1, %v7895_v4 }
 0x653   :  { %v3881_v59 = vor.u32 1.1754944e-38, %v3880_v39  ;;  %v3689_v55 = vmul.f32 %v7863_v18, %v3659_v48  ;;  %vm3879_vm4 = vcmp.eq.f32.partialorder %v3878_v53, 8.507059e+37 }
 0x654   :  { %v3857_v58 = vmul.f32 %v7973_v3, %v3856_v28  ;;  %v4043_v28 = vadd.f32 %v4036_v29, %v4035_v35  ;;  %v4039_v7 = vmul.f32 %v4023_v31, %v7643_v15 }
 0x655   :  { %v8068_v40 = vadd.f32 %v7866_v27, %v3689_v55 }
 0x656   :  { %v4935_v22 = vpop.eup %4934  ;;  %v3858_v19 = vadd.f32 %v7973_v3, %v3857_v58  ;;  %v4044_v54 = vadd.f32 %v4043_v28, %v4037_v49 }
 0x657   :  { %v4937_v5 = vpop.eup %4936  ;;  %v8032_v10 = vadd.f32 1.0, %v4935_v22  ;;  %v4481_v6 = vmul.f32 -1.442695, %v8068_v40 }
 0x658   :  { %v3870_v17 = vmul.f32 %v4937_v5, %v7985_v23  ;;  %v3862_v0 = vsel %vm8044_vm14, %v7973_v3, %v3858_v19  ;;  %vm3875_vm15 = vweird.f32 %v4937_v5  ;;  %v4045_v20 = vadd.f32 %v4044_v54, %v4038_v44 }
 0x659   :  { %4938 = vrcp.f32 %v8032_v10  ;;  %v3661_v37 = vpop.f32.mrf.mxu0  ;;  %v3867_v56 = vsel %vm3864_vm0, %v3866_v51, %v3862_v0  ;;  %vm3876_vm3 = vmor %vm3874_vm1, %vm3875_vm15  ;;  %v3895_v58 = vand.u32 2147483648, %v8032_v10  ;;  %v3893_v45 = vand.u32 2147483647, %v8032_v10 }
 0x65a   :  { %v3871_v21 = vsub.f32 1.0, %v3870_v17  ;;  %v4024_v62 = vmul.f32 %v3867_v56, %v7909_v47  ;;  %v3690_v4 = vmul.f32 %v7863_v18, %v3661_v37  ;;  %vm3889_vm6 = vweird.f32 %v8032_v10 }
 0x65b   :  { %v3896_v14 = vor.u32 1.1754944e-38, %v3895_v58  ;;  %vm3894_vm8 = vcmp.eq.f32.partialorder %v3893_v45, 8.507059e+37  ;;  %4940 = vpow2.f32 %v4481_v6 }
 0x65c   :  { %v3872_v33 = vmul.f32 %v4937_v5, %v3871_v21  ;;  %v4040_v47 = vmul.f32 %v4024_v62, %v7659_v11  ;;  %v8075_v12 = vadd.f32 %v7866_v27, %v3690_v4  ;;  %v4582_v21 = vld [vmem:[#allocation11 + $0x1a8] sm:$0xff] }
 0x65d   :  { %4152 = vmatpush.bf16.msra.mxu1 %v4582_v21 }
 0x65e   :  { %v3873_v38 = vadd.f32 %v4937_v5, %v3872_v33 }
 0x65f   :  { %v4939_v3 = vpop.eup %4938 }
 0x660   :  { %v3877_v16 = vsel %vm3876_vm3, %v4937_v5, %v3873_v38  ;;  %v3885_v32 = vmul.f32 %v4939_v3, %v8032_v10  ;;  %vm3890_vm5 = vweird.f32 %v4939_v3  ;;  %v4046_v5 = vadd.f32 %v4045_v20, %v4039_v7 }
 0x661   :  { %v3882_v23 = vsel %vm3879_vm4, %v3881_v59, %v3877_v16  ;;  %v3664_v48 = vpop.f32.mrf.mxu0  ;;  %vm3891_vm7 = vmor %vm3889_vm6, %vm3890_vm5  ;;  %v4482_v10 = vmul.f32 -1.442695, %v8075_v12 }
 0x662   :  { %v3886_v2 = vsub.f32 1.0, %v3885_v32  ;;  %v4025_v50 = vmul.f32 %v3882_v23, %v7928_v8  ;;  %v3691_v63 = vmul.f32 %v7863_v18, %v3664_v48  ;;  %v4047_v17 = vadd.f32 %v4046_v5, %v4040_v47  ;;  %v4581_v32 = vld [vmem:[#allocation11 + $0x1a0] sm:$0xff] }
 0x663   :  { %4942 = vpow2.f32 %v4482_v10  ;;  %4153 = vmatpush.bf16.msra.mxu1 %v4581_v32 }
 0x664   :  { %v3887_v22 = vmul.f32 %v4939_v3, %v3886_v2  ;;  %v4041_v8 = vmul.f32 %v4025_v50, %v7679_v42  ;;  %v8083_v46 = vadd.f32 %v7866_v27, %v3691_v63 }
 0x666   :  { %v3888_v43 = vadd.f32 %v4939_v3, %v3887_v22  ;;  %v4048_v60 = vadd.f32 %v4047_v17, %v4041_v8  ;;  %v4483_v39 = vmul.f32 -1.442695, %v8083_v46 }
 0x668   :  { %v3892_v9 = vsel %vm3891_vm7, %v4939_v3, %v3888_v43  ;;  %4944 = vpow2.f32 %v4483_v39 }
 0x669   :  { %v3897_v19 = vsel %vm3894_vm8, %v3896_v14, %v3892_v9  ;;  %v3666_v24 = vpop.f32.mrf.mxu0 }
 0x66a   :  { %v4026_v26 = vmul.f32 %v3897_v19, %v7957_v61  ;;  %v3692_v33 = vmul.f32 %v7863_v18, %v3666_v24  ;;  %v4941_v61 = vpop.eup %4940 }
 0x66b   :  { %v4943_v29 = vpop.eup %4942  ;;  %v8091_v51 = vadd.f32 1.0, %v4941_v61 }
 0x66c   :  { %v4042_v52 = vmul.f32 %v4026_v26, %v7697_v57  ;;  %v8089_v35 = vadd.f32 %v7866_v27, %v3692_v33  ;;  %v8094_v37 = vadd.f32 1.0, %v4943_v29 }
 0x66d   :  { %v3910_v39 = vand.u32 2147483648, %v8091_v51  ;;  %vm3904_vm10 = vweird.f32 %v8091_v51 }
 0x66e   :  { %v4049_v1 = vadd.f32 %v4048_v60, %v4042_v52  ;;  %v4484_v49 = vmul.f32 -1.442695, %v8089_v35  ;;  %v4945_v56 = vpop.eup %4944  ;;  %v4580_v60 = vld [vmem:[#allocation11 + $0x198] sm:$0xff]  ;;  %v3925_v29 = vand.u32 2147483648, %v8094_v37  ;;  %vm3919_vm12 = vweird.f32 %v8094_v37 }
 0x66f   :  { %v8103_v44 = vadd.f32 1.0, %v4945_v56  ;;  %4154 = vmatpush.bf16.msra.mxu1 %v4580_v60  ;;  %v3923_v56 = vand.u32 2147483647, %v8094_v37 }
 0x670   :  { %v4050_v0 = vrot.slane %v4049_v1, 4  ;;  %4946 = vpow2.f32 %v4484_v49  ;;  %v3926_v32 = vor.u32 1.1754944e-38, %v3925_v29 }
 0x671   :  { %v3669_v25 = vpop.f32.mrf.mxu0  ;;  %4948 = vrcp.f32 %v8091_v51  ;;  %vm3924_vm0 = vcmp.eq.f32.partialorder %v3923_v56, 8.507059e+37  ;;  %vm3934_vm1 = vweird.f32 %v8103_v44 }
 0x672   :  { %v4051_v53 = vadd.f32 %v4050_v0, %v4049_v1  ;;  %v3693_v3 = vmul.f32 %v7863_v18, %v3669_v25  ;;  %4950 = vrcp.f32 %v8094_v37 }
 0x674   :  { %v4052_v34 = vrot.slane %v4051_v53, 2  ;;  %v8099_v59 = vadd.f32 %v7866_v27, %v3693_v3 }
 0x676   :  { %v4053_v38 = vadd.f32 %v4052_v34, %v4051_v53  ;;  %v4485_v16 = vmul.f32 -1.442695, %v8099_v59  ;;  %v4947_v23 = vpop.eup %4946  ;;  %v3908_v53 = vand.u32 2147483647, %v8091_v51 }
 0x677   :  { %v8105_v62 = vpop.eup %4948  ;;  %v8108_v4 = vadd.f32 1.0, %v4947_v23 }
 0x678   :  { %v4054_v31 = vrot.slane %v4053_v38, 1  ;;  %4952 = vpow2.f32 %v4485_v16  ;;  %v8111_v7 = vpop.eup %4950  ;;  %v3900_v58 = vmul.f32 %v8105_v62, %v8091_v51  ;;  %vm3905_vm9 = vweird.f32 %v8105_v62 }
 0x679   :  { %v3671_v2 = vpop.f32.mrf.mxu0  ;;  %4954 = vrcp.f32 %v8103_v44  ;;  %v3915_v45 = vmul.f32 %v8111_v7, %v8094_v37  ;;  %vm8153_vm11 = vmor %vm3904_vm10, %vm3905_vm9  ;;  %vm3920_vm2 = vweird.f32 %v8111_v7  ;;  %vm3909_vm13 = vcmp.eq.f32.partialorder %v3908_v53, 8.507059e+37 }
 0x67a   :  { %v4055_v55 = vadd.f32 %v4054_v31, %v4053_v38  ;;  %v3694_v54 = vmul.f32 %v7863_v18, %v3671_v2  ;;  %4956 = vrcp.f32 %v8108_v4  ;;  %v3901_v43 = vsub.f32 1.0, %v3900_v58  ;;  %vm8169_vm14 = vmor %vm3919_vm12, %vm3920_vm2 }
 0x67b   :  { %v3916_v14 = vsub.f32 1.0, %v3915_v45  ;;  %v3938_v2 = vand.u32 2147483647, %v8103_v44  ;;  %v3940_v45 = vand.u32 2147483648, %v8103_v44  ;;  %vm3949_vm7 = vweird.f32 %v8108_v4 }
 0x67c   :  { %v4056_v28 = vmul.f32 0.0625, %v4055_v55  ;;  %v8116_v50 = vadd.f32 %v7866_v27, %v3694_v54  ;;  %v3902_v8 = vmul.f32 %v8105_v62, %v3901_v43  ;;  %v3953_v43 = vand.u32 2147483647, %v8108_v4 }
 0x67d   :  { %v3917_v26 = vmul.f32 %v8111_v7, %v3916_v14  ;;  %vm3939_vm4 = vcmp.eq.f32.partialorder %v3938_v2, 8.507059e+37 }
 0x67e   :  { %4057 = vst [vmem:[#allocation4] sm:$0x1] %v4056_v28  ;;  %v4953_v22 = vpop.eup %4952  ;;  %v4486_v47 = vmul.f32 -1.442695, %v8116_v50  ;;  %v3903_v21 = vadd.f32 %v8105_v62, %v3902_v8  ;;  %vm8209_vm8 = vcmp.eq.f32.partialorder %v3953_v43, 8.507059e+37 }
 0x67f   :  { %v8121_v20 = vadd.f32 1.0, %v4953_v22  ;;  %v8124_v48 = vpop.eup %4954  ;;  %v3918_v38 = vadd.f32 %v8111_v7, %v3917_v26 }
 0x680   :  { %v3930_v9 = vmul.f32 %v8124_v48, %v8103_v44  ;;  %v8131_v63 = vpop.eup %4956  ;;  %v3907_v25 = vsel %vm8153_vm11, %v8105_v62, %v3903_v21  ;;  %vm3935_vm15 = vweird.f32 %v8124_v48  ;;  %v3955_v44 = vand.u32 2147483648, %v8108_v4 }
 0x681   :  { %4958 = vrcp.f32 %v8121_v20  ;;  %v3674_v5 = vpop.f32.mrf.mxu0  ;;  %v3945_v24 = vmul.f32 %v8131_v63, %v8108_v4  ;;  %vm8195_vm3 = vmor %vm3934_vm1, %vm3935_vm15  ;;  %vm3950_vm5 = vweird.f32 %v8131_v63  ;;  %vm3964_vm10 = vweird.f32 %v8121_v20 }
 0x682   :  { %4960 = vpow2.f32 %v4486_v47  ;;  %v3695_v6 = vmul.f32 %v7863_v18, %v3674_v5  ;;  %v3931_v1 = vsub.f32 1.0, %v3930_v9  ;;  %vm8215_vm9 = vmor %vm3949_vm7, %vm3950_vm5  ;;  %v3956_v53 = vor.u32 1.1754944e-38, %v3955_v44 }
 0x683   :  { %v3946_v3 = vsub.f32 1.0, %v3945_v24 }
 0x684   :  { %v8134_v19 = vadd.f32 %v7866_v27, %v3695_v6  ;;  %v3932_v51 = vmul.f32 %v8124_v48, %v3931_v1 }
 0x685   :  { %v3947_v54 = vmul.f32 %v8131_v63, %v3946_v3 }
 0x686   :  { %v4487_v10 = vmul.f32 -1.442695, %v8134_v19  ;;  %v3933_v37 = vadd.f32 %v8124_v48, %v3932_v51 }
 0x687   :  { %v8136_v17 = vpop.eup %4958  ;;  %v3948_v9 = vadd.f32 %v8131_v63, %v3947_v54 }
 0x688   :  { %v4961_v52 = vpop.eup %4960  ;;  %v3960_v0 = vmul.f32 %v8136_v17, %v8121_v20  ;;  %4962 = vpow2.f32 %v4487_v10  ;;  %v3937_v8 = vsel %vm8195_vm3, %v8124_v48, %v3933_v37  ;;  %v3941_v10 = vor.u32 1.1754944e-38, %v3940_v45 }
 0x689   :  { %v8147_v33 = vadd.f32 1.0, %v4961_v52  ;;  %v3676_v61 = vpop.f32.mrf.mxu0  ;;  %vm3965_vm6 = vweird.f32 %v8136_v17  ;;  %v3970_v48 = vand.u32 2147483648, %v8121_v20 }
 0x68a   :  { %v3696_v34 = vmul.f32 %v7863_v18, %v3676_v61  ;;  %v3911_v18 = vor.u32 1.1754944e-38, %v3910_v39  ;;  %v3961_v55 = vsub.f32 1.0, %v3960_v0  ;;  %v3942_v24 = vsel %vm3939_vm4, %v3941_v10, %v3937_v8  ;;  %vm8226_vm11 = vmor %vm3964_vm10, %vm3965_vm6 }
 0x68b   :  { %4964 = vrcp.f32 %v8147_v33  ;;  %v3952_v61 = vsel %vm8215_vm9, %v8131_v63, %v3948_v9  ;;  %v3985_v49 = vand.u32 2147483648, %v8147_v33  ;;  %v4029_v63 = vmul.f32 %v3942_v24, %v8083_v46 }
 0x68c   :  { %v8165_v31 = vadd.f32 %v7866_v27, %v3696_v34  ;;  %v3912_v62 = vsel %vm3909_vm13, %v3911_v18, %v3907_v25  ;;  %v3922_v27 = vsel %vm8169_vm14, %v8111_v7, %v3918_v38  ;;  %v3962_v7 = vmul.f32 %v8136_v17, %v3961_v55 }
 0x68d   :  { %v3927_v47 = vsel %vm3924_vm0, %v3926_v32, %v3922_v27  ;;  %v4027_v14 = vmul.f32 %v3912_v62, %v8068_v40  ;;  %v3971_v25 = vor.u32 1.1754944e-38, %v3970_v48  ;;  %vm3979_vm12 = vweird.f32 %v8147_v33 }
 0x68e   :  { %v4488_v28 = vmul.f32 -1.442695, %v8165_v31  ;;  %v4963_v23 = vpop.eup %4962  ;;  %v4028_v40 = vmul.f32 %v3927_v47, %v8075_v12  ;;  %v3963_v60 = vadd.f32 %v8136_v17, %v3962_v7  ;;  %v3968_v12 = vand.u32 2147483647, %v8121_v20  ;;  %v4578_v47 = vld [vmem:[#allocation11 + $0x188] sm:$0xff] }
 0x68f   :  { %v8181_v58 = vadd.f32 1.0, %v4963_v23  ;;  %v3983_v51 = vand.u32 2147483647, %v8147_v33  ;;  %v3957_v3 = vsel %vm8209_vm8, %v3956_v53, %v3952_v61  ;;  %v3986_v32 = vor.u32 1.1754944e-38, %v3985_v49 }
 0x690   :  { %4966 = vpow2.f32 %v4488_v28  ;;  %v3967_v20 = vsel %vm8226_vm11, %v8136_v17, %v3963_v60  ;;  %vm3969_vm13 = vcmp.eq.f32.partialorder %v3968_v12, 8.507059e+37  ;;  %v4059_v56 = vmul.f32 %v4028_v40, %v8547_v30  ;;  %v4579_v30 = vld [vmem:[#allocation11 + $0x190] sm:$0xff] }
 0x691   :  { %v8183_v22 = vpop.eup %4964  ;;  %4968 = vrcp.f32 %v8181_v58  ;;  %v3972_v55 = vsel %vm3969_vm13, %v3971_v25, %v3967_v20  ;;  %v4000_v16 = vand.u32 2147483648, %v8181_v58  ;;  %v3998_v28 = vand.u32 2147483647, %v8181_v58  ;;  %4155 = vmatpush.bf16.msra.mxu1 %v4579_v30  ;;  %v4643_v20 = vld [vmem:[#allocation10 + $0x10] ss:$0 sm:$0xff] }
 0x692   :  { %v3975_v5 = vmul.f32 %v8183_v22, %v8147_v33  ;;  %vm3980_vm2 = vweird.f32 %v8183_v22  ;;  %v4058_v23 = vmul.f32 %v4027_v14, %v8550_v13  ;;  %v4060_v62 = vmul.f32 %v4029_v63, %v8551_v41 }
 0x693   :  { %vm8243_vm14 = vmor %vm3979_vm12, %vm3980_vm2  ;;  %v4030_v27 = vmul.f32 %v3957_v3, %v8089_v35  ;;  %vm3984_vm0 = vcmp.eq.f32.partialorder %v3983_v51, 8.507059e+37  ;;  %v4031_v37 = vmul.f32 %v3972_v55, %v8099_v59  ;;  %vm3994_vm1 = vweird.f32 %v8181_v58 }
 0x694   :  { %v3976_v26 = vsub.f32 1.0, %v3975_v5  ;;  %v4001_v45 = vor.u32 1.1754944e-38, %v4000_v16  ;;  %v4066_v13 = vadd.f32 %v4059_v56, %v4058_v23  ;;  %vm3999_vm4 = vcmp.eq.f32.partialorder %v3998_v28, 8.507059e+37 }
 0x695   :  { %v4061_v41 = vmul.f32 %v4030_v27, %v7537_v36  ;;  %v4062_v6 = vmul.f32 %v4031_v37, %v7643_v15  ;;  %4156 = vmatpush.bf16.msra.mxu1 %v4578_v47 }
 0x696   :  { %v4967_v52 = vpop.eup %4966  ;;  %v3977_v1 = vmul.f32 %v8183_v22, %v3976_v26  ;;  %v4067_v59 = vadd.f32 %v4066_v13, %v4060_v62  ;;  %v4577_v26 = vld [vmem:[#allocation11 + $0x180] sm:$0xff] }
 0x697   :  { %v8221_v0 = vadd.f32 1.0, %v4967_v52  ;;  %v4969_v4 = vpop.eup %4968 }
 0x698   :  { %v3978_v34 = vadd.f32 %v8183_v22, %v3977_v1  ;;  %v3990_v38 = vmul.f32 %v4969_v4, %v8181_v58  ;;  %vm3995_vm15 = vweird.f32 %v4969_v4  ;;  %v4068_v40 = vadd.f32 %v4067_v59, %v4061_v41 }
 0x699   :  { %4970 = vrcp.f32 %v8221_v0  ;;  %vm3996_vm3 = vmor %vm3994_vm1, %vm3995_vm15  ;;  %v4015_v58 = vand.u32 2147483648, %v8221_v0  ;;  %v4013_v9 = vand.u32 2147483647, %v8221_v0  ;;  %vm4009_vm6 = vweird.f32 %v8221_v0  ;;  %4157 = vmatpush.bf16.msra.mxu1 %v4577_v26 }
 0x69a   :  { %v3991_v17 = vsub.f32 1.0, %v3990_v38  ;;  %v3982_v46 = vsel %vm8243_vm14, %v8183_v22, %v3978_v34  ;;  %v4069_v60 = vadd.f32 %v4068_v40, %v4062_v6 }
 0x69b   :  { %v3987_v54 = vsel %vm3984_vm0, %v3986_v32, %v3982_v46  ;;  %vm4014_vm8 = vcmp.eq.f32.partialorder %v4013_v9, 8.507059e+37 }
 0x69c   :  { %v3992_v33 = vmul.f32 %v4969_v4, %v3991_v17  ;;  %v4032_v35 = vmul.f32 %v3987_v54, %v8116_v50  ;;  %v4016_v50 = vor.u32 1.1754944e-38, %v4015_v58 }
 0x69e   :  { %v3993_v22 = vadd.f32 %v4969_v4, %v3992_v33  ;;  %v4063_v36 = vmul.f32 %v4032_v35, %v7659_v11 }
 0x69f   :  { %v4971_v2 = vpop.eup %4970 }
 0x6a0   :  { %v4005_v7 = vmul.f32 %v4971_v2, %v8221_v0  ;;  %v3997_v43 = vsel %vm3996_vm3, %v4969_v4, %v3993_v22  ;;  %vm4010_vm5 = vweird.f32 %v4971_v2  ;;  %v4070_v21 = vadd.f32 %v4069_v60, %v4063_v36 }
 0x6a1   :  { %v4002_v5 = vsel %vm3999_vm4, %v4001_v45, %v3997_v43  ;;  %vm4011_vm7 = vmor %vm4009_vm6, %vm4010_vm5 }
 0x6a2   :  { %v4006_v14 = vsub.f32 1.0, %v4005_v7  ;;  %v4033_v44 = vmul.f32 %v4002_v5, %v8134_v19 }
 0x6a4   :  { %v4007_v8 = vmul.f32 %v4971_v2, %v4006_v14  ;;  %v4064_v15 = vmul.f32 %v4033_v44, %v7679_v42 }
 0x6a6   :  { %v4008_v10 = vadd.f32 %v4971_v2, %v4007_v8  ;;  %v4071_v1 = vadd.f32 %v4070_v21, %v4064_v15 }
 0x6a8   :  { %v4012_v52 = vsel %vm4011_vm7, %v4971_v2, %v4008_v10 }
 0x6a9   :  { %v4017_v19 = vsel %vm4014_vm8, %v4016_v50, %v4012_v52 }
 0x6aa   :  { %v4034_v48 = vmul.f32 %v4017_v19, %v8165_v31 }
 0x6ac   :  { %v4065_v24 = vmul.f32 %v4034_v48, %v7697_v57 }
 0x6ae   :  { %v4072_v39 = vadd.f32 %v4071_v1, %v4065_v24 }
 0x6b0   :  { %v4073_v11 = vrot.slane %v4072_v39, 4 }
 0x6b2   :  { %v4074_v12 = vadd.f32 %v4073_v11, %v4072_v39 }
 0x6b4   :  { %v4075_v4 = vrot.slane %v4074_v12, 2 }
 0x6b6   :  { %v4076_v0 = vadd.f32 %v4075_v4, %v4074_v12 }
 0x6b8   :  { %v4077_v61 = vrot.slane %v4076_v0, 1 }
 0x6ba   :  { %v4078_v53 = vadd.f32 %v4077_v61, %v4076_v0 }
 0x6bc   :  { %v4079_v29 = vmul.f32 0.0625, %v4078_v53 }
 0x6be   :  { %4080 = vst [vmem:[#allocation4 + $0x1] sm:$0x1] %v4079_v29 }
 0x6c5   :  { %v4081_v42 = vld [vmem:[#allocation4] sm:$0x3] }
 0x6c6   :  { %v4082_v34 = vpack.c.bf16 %v4081_v42, %v4081_v42 }
 0x6c8   :  { %4158 = vmatmul.bf16.vlgmr.msra.gmra.mxu1 %v4082_v34 }
 0x745   :  { %v4159_v57 = vpop.f32.mrf.mxu1 }
 0x746   :  { %v4160_v31 = vadd.f32 %v4643_v20, %v4159_v57 }
 0x748   :  { %4163 = vst [vmem:[#allocation13] sm:$0x3] %v4160_v31 }
 0x749   :  { %4174 = dma.vmem_to_hbm [thread:$0]  %s4170_s2, 32, %s4172_s13, [#allocation7]  }
 0x74d   :  { %v4161_v49 = vpop.f32.mrf.mxu1 }
 0x74e   :  { %5122 = dma.done.wait [#allocation7], 32  }
 0x74f   :  { %5123 = vsyncadd [#allocation7], 4294967264 }
 0x750   :  { %4179 = vsyncpa [#allocation6], 1 }
 0x751   :  { %4180 = vsyncpa [#allocation9], 1 }
 0x752   :  { %4181 = vsyncpa [#allocation12], 1 }
 0x753   :  { %4182 = vsyncpa [#allocation7], 1 }

</bundles_post_ra>
